<compile_context>
chip_gen: v7x
topology: tpu7x:2x2x1
jax: 0.10.0
libtpu: 0.0.40
codegen_flags: <defaults>
</compile_context>

<pallas_src>
import functools

import jax
import jax.numpy as jnp
from jax.experimental import pallas as pl
from jax.experimental.pallas import tpu as pltpu

LANE = 128


def _round_up(x, m):
    return (x + m - 1) // m * m


def _vmem_capacity_bytes():
    try:
        return int(pltpu.get_tpu_info().vmem_capacity_bytes)
    except Exception:
        return 64 * 1024 * 1024  # v7x-safe fallback


# ----------------------------- Kernel 1: concept masked-mean pooling ------------
def concept_mean_kernel(gathered_ref, mask_ref, out_ref):
    # gathered: [TB, L, HP] word embeddings per node (lane-padded), mask: [TB, L]
    g = gathered_ref[...]
    m = mask_ref[...]
    summed = jnp.sum(g * m[:, :, None], axis=1)                     # [TB, HP]
    cnt = jnp.maximum(jnp.sum(m, axis=1, keepdims=True), 1.0)       # [TB, 1]
    out_ref[...] = summed * pl.reciprocal(cnt, approx=True)         # EUP, not VPU divide


def concept_mean_pallas(gathered, mask, *, row_block=256):
    NPAD, L, HP = gathered.shape
    tb = max(LANE, (min(row_block, NPAD) // LANE) * LANE)
    while NPAD % tb != 0:
        tb -= LANE
    grid = (NPAD // tb,)
    return pl.pallas_call(
        concept_mean_kernel,
        out_shape=jax.ShapeDtypeStruct((NPAD, HP), jnp.float32),
        grid=grid,
        in_specs=[pl.BlockSpec((tb, L, HP), lambda i: (i, 0, 0)),
                  pl.BlockSpec((tb, L), lambda i: (i, 0))],
        out_specs=pl.BlockSpec((tb, HP), lambda i: (i, 0)),
        compiler_params=pltpu.CompilerParams(dimension_semantics=("parallel",)),
    )(gathered, mask)


# ----------------------------- Kernel 2: GatedGraphConv (all layers) -------------
def ggc_kernel(h0_ref, A_ref, W_ref, WihT_ref, WhhT_ref, bih_ref, bhh_ref,
               out_ref, hsnap_ref, *, tn, resident_a):
    l = pl.program_id(0)                 # layer (outer, sequential)
    b = pl.program_id(1)                 # destination-row block (inner, sequential)
    HP = out_ref.shape[1]

    # one-time init: the (resident) output block IS the node state
    @pl.when((l == 0) & (b == 0))
    def _init():
        out_ref[...] = h0_ref[...]

    # per-layer bf16 snapshot of the node state (source side of the propagation);
    # replaces the old full (NP,HP)x(HP,HP) "message bubble" with a cheap cast.
    @pl.when(b == 0)
    def _snapshot():
        hsnap_ref[...] = out_ref[...].astype(jnp.bfloat16)

    start = pl.multiple_of(b * tn, tn)
    if resident_a:
        A_rows = A_ref[pl.ds(start, tn), :]          # resident (NP,NP) A: slice rows
    else:
        A_rows = A_ref[...]                          # streamed (TN,NP) A row tile
    h_rows = out_ref[pl.ds(start, tn), :]            # [TN, HP] f32, not yet updated this layer

    # propagation via associativity: agg = (A[rows] @ h_snap) @ W[l]   (bf16 feeds, f32 acc)
    tmp = jnp.dot(A_rows, hsnap_ref[...], preferred_element_type=jnp.float32)
    agg = jnp.dot(tmp.astype(jnp.bfloat16), W_ref[0],
                  preferred_element_type=jnp.float32)                # [TN, HP]

    # fused GRUCell gates (PyTorch gate order r, z, n): two wide [.,HP]x[HP,3HP] bf16 matmuls
    gi = jnp.dot(agg.astype(jnp.bfloat16), WihT_ref[...],
                 preferred_element_type=jnp.float32) + bih_ref[...]
    gh = jnp.dot(h_rows.astype(jnp.bfloat16), WhhT_ref[...],
                 preferred_element_type=jnp.float32) + bhh_ref[...]
    r = jax.nn.sigmoid(gi[:, :HP] + gh[:, :HP])
    z = jax.nn.sigmoid(gi[:, HP:2 * HP] + gh[:, HP:2 * HP])
    n = jnp.tanh(gi[:, 2 * HP:] + r * gh[:, 2 * HP:])
    h_new = (1.0 - z) * n + z * h_rows                               # f32 elementwise (v5e-safe)

    # in-place update of the resident output/node-state block; safe because the layer
    # snapshot is already taken and only this block touches these rows within the layer.
    out_ref[pl.ds(start, tn), :] = h_new


def gated_graph_conv_pallas(h0, A_bf16, W, WihT, WhhT, bih, bhh, *, n_layers, row_block=256):
    NP, HP = h0.shape
    TN = max(LANE, (min(row_block, NP) // LANE) * LANE)
    while NP % TN != 0:
        TN -= LANE
    nb = NP // TN

    cap = _vmem_capacity_bytes()
    budget = int(0.85 * cap)              # generation-aware (v5e/v6e ~109 MiB, v7x ~54 MiB)

    def _residency(a_bytes):
        return (2 * NP * HP * 4                 # h0 (constant block, default buffering)
                + 2 * NP * HP * 4               # resident output / node state
                + a_bytes                       # adjacency
                + 2 * HP * HP * 2               # W[l] (bf16, pipelined by layer)
                + 2 * 2 * HP * 3 * HP * 2       # fused GRU weights (bf16)
                + 2 * 2 * 3 * HP * 4            # biases (f32)
                + NP * HP * 2                   # hsnap scratch (bf16)
                + 8 * TN * HP * 4)              # working intermediates (gi/gh/agg) fudge

    resident_bytes = _residency(2 * NP * NP * 2)
    streamed_bytes = _residency(2 * TN * NP * 2)
    a_resident = resident_bytes <= budget
    # TODO(synk): for graphs where even the streamed tile exceeds `budget`, shrink TN further.
    del streamed_bytes

    a_spec = (pl.BlockSpec((NP, NP), lambda l, b: (0, 0)) if a_resident
              else pl.BlockSpec((TN, NP), lambda l, b: (b, 0)))

    # advisory cost estimate for the surrounding XLA schedule
    flops = int(n_layers * (2 * NP * NP * HP          # A @ h_snap
                            + 2 * NP * HP * HP        # (.) @ W[l]
                            + 2 * 2 * NP * HP * 3 * HP))  # gi, gh
    transcendentals = int(n_layers * NP * 3 * HP)
    a_layers = 1 if a_resident else n_layers
    bytes_accessed = int(a_layers * NP * NP * 2       # A (bf16)
                         + 2 * NP * HP * 4            # h0 in, h out
                         + n_layers * HP * HP * 2     # W (bf16)
                         + 2 * HP * 3 * HP * 2        # fused GRU weights (bf16)
                         + 2 * 3 * HP * 4)

    return pl.pallas_call(
        functools.partial(ggc_kernel, tn=TN, resident_a=a_resident),
        out_shape=jax.ShapeDtypeStruct((NP, HP), jnp.float32),
        grid_spec=pltpu.PrefetchScalarGridSpec(
            num_scalar_prefetch=0,
            grid=(n_layers, nb),
            in_specs=[
                pl.BlockSpec((NP, HP), lambda l, b: (0, 0)),          # h0 (resident)
                a_spec,                                               # A (resident or streamed)
                pl.BlockSpec((1, HP, HP), lambda l, b: (l, 0, 0)),    # W[l] (pipelined, bf16)
                pl.BlockSpec((HP, 3 * HP), lambda l, b: (0, 0)),      # fused W_ih^T (bf16)
                pl.BlockSpec((HP, 3 * HP), lambda l, b: (0, 0)),      # fused W_hh^T (bf16)
                pl.BlockSpec((1, 3 * HP), lambda l, b: (0, 0)),       # b_ih (f32)
                pl.BlockSpec((1, 3 * HP), lambda l, b: (0, 0)),       # b_hh (f32)
            ],
            # constant index_map: node state stays resident in VMEM, HBM writeback once at
            # the end of the grid (no per-layer stale-block writes).
            out_specs=pl.BlockSpec((NP, HP), lambda l, b: (0, 0)),
            scratch_shapes=[pltpu.VMEM((NP, HP), jnp.bfloat16)],      # per-layer h snapshot
        ),
        compiler_params=pltpu.CompilerParams(
            # both axes must stay sequential: shared resident state + in-place row updates
            dimension_semantics=("arbitrary", "arbitrary"),
            vmem_limit_bytes=int(budget)),
        cost_estimate=pl.CostEstimate(flops=flops,
                                      transcendentals=transcendentals,
                                      bytes_accessed=bytes_accessed),
    )(h0, A_bf16, W, WihT, WhhT, bih, bhh)


# ----------------------------- Kernel 3: keyword aggregation + MLP --------------
def agg_mlp_kernel(gathered_ref, mask_ref, WmlpT_ref, bmlp_ref, out_ref):
    g = gathered_ref[...]    # [B, K, HP]
    m = mask_ref[...]        # [B, K]
    summed = jnp.sum(g * m[:, :, None], axis=1)                     # [B, HP]
    cnt = jnp.maximum(jnp.sum(m, axis=1, keepdims=True), 1.0)       # [B, 1]
    pooled = summed * pl.reciprocal(cnt, approx=True)
    out_ref[...] = jnp.dot(pooled, WmlpT_ref[...],
                           preferred_element_type=jnp.float32) + bmlp_ref[...]


def agg_mlp_pallas(gathered, mask, WmlpT, bmlp, *, col_block=512):
    B, K, HP = gathered.shape
    KVP = WmlpT.shape[1]
    tkv = max(LANE, (min(col_block, KVP) // LANE) * LANE)
    while KVP % tkv != 0:
        tkv -= LANE
    grid = (KVP // tkv,)
    return pl.pallas_call(
        agg_mlp_kernel,
        out_shape=jax.ShapeDtypeStruct((B, KVP), jnp.float32),
        grid=grid,
        in_specs=[pl.BlockSpec((B, K, HP), lambda j: (0, 0, 0)),
                  pl.BlockSpec((B, K), lambda j: (0, 0)),
                  pl.BlockSpec((HP, tkv), lambda j: (0, j)),
                  pl.BlockSpec((1, tkv), lambda j: (0, j))],
        out_specs=pl.BlockSpec((B, tkv), lambda j: (0, j)),
        compiler_params=pltpu.CompilerParams(dimension_semantics=("parallel",)),
    )(gathered, mask, WmlpT, bmlp)


# ----------------------------- Parameter packing (one-time, host side) ----------
def pack_params(raw, *, n_layers):
    E = raw["embedding"].shape[1]
    H = raw["ggc_weight"].shape[-1]
    KV = raw["mlp_W"].shape[0]
    N = raw["nodeid2wordid"].shape[0]
    assert E == H, "GatedGraphConv here uses in_channels == out_channels"
    HP = _round_up(H, LANE)
    KVP = _round_up(KV, LANE)
    NP = _round_up(N, LANE)

    emb_p = jnp.zeros((raw["embedding"].shape[0], HP), jnp.float32).at[:, :E].set(raw["embedding"])
    # per-layer propagation weights: bf16 MXU feed (f32 accumulation in-kernel)
    W_p = (jnp.zeros((n_layers, HP, HP), jnp.float32)
           .at[:, :H, :H].set(raw["ggc_weight"]).astype(jnp.bfloat16))

    WihT = jnp.zeros((HP, 3 * HP), jnp.float32)
    WhhT = jnp.zeros((HP, 3 * HP), jnp.float32)
    bih = jnp.zeros((1, 3 * HP), jnp.float32)
    bhh = jnp.zeros((1, 3 * HP), jnp.float32)
    for g in range(3):   # PyTorch GRUCell gate order: r, z, n
        WihT = WihT.at[:H, g * HP:g * HP + H].set(raw["gru_W_ih"][g * H:(g + 1) * H, :].T)
        WhhT = WhhT.at[:H, g * HP:g * HP + H].set(raw["gru_W_hh"][g * H:(g + 1) * H, :].T)
        bih = bih.at[0, g * HP:g * HP + H].set(raw["gru_b_ih"][g * H:(g + 1) * H])
        bhh = bhh.at[0, g * HP:g * HP + H].set(raw["gru_b_hh"][g * H:(g + 1) * H])
    WihT = WihT.astype(jnp.bfloat16)
    WhhT = WhhT.astype(jnp.bfloat16)

    mlp_WT = jnp.zeros((HP, KVP), jnp.float32).at[:H, :KV].set(raw["mlp_W"].T)
    mlp_b = jnp.zeros((1, KVP), jnp.float32).at[0, :KV].set(raw["mlp_b"])

    # node->word table padded to NP rows (pad rows point at word 0 -> masked out)
    n2w_p = jnp.zeros((NP, raw["nodeid2wordid"].shape[1]), jnp.int32).at[:N].set(
        raw["nodeid2wordid"])

    return dict(embedding=emb_p, nodeid2wordid_p=n2w_p,
                keywordid2nodeid=raw["keywordid2nodeid"],
                ggc_weight=W_p, gru_WihT=WihT, gru_WhhT=WhhT,
                gru_bih=bih, gru_bhh=bhh, mlp_WT=mlp_WT, mlp_b=mlp_b,
                N=N, NP=NP, H=H, HP=HP, KV=KV, KVP=KVP)


# ----------------------------- Full forward --------------------------------------
def kw_gnn_forward(packed, edge_A, x_keywords, *, n_layers, row_block=256):
    N, NP = packed["N"], packed["NP"]

    # forward_concept (mean): gather in JAX, masked-mean reduction in Pallas.
    # TODO(synk): in-kernel DMA gather of embedding rows (scalar-prefetched n2w table).
    n2w_p = packed["nodeid2wordid_p"]                                # [NP, L]
    mask = (n2w_p != 0).astype(jnp.float32)
    gathered_words = packed["embedding"][n2w_p]                      # [NP, L, HP]
    h0 = concept_mean_pallas(gathered_words, mask)                   # [NP, HP] (pad rows = 0)

    # dense adjacency padded + cast to bf16 (exact for small integer edge counts)
    A_p = jnp.zeros((NP, NP), jnp.float32).at[:N, :N].set(edge_A).astype(jnp.bfloat16)

    # forward_gnn: GatedGraphConv, grid over (layers, destination-row blocks)
    h = gated_graph_conv_pallas(h0, A_p, packed["ggc_weight"],
                                packed["gru_WihT"], packed["gru_WhhT"],
                                packed["gru_bih"], packed["gru_bhh"],
                                n_layers=n_layers, row_block=row_block)   # [NP, HP]

    # forward_aggregation (mean) on keyword->node ids, fused with the final mlp
    x_nodes = packed["keywordid2nodeid"][x_keywords]                 # [B, K]
    x_mask = (x_nodes != 0).astype(jnp.float32)
    gathered_nodes = h[x_nodes]                                      # [B, K, HP]
    out_p = agg_mlp_pallas(gathered_nodes, x_mask,
                           packed["mlp_WT"], packed["mlp_b"])        # [B, KVP]
    return out_p[:, :packed["KV"]]


# ----------------------------- Pure-JAX reference (for verification) ------------
def kw_gnn_reference(raw, edge_A, x_keywords, *, n_layers, bf16_prop):
    emb = raw["embedding"]
    n2w = raw["nodeid2wordid"]
    H = raw["ggc_weight"].shape[-1]
    mask = (n2w != 0).astype(jnp.float32)
    node_emb = (emb[n2w] * mask[:, :, None]).sum(1) / jnp.maximum(
        mask.sum(1, keepdims=True), 1.0)
    h = node_emb
    WihT = raw["gru_W_ih"].T
    WhhT = raw["gru_W_hh"].T
    bih, bhh = raw["gru_b_ih"], raw["gru_b_hh"]
    if bf16_prop:   # mirror the kernel's bf16-feed / f32-accumulate numerics
        A16 = edge_A.astype(jnp.bfloat16)
        W16 = raw["ggc_weight"].astype(jnp.bfloat16)
        WihT16 = WihT.astype(jnp.bfloat16)
        WhhT16 = WhhT.astype(jnp.bfloat16)
    for i in range(n_layers):
        if bf16_prop:
            h16 = h.astype(jnp.bfloat16)
            tmp = jnp.dot(A16, h16, preferred_element_type=jnp.float32)
            agg = jnp.dot(tmp.astype(jnp.bfloat16), W16[i], preferred_element_type=jnp.float32)
            gi = jnp.dot(agg.astype(jnp.bfloat16), WihT16,
                         preferred_element_type=jnp.float32) + bih
            gh = jnp.dot(h16, WhhT16, preferred_element_type=jnp.float32) + bhh
        else:
            m = h @ raw["ggc_weight"][i]
            agg = edge_A @ m
            gi = agg @ WihT + bih
            gh = h @ WhhT + bhh
        r = jax.nn.sigmoid(gi[:, :H] + gh[:, :H])
        z = jax.nn.sigmoid(gi[:, H:2 * H] + gh[:, H:2 * H])
        n = jnp.tanh(gi[:, 2 * H:] + r * gh[:, 2 * H:])
        h = (1.0 - z) * n + z * h
    x_nodes = raw["keywordid2nodeid"][x_keywords]
    xm = (x_nodes != 0).astype(jnp.float32)
    pooled = (h[x_nodes] * xm[:, :, None]).sum(1) / jnp.maximum(
        xm.sum(1, keepdims=True), 1.0)
    return pooled @ raw["mlp_W"].T + raw["mlp_b"]


# ----------------------------- Main -----------------------------------------------
if __name__ == "__main__":
    # Small shapes consistent with the module
    V = 128          # vocab_size
    KV = 64          # keyword_vocab_size
    E = 32           # embed_size
    H = 32           # hidden_size (GatedGraphConv out_channels; == output_size)
    N = 64           # num_nodes (nodeid2wordid.shape[0])
    L = 4            # words per concept node
    B = 2            # batch
    K = 8            # keywords per example
    N_LAYERS = 2
    N_EDGES = 256

    key = jax.random.PRNGKey(0)
    ks = jax.random.split(key, 12)

    # deterministic "parameters" (PyTorch layouts)
    raw_params = {
        "embedding": jax.random.normal(ks[0], (V, E), jnp.float32) * 0.1,
        "ggc_weight": jax.random.normal(ks[1], (N_LAYERS, H, H), jnp.float32) * 0.1,
        "gru_W_ih": jax.random.normal(ks[2], (3 * H, H), jnp.float32) * 0.1,
        "gru_W_hh": jax.random.normal(ks[3], (3 * H, H), jnp.float32) * 0.1,
        "gru_b_ih": jax.random.normal(ks[4], (3 * H,), jnp.float32) * 0.1,
        "gru_b_hh": jax.random.normal(ks[5], (3 * H,), jnp.float32) * 0.1,
        "mlp_W": jax.random.normal(ks[6], (KV, H), jnp.float32) * 0.1,   # nn.Linear [out, in]
        "mlp_b": jax.random.normal(ks[7], (KV,), jnp.float32) * 0.1,
    }

    # graph / lookup tables
    nodeid2wordid = jax.random.randint(ks[8], (N, L), 0, V, jnp.int32)
    nodeid2wordid = nodeid2wordid.at[0].set(0)                       # pad node -> pad words
    keywordid2nodeid = jax.random.randint(ks[9], (KV,), 1, N, jnp.int32)
    keywordid2nodeid = keywordid2nodeid.at[0].set(0)                 # pad keyword -> pad node
    raw_params["nodeid2wordid"] = nodeid2wordid
    raw_params["keywordid2nodeid"] = keywordid2nodeid

    src = jax.random.randint(ks[10], (N_EDGES,), 0, N, jnp.int32)
    dst = jax.random.randint(ks[11], (N_EDGES,), 0, N, jnp.int32)
    # dense adjacency: out[dst] += m[src]  <=>  agg = A @ m with A[dst, src] += 1
    edge_A = jnp.zeros((N, N), jnp.float32).at[dst, src].add(1.0)

    # keyword-id input x [B, K] (0 = pad)
    x_keywords = jax.random.randint(jax.random.PRNGKey(42), (B, K), 0, KV, jnp.int32)

    packed = pack_params(raw_params, n_layers=N_LAYERS)

    out = kw_gnn_forward(packed, edge_A, x_keywords, n_layers=N_LAYERS, row_block=256)
    out = jax.block_until_ready(out)

    ref_bf16 = kw_gnn_reference(raw_params, edge_A, x_keywords,
                                n_layers=N_LAYERS, bf16_prop=True)
    ref_f32 = kw_gnn_reference(raw_params, edge_A, x_keywords,
                               n_layers=N_LAYERS, bf16_prop=False)

    assert out.shape == (B, KV), out.shape
    assert jnp.all(jnp.isfinite(out))
    # tight check vs a reference sharing the kernel's bf16-feed numerics
    assert jnp.allclose(out, ref_bf16, rtol=2e-3, atol=2e-3), \
        float(jnp.max(jnp.abs(out - ref_bf16)))
    # looser check vs full-f32 module semantics (bf16 feed rounding only)
    assert jnp.allclose(out, ref_f32, rtol=1e-2, atol=1e-2), \
        float(jnp.max(jnp.abs(out - ref_f32)))

    print("KERNEL_OK")
</pallas_src>

<mosaic_0001>
module attributes {stable_mosaic.version = 11 : i64} {
  func.func @concept_mean_kernel(%arg0: i32, %arg1: memref<128x4x128xf32, #tpu.memory_space<vmem>>, %arg2: memref<128x4xf32, #tpu.memory_space<vmem>>, %arg3: memref<128x128xf32, #tpu.memory_space<vmem>>) attributes {dimension_semantics = [#tpu.dimension_semantics<parallel>], iteration_bounds = array<i64: 1>, scalar_prefetch = 0 : i64, scratch_operands = 0 : i64, tpu.core_type = #tpu.core_type<tc>, window_params = [{transform_indices = @transform_0, window_bounds = array<i64: 128, 4, 128>}, {transform_indices = @transform_1, window_bounds = array<i64: 128, 4>}, {transform_indices = @transform_2, window_bounds = array<i64: 128, 128>}]} {
    %c0 = arith.constant 0 : index
    %c0_0 = arith.constant 0 : index
    %c0_1 = arith.constant 0 : index
    %0 = vector.load %arg1[%c0, %c0_0, %c0_1] : memref<128x4x128xf32, #tpu.memory_space<vmem>>, vector<128x4x128xf32>
    %c0_2 = arith.constant 0 : index
    %c0_3 = arith.constant 0 : index
    %1 = vector.load %arg2[%c0_2, %c0_3] : memref<128x4xf32, #tpu.memory_space<vmem>>, vector<128x4xf32>
    %2 = vector.shape_cast %1 : vector<128x4xf32> to vector<128x4x1xf32>
    %3 = vector.broadcast %2 : vector<128x4x1xf32> to vector<128x4x128xf32>
    %4 = arith.mulf %0, %3 : vector<128x4x128xf32>
    %cst = arith.constant dense<0.000000e+00> : vector<128x128xf32>
    %5 = vector.multi_reduction <add>, %4, %cst [1] : vector<128x4x128xf32> to vector<128x128xf32>
    %cst_4 = arith.constant dense<0.000000e+00> : vector<128xf32>
    %6 = vector.multi_reduction <add>, %1, %cst_4 [1] : vector<128x4xf32> to vector<128xf32>
    %7 = vector.shape_cast %6 : vector<128xf32> to vector<128x1xf32>
    %cst_5 = arith.constant 1.000000e+00 : f32
    %8 = vector.broadcast %cst_5 : f32 to vector<128x1xf32>
    %9 = arith.maximumf %7, %8 : vector<128x1xf32>
    %10 = tpu.reciprocal %9 {approx = true} : vector<128x1xf32> -> vector<128x1xf32>
    %11 = vector.broadcast %10 : vector<128x1xf32> to vector<128x128xf32>
    %12 = arith.mulf %5, %11 : vector<128x128xf32>
    %c0_6 = arith.constant 0 : index
    %c0_7 = arith.constant 0 : index
    %13 = vector.load %arg3[%c0_6, %c0_7] : memref<128x128xf32, #tpu.memory_space<vmem>>, vector<128x128xf32>
    tpu.vector_store %arg3[%c0_6, %c0_7], %12 {strides = array<i32>} : memref<128x128xf32, #tpu.memory_space<vmem>>, vector<128x128xf32>,
    return
  }
  func.func @transform_0(%arg0: i32) -> (i32, i32, i32) {
    %c0_i32 = arith.constant 0 : i32
    %c0_i32_0 = arith.constant 0 : i32
    %c0_i32_1 = arith.constant 0 : i32
    return %arg0, %c0_i32, %c0_i32_0 : i32, i32, i32
  }
  func.func @transform_1(%arg0: i32) -> (i32, i32) {
    %c0_i32 = arith.constant 0 : i32
    %c0_i32_0 = arith.constant 0 : i32
    return %arg0, %c0_i32 : i32, i32
  }
  func.func @transform_2(%arg0: i32) -> (i32, i32) {
    %c0_i32 = arith.constant 0 : i32
    %c0_i32_0 = arith.constant 0 : i32
    return %arg0, %c0_i32 : i32, i32
  }
}

</mosaic_0001>

<bundles_post_ra>
// kernel: tpu_custom_call.1
= control target key start
LH: loop header
LB: loop body
LE: loop exit
PB: predicated region body
PF: predicated region fallthrough
CT: control target
= control target key end

     0   :  { %7 = vsyncpa [#allocation3], 0  ;;  %s5076_s0 = inlined_call_operand.hbm [shape: f32[128,4,128], index: 0, kind: input, shape index: {}]   ;;  %s5077_s1 = inlined_call_operand.vmem [shape: f32[128,4], index: 1, kind: input, shape index: {}]   ;;  %s5078_s2 = inlined_call_operand.hbm [shape: f32[128,128], index: 2, kind: output, shape index: {}]  }
   0x1   :  { %8 = vsyncpa [#allocation4], 0  ;;  %s3051_s9 = smov [#allocation2]   ;;  %s3003_s13 = scalar_lea.hbm %s5076_s0, 8192 }
   0x2   :  { %s14_s10 = sshll.u32 %s3051_s9, 4  ;;  %p3004_p0 = scmp.ne.s32.totalorder %s5076_s0, %s3003_s13  ;;  %s15_s10 = int_to_ptr.vmem [resolvable:$true] %s14_s10 }
   0x3   :  { %p3007_p1 = scmp.lt.u32.totalorder %s3003_s13, %s5076_s0 }
   0x5   :  { %p3009_p2 = pnand %p3007_p1, %p3004_p0 }
   0x7   :  { %3012 = shalt.err (!%p3009_p2)
}
   0x8   :  { %s3013_s18 = scalar_lea.vmem %s15_s10, 8192  ;;  %p3018_p4 = scmp.lt.s32.totalorder %s15_s10, %s15_s10 }
   0x9   :  { %p3014_p3 = scmp.ne.s32.totalorder %s15_s10, %s3013_s18  ;;  %p3019_p5 = scmp.lt.s32.totalorder %s3013_s18, %s3013_s18 }
   0xb   :  { %p3020_p6 = por %p3019_p5, %p3018_p4 }
   0xd   :  { %p3021_p7 = pnand %p3020_p6, %p3014_p3 }
   0xf   :  { %3024 = shalt.err (!%p3021_p7)
}
  0x10   :  { %s3052_s19 = smov 64   ;;  %s3053_s20 = smov 4  }
  0x11   :  { %20 = dma.hbm_to_vmem [thread:$0]  %s5076_s0, 8192, %s15_s10, [#allocation3], %s3052_s19, %s3052_s19, %s3053_s20  }
  0x12   :  { %3047 = dma.done.wait [#allocation3], 8192  }
  0x13   :  { %3048 = vsyncadd [#allocation3], 4294959104  ;;  %v170_v0 = vlaneseq  ;;  %v3095_v6 = vld [vmem:[%s5077_s1] sm:$0xff]  ;;  %v3124_v19 = vld [vmem:[%s5077_s1 + $0x8] sm:$0xff]  ;;  %vm1194_vm0 = vcmask 1043456   ;;  %vm2091_vm1 = vcmask 31744  }
  0x14   :  { %v3145_v28 = vld [vmem:[%s5077_s1 + $0x10] sm:$0xff]  ;;  %v3166_v37 = vld [vmem:[%s5077_s1 + $0x18] sm:$0xff]  ;;  %v3187_v46 = vld [vmem:[%s5077_s1 + $0x20] sm:$0xff]  ;;  %vm2685_vm2 = vcmask 1041409   ;;  %vm2688_vm3 = vcmask 1042434   ;;  %vm2691_vm4 = vcmask 1043459  }
  0x15   :  { %v171_v1 = vshrl.u32 %v170_v0, 7  ;;  %v3208_v55 = vld [vmem:[%s5077_s1 + $0x28] sm:$0xff]  ;;  %v3229_v0 = vld [vmem:[%s5077_s1 + $0x30] sm:$0xff]  ;;  %vm2694_vm5 = vcmask 1044484   ;;  %vm2697_vm6 = vcmask 1045509   ;;  %vm2700_vm7 = vcmask 1046534  }
  0x16   :  { %vm2703_vm8 = vcmask 1047559  }
  0x17   :  { %v3084_v2 = vsub.s32 2, %v171_v1  ;;  %v3086_v3 = vsub.s32 0, %v171_v1  ;;  %v3088_v4 = vsub.s32 3, %v171_v1  ;;  %v3090_v5 = vsub.s32 1, %v171_v1 }
  0x18   :  { %v3105_v11 = vsub.s32 5, %v171_v1  ;;  %v3107_v12 = vsub.s32 4, %v171_v1  ;;  %v3113_v15 = vsub.s32 7, %v171_v1  ;;  %v3115_v16 = vsub.s32 6, %v171_v1 }
  0x19   :  { %5100 = vst [vmem:[#allocation8_spill] sm:$0xff] %v3084_v2  ;;  %5101 = vst [vmem:[#allocation9_spill] sm:$0xff] %v3086_v3  ;;  %v187_v7 = vrot.slane %v3095_v6, %v3084_v2  ;;  %v173_v8 = vrot.slane %v3095_v6, %v3086_v3  ;;  %v194_v9 = vrot.slane %v3095_v6, %v3088_v4 }
  0x1a   :  { %5102 = vst [vmem:[#allocation10_spill] sm:$0xff] %v3088_v4  ;;  %5103 = vst [vmem:[#allocation11_spill] sm:$0xff] %v3090_v5  ;;  %v180_v10 = vrot.slane %v3095_v6, %v3090_v5  ;;  %v208_v13 = vrot.slane %v3095_v6, %v3105_v11  ;;  %v201_v14 = vrot.slane %v3095_v6, %v3107_v12 }
  0x1b   :  { %189 = vbcast.lane.b32.xlu1 %v187_v7, 256  ;;  %175 = vbcast.lane.b32.xlu0 %v173_v8, 256  ;;  %5104 = vst [vmem:[#allocation12_spill] sm:$0xff] %v3105_v11  ;;  %5105 = vst [vmem:[#allocation13_spill] sm:$0xff] %v3107_v12  ;;  %v222_v17 = vrot.slane %v3095_v6, %v3113_v15  ;;  %v215_v18 = vrot.slane %v3095_v6, %v3115_v16 }
  0x1c   :  { %5106 = vst [vmem:[#allocation14_spill] sm:$0xff] %v3113_v15  ;;  %5107 = vst [vmem:[#allocation15_spill] sm:$0xff] %v3115_v16  ;;  %v236_v20 = vrot.slane %v3124_v19, %v3090_v5  ;;  %v229_v21 = vrot.slane %v3124_v19, %v3086_v3  ;;  %v250_v22 = vrot.slane %v3124_v19, %v3088_v4 }
  0x1d   :  { %v243_v23 = vrot.slane %v3124_v19, %v3084_v2  ;;  %v264_v24 = vrot.slane %v3124_v19, %v3105_v11  ;;  %v257_v25 = vrot.slane %v3124_v19, %v3107_v12  ;;  %v278_v26 = vrot.slane %v3124_v19, %v3113_v15 }
  0x1e   :  { %v271_v27 = vrot.slane %v3124_v19, %v3115_v16  ;;  %v292_v29 = vrot.slane %v3145_v28, %v3090_v5  ;;  %v285_v30 = vrot.slane %v3145_v28, %v3086_v3  ;;  %v306_v31 = vrot.slane %v3145_v28, %v3088_v4 }
  0x1f   :  { %196 = vbcast.lane.b32.xlu1 %v194_v9, 256  ;;  %182 = vbcast.lane.b32.xlu0 %v180_v10, 256  ;;  %v299_v32 = vrot.slane %v3145_v28, %v3084_v2  ;;  %v320_v33 = vrot.slane %v3145_v28, %v3105_v11  ;;  %v313_v34 = vrot.slane %v3145_v28, %v3107_v12 }
  0x20   :  { %v334_v35 = vrot.slane %v3145_v28, %v3113_v15  ;;  %v327_v36 = vrot.slane %v3145_v28, %v3115_v16  ;;  %v348_v38 = vrot.slane %v3166_v37, %v3090_v5  ;;  %v341_v39 = vrot.slane %v3166_v37, %v3086_v3 }
  0x21   :  { %v362_v40 = vrot.slane %v3166_v37, %v3088_v4  ;;  %v355_v41 = vrot.slane %v3166_v37, %v3084_v2  ;;  %v376_v42 = vrot.slane %v3166_v37, %v3105_v11  ;;  %v369_v43 = vrot.slane %v3166_v37, %v3107_v12 }
  0x22   :  { %v390_v44 = vrot.slane %v3166_v37, %v3113_v15  ;;  %v383_v45 = vrot.slane %v3166_v37, %v3115_v16  ;;  %v404_v47 = vrot.slane %v3187_v46, %v3090_v5  ;;  %v397_v48 = vrot.slane %v3187_v46, %v3086_v3 }
  0x23   :  { %210 = vbcast.lane.b32.xlu1 %v208_v13, 256  ;;  %203 = vbcast.lane.b32.xlu0 %v201_v14, 256  ;;  %v418_v49 = vrot.slane %v3187_v46, %v3088_v4  ;;  %v411_v50 = vrot.slane %v3187_v46, %v3084_v2  ;;  %v432_v51 = vrot.slane %v3187_v46, %v3105_v11 }
  0x24   :  { %v425_v52 = vrot.slane %v3187_v46, %v3107_v12  ;;  %v446_v53 = vrot.slane %v3187_v46, %v3113_v15  ;;  %v439_v54 = vrot.slane %v3187_v46, %v3115_v16  ;;  %v460_v56 = vrot.slane %v3208_v55, %v3090_v5 }
  0x25   :  { %v453_v57 = vrot.slane %v3208_v55, %v3086_v3  ;;  %v474_v58 = vrot.slane %v3208_v55, %v3088_v4  ;;  %v467_v59 = vrot.slane %v3208_v55, %v3084_v2  ;;  %v488_v60 = vrot.slane %v3208_v55, %v3105_v11 }
  0x26   :  { %v481_v61 = vrot.slane %v3208_v55, %v3107_v12  ;;  %v502_v62 = vrot.slane %v3208_v55, %v3113_v15  ;;  %v495_v63 = vrot.slane %v3208_v55, %v3115_v16  ;;  %v516_v1 = vrot.slane %v3229_v0, %v3090_v5 }
  0x27   :  { %224 = vbcast.lane.b32.xlu1 %v222_v17, 256  ;;  %217 = vbcast.lane.b32.xlu0 %v215_v18, 256  ;;  %v509_v7 = vrot.slane %v3229_v0, %v3086_v3  ;;  %v530_v8 = vrot.slane %v3229_v0, %v3088_v4  ;;  %v523_v9 = vrot.slane %v3229_v0, %v3084_v2  ;;  %v3250_v18 = vld [vmem:[%s5077_s1 + $0x38] sm:$0xff] }
  0x28   :  { %v544_v10 = vrot.slane %v3229_v0, %v3105_v11  ;;  %v537_v13 = vrot.slane %v3229_v0, %v3107_v12  ;;  %v558_v14 = vrot.slane %v3229_v0, %v3113_v15  ;;  %v551_v17 = vrot.slane %v3229_v0, %v3115_v16 }
  0x2b   :  { %238 = vbcast.lane.b32.xlu1 %v236_v20, 256  ;;  %231 = vbcast.lane.b32.xlu0 %v229_v21, 256  ;;  %v572_v20 = vrot.slane %v3250_v18, %v3090_v5  ;;  %v565_v21 = vrot.slane %v3250_v18, %v3086_v3 }
  0x2f   :  { %252 = vbcast.lane.b32.xlu1 %v250_v22, 256  ;;  %245 = vbcast.lane.b32.xlu0 %v243_v23, 256  ;;  %v586_v22 = vrot.slane %v3250_v18, %v3088_v4  ;;  %v579_v23 = vrot.slane %v3250_v18, %v3084_v2 }
  0x33   :  { %266 = vbcast.lane.b32.xlu1 %v264_v24, 256  ;;  %259 = vbcast.lane.b32.xlu0 %v257_v25, 256 }
  0x37   :  { %280 = vbcast.lane.b32.xlu1 %v278_v26, 256  ;;  %273 = vbcast.lane.b32.xlu0 %v271_v27, 256  ;;  %v600_v26 = vrot.slane %v3250_v18, %v3105_v11  ;;  %v593_v27 = vrot.slane %v3250_v18, %v3107_v12 }
  0x3b   :  { %294 = vbcast.lane.b32.xlu1 %v292_v29, 256  ;;  %287 = vbcast.lane.b32.xlu0 %v285_v30, 256 }
  0x3f   :  { %308 = vbcast.lane.b32.xlu1 %v306_v31, 256  ;;  %301 = vbcast.lane.b32.xlu0 %v299_v32, 256  ;;  %v614_v31 = vrot.slane %v3250_v18, %v3113_v15  ;;  %v607_v32 = vrot.slane %v3250_v18, %v3115_v16 }
  0x43   :  { %322 = vbcast.lane.b32.xlu1 %v320_v33, 256  ;;  %315 = vbcast.lane.b32.xlu0 %v313_v34, 256  ;;  %v3279_v33 = vld [vmem:[%s5077_s1 + $0x40] sm:$0xff] }
  0x47   :  { %336 = vbcast.lane.b32.xlu1 %v334_v35, 256  ;;  %329 = vbcast.lane.b32.xlu0 %v327_v36, 256  ;;  %v628_v36 = vrot.slane %v3279_v33, %v3090_v5 }
  0x4b   :  { %350 = vbcast.lane.b32.xlu1 %v348_v38, 256  ;;  %343 = vbcast.lane.b32.xlu0 %v341_v39, 256  ;;  %v621_v38 = vrot.slane %v3279_v33, %v3086_v3 }
  0x4f   :  { %364 = vbcast.lane.b32.xlu1 %v362_v40, 256  ;;  %357 = vbcast.lane.b32.xlu0 %v355_v41, 256  ;;  %v642_v41 = vrot.slane %v3279_v33, %v3088_v4 }
  0x53   :  { %378 = vbcast.lane.b32.xlu1 %v376_v42, 256  ;;  %371 = vbcast.lane.b32.xlu0 %v369_v43, 256  ;;  %v635_v42 = vrot.slane %v3279_v33, %v3084_v2 }
  0x57   :  { %392 = vbcast.lane.b32.xlu1 %v390_v44, 256  ;;  %385 = vbcast.lane.b32.xlu0 %v383_v45, 256  ;;  %v656_v45 = vrot.slane %v3279_v33, %v3105_v11 }
  0x5b   :  { %406 = vbcast.lane.b32.xlu1 %v404_v47, 256  ;;  %399 = vbcast.lane.b32.xlu0 %v397_v48, 256  ;;  %v649_v47 = vrot.slane %v3279_v33, %v3107_v12 }
  0x5f   :  { %420 = vbcast.lane.b32.xlu1 %v418_v49, 256  ;;  %413 = vbcast.lane.b32.xlu0 %v411_v50, 256  ;;  %v670_v50 = vrot.slane %v3279_v33, %v3113_v15 }
  0x63   :  { %434 = vbcast.lane.b32.xlu1 %v432_v51, 256  ;;  %427 = vbcast.lane.b32.xlu0 %v425_v52, 256  ;;  %v663_v51 = vrot.slane %v3279_v33, %v3115_v16  ;;  %v3316_v52 = vld [vmem:[%s5077_s1 + $0x48] sm:$0xff] }
  0x67   :  { %448 = vbcast.lane.b32.xlu1 %v446_v53, 256  ;;  %441 = vbcast.lane.b32.xlu0 %v439_v54, 256 }
  0x6b   :  { %462 = vbcast.lane.b32.xlu1 %v460_v56, 256  ;;  %455 = vbcast.lane.b32.xlu0 %v453_v57, 256  ;;  %v684_v56 = vrot.slane %v3316_v52, %v3090_v5  ;;  %v677_v57 = vrot.slane %v3316_v52, %v3086_v3 }
  0x6f   :  { %476 = vbcast.lane.b32.xlu1 %v474_v58, 256  ;;  %469 = vbcast.lane.b32.xlu0 %v467_v59, 256 }
  0x73   :  { %490 = vbcast.lane.b32.xlu1 %v488_v60, 256  ;;  %483 = vbcast.lane.b32.xlu0 %v481_v61, 256  ;;  %v698_v60 = vrot.slane %v3316_v52, %v3088_v4  ;;  %v691_v61 = vrot.slane %v3316_v52, %v3084_v2 }
  0x77   :  { %504 = vbcast.lane.b32.xlu1 %v502_v62, 256  ;;  %497 = vbcast.lane.b32.xlu0 %v495_v63, 256 }
  0x7b   :  { %518 = vbcast.lane.b32.xlu1 %v516_v1, 256  ;;  %511 = vbcast.lane.b32.xlu0 %v509_v7, 256  ;;  %v712_v1 = vrot.slane %v3316_v52, %v3105_v11  ;;  %v705_v7 = vrot.slane %v3316_v52, %v3107_v12 }
  0x7f   :  { %532 = vbcast.lane.b32.xlu1 %v530_v8, 256  ;;  %525 = vbcast.lane.b32.xlu0 %v523_v9, 256 }
  0x83   :  { %546 = vbcast.lane.b32.xlu1 %v544_v10, 256  ;;  %539 = vbcast.lane.b32.xlu0 %v537_v13, 256  ;;  %v726_v10 = vrot.slane %v3316_v52, %v3113_v15  ;;  %v719_v13 = vrot.slane %v3316_v52, %v3115_v16 }
  0x87   :  { %560 = vbcast.lane.b32.xlu1 %v558_v14, 256  ;;  %553 = vbcast.lane.b32.xlu0 %v551_v17, 256  ;;  %v3353_v14 = vld [vmem:[%s5077_s1 + $0x50] sm:$0xff] }
  0x88   :  { %5108 = vst [vmem:[#allocation16_spill] sm:$0xff] %v3353_v14 }
  0x8b   :  { %574 = vbcast.lane.b32.xlu1 %v572_v20, 256  ;;  %567 = vbcast.lane.b32.xlu0 %v565_v21, 256  ;;  %v740_v21 = vrot.slane %v3353_v14, %v3090_v5 }
  0x8d   :  { %v3260_v24 = vpop.permute.xlu1 %189  ;;  %v3262_v25 = vpop.permute.xlu0 %175 }
  0x8f   :  { %588 = vbcast.lane.b32.xlu1 %v586_v22, 256  ;;  %581 = vbcast.lane.b32.xlu0 %v579_v23, 256  ;;  %v733_v22 = vrot.slane %v3353_v14, %v3086_v3  ;;  %v28_v23 = vld [vmem:[#allocation2 + $0x8] sm:$0xf] }
  0x91   :  { %v3268_v29 = vpop.permute.xlu1 %196  ;;  %v3270_v30 = vpop.permute.xlu0 %182 }
  0x93   :  { %602 = vbcast.lane.b32.xlu1 %v600_v26, 256  ;;  %595 = vbcast.lane.b32.xlu0 %v593_v27, 256 }
  0x95   :  { %v3281_v34 = vpop.permute.xlu1 %210  ;;  %v3283_v35 = vpop.permute.xlu0 %203 }
  0x97   :  { %616 = vbcast.lane.b32.xlu1 %v614_v31, 256  ;;  %609 = vbcast.lane.b32.xlu0 %v607_v32, 256  ;;  %v26_v31 = vld [vmem:[#allocation2] sm:$0xf]  ;;  %v754_v32 = vrot.slane %v3353_v14, %v3088_v4 }
  0x99   :  { %v3289_v39 = vpop.permute.xlu1 %224  ;;  %v3291_v40 = vpop.permute.xlu0 %217 }
  0x9b   :  { %630 = vbcast.lane.b32.xlu1 %v628_v36, 256  ;;  %623 = vbcast.lane.b32.xlu0 %v621_v38, 256  ;;  %v1068_v36 = vmul.f32 %v3260_v24, %v28_v23  ;;  %v747_v38 = vrot.slane %v3353_v14, %v3084_v2  ;;  %v3382_v24 = vld [vmem:[%s5077_s1 + $0x58] sm:$0xff]  ;;  %v775_v23 = vrot.slane %v3353_v14, %v3115_v16 }
  0x9d   :  { %v3297_v43 = vpop.permute.xlu1 %238  ;;  %v3299_v44 = vpop.permute.xlu0 %231 }
  0x9f   :  { %644 = vbcast.lane.b32.xlu1 %v642_v41, 256  ;;  %637 = vbcast.lane.b32.xlu0 %v635_v42, 256  ;;  %v1066_v41 = vmul.f32 %v3262_v25, %v26_v31  ;;  %v761_v25 = vrot.slane %v3353_v14, %v3107_v12  ;;  %v796_v31 = vrot.slane %v3382_v24, %v3090_v5 }
  0xa1   :  { %v3305_v48 = vpop.permute.xlu1 %252  ;;  %v3307_v49 = vpop.permute.xlu0 %245 }
  0xa3   :  { %658 = vbcast.lane.b32.xlu1 %v656_v45, 256  ;;  %651 = vbcast.lane.b32.xlu0 %v649_v47, 256  ;;  %v29_v47 = vld [vmem:[#allocation2 + $0xc] sm:$0xf] }
  0xa5   :  { %v3318_v53 = vpop.permute.xlu1 %266  ;;  %v3320_v54 = vpop.permute.xlu0 %259 }
  0xa7   :  { %672 = vbcast.lane.b32.xlu1 %v670_v50, 256  ;;  %665 = vbcast.lane.b32.xlu0 %v663_v51, 256  ;;  %v768_v50 = vrot.slane %v3353_v14, %v3105_v11  ;;  %v1209_v51 = vsel %vm1194_vm0, %v1068_v36, 0.0 }
  0xa8   :  { %v1210_v36 = vrot.slane %v1209_v51, 4 }
  0xa9   :  { %v3326_v58 = vpop.permute.xlu1 %280  ;;  %v3328_v59 = vpop.permute.xlu0 %273 }
  0xab   :  { %686 = vbcast.lane.b32.xlu1 %v684_v56, 256  ;;  %679 = vbcast.lane.b32.xlu0 %v677_v57, 256  ;;  %v27_v56 = vld [vmem:[#allocation2 + $0x4] sm:$0xf]  ;;  %v31_v57 = vld [vmem:[#allocation2 + $0x14] sm:$0xf] }
  0xad   :  { %v3334_v62 = vpop.permute.xlu1 %294  ;;  %v3336_v63 = vpop.permute.xlu0 %287 }
  0xaf   :  { %700 = vbcast.lane.b32.xlu1 %v698_v60, 256  ;;  %693 = vbcast.lane.b32.xlu0 %v691_v61, 256  ;;  %v1195_v60 = vsel %vm1194_vm0, %v1066_v41, 0.0  ;;  %v1071_v41 = vmul.f32 %v3281_v34, %v31_v57 }
  0xb1   :  { %v3342_v8 = vpop.permute.xlu1 %308  ;;  %v3344_v9 = vpop.permute.xlu0 %301 }
  0xb3   :  { %714 = vbcast.lane.b32.xlu1 %v712_v1, 256  ;;  %707 = vbcast.lane.b32.xlu0 %v705_v7, 256  ;;  %v782_v7 = vrot.slane %v3353_v14, %v3113_v15  ;;  %v1196_v14 = vrot.slane %v1195_v60, 4 }
  0xb5   :  { %v3355_v17 = vpop.permute.xlu1 %322  ;;  %v3357_v20 = vpop.permute.xlu0 %315 }
  0xb7   :  { %728 = vbcast.lane.b32.xlu1 %v726_v10, 256  ;;  %721 = vbcast.lane.b32.xlu0 %v719_v13, 256  ;;  %v1069_v10 = vmul.f32 %v3268_v29, %v29_v47  ;;  %v30_v13 = vld [vmem:[#allocation2 + $0x10] sm:$0xf]  ;;  %v3408_v47 = vld [vmem:[%s5077_s1 + $0x60] sm:$0xff] }
  0xb8   :  { %v1070_v34 = vmul.f32 %v3283_v35, %v30_v13 }
  0xb9   :  { %v3363_v26 = vpop.permute.xlu1 %336  ;;  %v3365_v27 = vpop.permute.xlu0 %329 }
  0xbb   :  { %742 = vbcast.lane.b32.xlu1 %v740_v21, 256  ;;  %735 = vbcast.lane.b32.xlu0 %v733_v22, 256  ;;  %v33_v21 = vld [vmem:[#allocation2 + $0x1c] sm:$0xf]  ;;  %v32_v22 = vld [vmem:[#allocation2 + $0x18] sm:$0xf] }
  0xbd   :  { %v3373_v42 = vpop.permute.xlu1 %350  ;;  %v3375_v45 = vpop.permute.xlu0 %343 }
  0xbe   :  { %5109 = vst [vmem:[#allocation17_spill] sm:$0xff] %v3375_v45  ;;  %v35_v45 = vld [vmem:[#allocation2 + $0x24] sm:$0xf] }
  0xbf   :  { %756 = vbcast.lane.b32.xlu1 %v754_v32, 256  ;;  %749 = vbcast.lane.b32.xlu0 %v747_v38, 256  ;;  %v789_v32 = vrot.slane %v3382_v24, %v3086_v3  ;;  %v1067_v38 = vmul.f32 %v3270_v30, %v27_v56  ;;  %v1072_v56 = vmul.f32 %v3291_v40, %v32_v22  ;;  %v34_v22 = vld [vmem:[#allocation2 + $0x20] sm:$0xf] }
  0xc0   :  { %v1211_v40 = vadd.f32 %v1210_v36, %v1209_v51  ;;  %v1223_v51 = vsel %vm1194_vm0, %v1070_v34, 0.0 }
  0xc1   :  { %v3388_v61 = vpop.permute.xlu1 %364  ;;  %v3390_v1 = vpop.permute.xlu0 %357  ;;  %v1202_v13 = vsel %vm1194_vm0, %v1067_v38, 0.0  ;;  %v1237_v38 = vsel %vm1194_vm0, %v1072_v56, 0.0  ;;  %v3457_v56 = vsel %vm2091_vm1, %v3145_v28, 0.0  ;;  %v1224_v30 = vrot.slane %v1223_v51, 4 }
  0xc2   :  { %5110 = vst [vmem:[#allocation18_spill] sm:$0xff] %v3388_v61  ;;  %5111 = vst [vmem:[#allocation19_spill] sm:$0xff] %v3390_v1  ;;  %v1216_v1 = vsel %vm1194_vm0, %v1069_v10, 0.0  ;;  %v1074_v61 = vmul.f32 %v3299_v44, %v34_v22  ;;  %v1212_v35 = vrot.slane %v1211_v40, 2  ;;  %v3470_v28 = vsel %vm2091_vm1, %v3166_v37, 0.0 }
  0xc3   :  { %770 = vbcast.lane.b32.xlu1 %v768_v50, 256  ;;  %763 = vbcast.lane.b32.xlu0 %v761_v25, 256  ;;  %v1073_v50 = vmul.f32 %v3289_v39, %v33_v21  ;;  %v1230_v21 = vsel %vm1194_vm0, %v1071_v41, 0.0  ;;  %v1197_v25 = vadd.f32 %v1196_v14, %v1195_v60  ;;  %v1217_v39 = vrot.slane %v1216_v1, 4  ;;  %5115 = vst [vmem:[#allocation23_spill] sm:$0xff] %v3457_v56 }
  0xc4   :  { %v1203_v14 = vrot.slane %v1202_v13, 4  ;;  %v1231_v60 = vrot.slane %v1230_v21, 4  ;;  %5117 = vst [vmem:[#allocation25_spill] sm:$0xff] %v3470_v28  ;;  %v3484_v37 = vsel %vm2091_vm1, %v3208_v55, 0.0  ;;  %v3496_v55 = vsel %vm2091_vm1, %v3229_v0, 0.0 }
  0xc5   :  { %v3419_v57 = vpop.permute.xlu1 %378  ;;  %v3421_v29 = vpop.permute.xlu0 %371  ;;  %v1244_v36 = vsel %vm1194_vm0, %v1073_v50, 0.0  ;;  %v3453_v50 = vsel %vm2091_vm1, %v3095_v6, 0.0  ;;  %v1198_v44 = vrot.slane %v1197_v25, 2  ;;  %v3466_v6 = vsel %vm2091_vm1, %v3124_v19, 0.0  ;;  %5120 = vst [vmem:[#allocation27_spill] sm:$0xff] %v3484_v37  ;;  %5123 = vst [vmem:[#allocation29_spill] sm:$0xff] %v3496_v55 }
  0xc6   :  { %5114 = vst [vmem:[#allocation22_spill] sm:$0xff] %v3453_v50  ;;  %5116 = vst [vmem:[#allocation24_spill] sm:$0xff] %v3466_v6  ;;  %v1204_v56 = vadd.f32 %v1203_v14, %v1202_v13  ;;  %v1232_v50 = vadd.f32 %v1231_v60, %v1230_v21  ;;  %v3480_v19 = vsel %vm2091_vm1, %v3187_v46, 0.0  ;;  %v1225_v13 = vadd.f32 %v1224_v30, %v1223_v51 }
  0xc7   :  { %784 = vbcast.lane.b32.xlu1 %v782_v7, 256  ;;  %777 = vbcast.lane.b32.xlu0 %v775_v23, 256  ;;  %v37_v7 = vld [vmem:[#allocation2 + $0x2c] sm:$0xf]  ;;  %v1075_v23 = vmul.f32 %v3297_v43, %v35_v45  ;;  %v36_v45 = vld [vmem:[#allocation2 + $0x28] sm:$0xf]  ;;  %v5125_v37 = vrot.slane %v3382_v24, %v3105_v11 }
  0xc8   :  { %v1077_v43 = vmul.f32 %v3305_v48, %v37_v7  ;;  %v1213_v7 = vadd.f32 %v1212_v35, %v1211_v40  ;;  %5119 = vst [vmem:[#allocation26_spill] sm:$0xff] %v3480_v19  ;;  %v39_v35 = vld [vmem:[#allocation2 + $0x34] sm:$0xf]  ;;  %v38_v40 = vld [vmem:[#allocation2 + $0x30] sm:$0xf]  ;;  %v3500_v30 = vsel %vm2091_vm1, %v3250_v18, 0.0 }
  0xc9   :  { %v3443_v41 = vpop.permute.xlu1 %392  ;;  %v3445_v10 = vpop.permute.xlu0 %385  ;;  %v1258_v48 = vsel %vm1194_vm0, %v1075_v23, 0.0  ;;  %5124 = vst [vmem:[#allocation30_spill] sm:$0xff] %v3500_v30  ;;  %v1226_v55 = vrot.slane %v1225_v13, 2 }
  0xca   :  { %5112 = vst [vmem:[#allocation20_spill] sm:$0xff] %v3443_v41  ;;  %5113 = vst [vmem:[#allocation21_spill] sm:$0xff] %v3445_v10  ;;  %v1245_v10 = vrot.slane %v1244_v36, 4  ;;  %v1238_v41 = vrot.slane %v1237_v38, 4  ;;  %v1259_v60 = vrot.slane %v1258_v48, 4  ;;  %v1214_v0 = vrot.slane %v1213_v7, 1 }
  0xcb   :  { %798 = vbcast.lane.b32.xlu1 %v796_v31, 256  ;;  %791 = vbcast.lane.b32.xlu0 %v789_v32, 256  ;;  %v1218_v31 = vadd.f32 %v1217_v39, %v1216_v1  ;;  %v1251_v32 = vsel %vm1194_vm0, %v1074_v61, 0.0  ;;  %v1076_v1 = vmul.f32 %v3307_v49, %v36_v45  ;;  %v5118_v39 = vrot.slane %v3382_v24, %v3088_v4 }
  0xcc   :  { %v1246_v21 = vadd.f32 %v1245_v10, %v1244_v36  ;;  %v1239_v14 = vadd.f32 %v1238_v41, %v1237_v38  ;;  %v1272_v61 = vsel %vm1194_vm0, %v1077_v43, 0.0  ;;  %v5121_v49 = vrot.slane %v3382_v24, %v3084_v2 }
  0xcd   :  { %v3460_v22 = vpop.permute.xlu1 %406  ;;  %v3462_v34 = vpop.permute.xlu0 %399  ;;  %v1252_v23 = vrot.slane %v1251_v32, 4  ;;  %v1199_v10 = vadd.f32 %v1198_v44, %v1197_v25  ;;  %v1219_v51 = vrot.slane %v1218_v31, 2  ;;  %v1205_v36 = vrot.slane %v1204_v56, 2 }
  0xce   :  { %v1233_v38 = vrot.slane %v1232_v50, 2  ;;  %v1273_v41 = vrot.slane %v1272_v61, 4  ;;  %v1265_v43 = vsel %vm1194_vm0, %v1076_v1, 0.0  ;;  %v1247_v19 = vrot.slane %v1246_v21, 2 }
  0xcf   :  { %812 = vbcast.lane.b32.xlu1 %v5118_v39, 256  ;;  %805 = vbcast.lane.b32.xlu0 %v5121_v49, 256  ;;  %v1079_v39 = vmul.f32 %v3318_v53, %v39_v35  ;;  %v1078_v49 = vmul.f32 %v3320_v54, %v38_v40  ;;  %v1240_v18 = vrot.slane %v1239_v14, 2  ;;  %v5126_v25 = vrot.slane %v3382_v24, %v3107_v12 }
  0xd0   :  { %v1260_v44 = vadd.f32 %v1259_v60, %v1258_v48  ;;  %v1253_v30 = vadd.f32 %v1252_v23, %v1251_v32  ;;  %v3517_v53 = vsel %vm2091_vm1, %v3279_v33, 0.0  ;;  %v3521_v54 = vsel %vm2091_vm1, %v3316_v52, 0.0 }
  0xd1   :  { %v3490_v45 = vpop.permute.xlu1 %420  ;;  %v3492_v46 = vpop.permute.xlu0 %413  ;;  %5128 = vst [vmem:[#allocation32_spill] sm:$0xff] %v3517_v53  ;;  %5129 = vst [vmem:[#allocation33_spill] sm:$0xff] %v3521_v54  ;;  %v1220_v35 = vadd.f32 %v1219_v51, %v1218_v31  ;;  %v1206_v40 = vadd.f32 %v1205_v36, %v1204_v56  ;;  %v1266_v6 = vrot.slane %v1265_v43, 4  ;;  %v1234_v48 = vadd.f32 %v1233_v38, %v1232_v50  ;;  %v43_v36 = vld [vmem:[#allocation2 + $0x44] sm:$0xf] }
  0xd2   :  { %5122 = vst [vmem:[#allocation28_spill] sm:$0xff] %v3492_v46  ;;  %v41_v46 = vld [vmem:[#allocation2 + $0x3c] sm:$0xf]  ;;  %v1274_v32 = vadd.f32 %v1273_v41, %v1272_v61  ;;  %v1286_v60 = vsel %vm1194_vm0, %v1079_v39, 0.0  ;;  %v1279_v23 = vsel %vm1194_vm0, %v1078_v49, 0.0  ;;  %v5130_v33 = vrot.slane %v3382_v24, %v3113_v15 }
  0xd3   :  { %826 = vbcast.lane.b32.xlu1 %v5125_v37, 256  ;;  %819 = vbcast.lane.b32.xlu0 %v5126_v25, 256  ;;  %v1200_v37 = vrot.slane %v1199_v10, 1  ;;  %v40_v25 = vld [vmem:[#allocation2 + $0x38] sm:$0xf]  ;;  %v3528_v53 = vadd.f32 %v1214_v0, %v1213_v7  ;;  %v1227_v52 = vadd.f32 %v1226_v55, %v1225_v13  ;;  %v1248_v54 = vadd.f32 %v1247_v19, %v1246_v21 }
  0xd4   :  { %v5132_v56 = vrot.slane %v3382_v24, %v3115_v16  ;;  %v1261_v31 = vrot.slane %v1260_v44, 2  ;;  %v1254_v50 = vrot.slane %v1253_v30, 2  ;;  %v1081_v61 = vmul.f32 %v3326_v58, %v41_v46 }
  0xd5   :  { %v3511_v28 = vpop.permute.xlu1 %434  ;;  %v3513_v1 = vpop.permute.xlu0 %427  ;;  %5131 = vst [vmem:[#allocation34_spill] sm:$0xff] %v3528_v53  ;;  %v1080_v51 = vmul.f32 %v3328_v59, %v40_v25  ;;  %v3539_v7 = vadd.f32 %v1200_v37, %v1199_v10  ;;  %v1267_v13 = vadd.f32 %v1266_v6, %v1265_v43  ;;  %v1287_v19 = vrot.slane %v1286_v60, 4 }
  0xd6   :  { %5127 = vst [vmem:[#allocation31_spill] sm:$0xff] %v3513_v1  ;;  %v1241_v1 = vadd.f32 %v1240_v18, %v1239_v14  ;;  %v1280_v21 = vrot.slane %v1279_v23, 4  ;;  %v42_v14 = vld [vmem:[#allocation2 + $0x40] sm:$0xf]  ;;  %v1221_v55 = vrot.slane %v1220_v35, 1  ;;  %v1207_v39 = vrot.slane %v1206_v40, 1 }
  0xd7   :  { %840 = vbcast.lane.b32.xlu1 %v5130_v33, 256  ;;  %833 = vbcast.lane.b32.xlu0 %v5132_v56, 256  ;;  %5133 = vst [vmem:[#allocation35_spill] sm:$0xff] %v3539_v7  ;;  %v1235_v49 = vrot.slane %v1234_v48, 1  ;;  %v1275_v0 = vrot.slane %v1274_v32, 2  ;;  %v5134_v58 = vrot.slane %v3408_v47, %v3090_v5  ;;  %v1228_v59 = vrot.slane %v1227_v52, 1 }
  0xd8   :  { %v1249_v46 = vrot.slane %v1248_v54, 1  ;;  %v1242_v18 = vrot.slane %v1241_v1, 1  ;;  %v1083_v25 = vmul.f32 %v3334_v62, %v43_v36  ;;  %v5135_v10 = vrot.slane %v3408_v47, %v3086_v3  ;;  %v56_v5 = vld [vmem:[#allocation2 + $0x78] sm:$0xf] }
  0xd9   :  { %v3535_v38 = vpop.permute.xlu1 %448  ;;  %v3537_v41 = vpop.permute.xlu0 %441  ;;  %v1262_v6 = vadd.f32 %v1261_v31, %v1260_v44  ;;  %v1255_v43 = vadd.f32 %v1254_v50, %v1253_v30  ;;  %v1300_v37 = vsel %vm1194_vm0, %v1081_v61, 0.0  ;;  %v1293_v33 = vsel %vm1194_vm0, %v1080_v51, 0.0  ;;  %v45_v44 = vld [vmem:[#allocation2 + $0x4c] sm:$0xf]  ;;  %v44_v31 = vld [vmem:[#allocation2 + $0x48] sm:$0xf] }
  0xda   :  { %v1288_v7 = vadd.f32 %v1287_v19, %v1286_v60  ;;  %v1281_v15 = vadd.f32 %v1280_v21, %v1279_v23  ;;  %v1082_v16 = vmul.f32 %v3336_v63, %v42_v14  ;;  %v3555_v62 = vadd.f32 %v1221_v55, %v1220_v35  ;;  %v47_v63 = vld [vmem:[#allocation2 + $0x54] sm:$0xf]  ;;  %v46_v21 = vld [vmem:[#allocation2 + $0x50] sm:$0xf]  ;;  %v49_v14 = vld [vmem:[#allocation2 + $0x5c] sm:$0xf] }
  0xdb   :  { %854 = vbcast.lane.b32.xlu1 %v5134_v58, 256  ;;  %847 = vbcast.lane.b32.xlu0 %v5135_v10, 256  ;;  %v1268_v58 = vrot.slane %v1267_v13, 2  ;;  %v3557_v36 = vadd.f32 %v1207_v39, %v1206_v40  ;;  %v3559_v10 = vadd.f32 %v1235_v49, %v1234_v48  ;;  %v1276_v30 = vadd.f32 %v1275_v0, %v1274_v32 }
  0xdc   :  { %5136 = vst [vmem:[#allocation36_spill] sm:$0xff] %v3555_v62  ;;  %v5139_v50 = vrot.slane %v3408_v47, %v3088_v4  ;;  %v3564_v61 = vadd.f32 %v1228_v59, %v1227_v52  ;;  %v1301_v51 = vrot.slane %v1300_v37, 4  ;;  %v1294_v60 = vrot.slane %v1293_v33, 4  ;;  %v5152_v62 = vld [vmem:[#allocation19_spill] sm:$0xff] }
  0xdd   :  { %v3550_v56 = vpop.permute.xlu1 %462  ;;  %v3552_v53 = vpop.permute.xlu0 %455  ;;  %5137 = vst [vmem:[#allocation37_spill] sm:$0xff] %v3557_v36  ;;  %5138 = vst [vmem:[#allocation38_spill] sm:$0xff] %v3559_v10  ;;  %v1314_v23 = vsel %vm1194_vm0, %v1083_v25, 0.0  ;;  %v5141_v35 = vrot.slane %v3408_v47, %v3084_v2  ;;  %v3570_v40 = vadd.f32 %v1249_v46, %v1248_v54  ;;  %v3572_v48 = vadd.f32 %v1242_v18, %v1241_v1  ;;  %v48_v25 = vld [vmem:[#allocation2 + $0x58] sm:$0xf] }
  0xde   :  { %5140 = vst [vmem:[#allocation39_spill] sm:$0xff] %v3564_v61  ;;  %v1263_v32 = vrot.slane %v1262_v6, 1  ;;  %v1256_v19 = vrot.slane %v1255_v43, 1  ;;  %v1269_v39 = vadd.f32 %v1268_v58, %v1267_v13  ;;  %v1289_v49 = vrot.slane %v1288_v7, 2 }
  0xdf   :  { %868 = vbcast.lane.b32.xlu1 %v5139_v50, 256  ;;  %861 = vbcast.lane.b32.xlu0 %v5141_v35, 256  ;;  %5142 = vst [vmem:[#allocation40_spill] sm:$0xff] %v3570_v40  ;;  %5143 = vst [vmem:[#allocation41_spill] sm:$0xff] %v3572_v48  ;;  %v1282_v0 = vrot.slane %v1281_v15, 2  ;;  %v1307_v59 = vsel %vm1194_vm0, %v1082_v16, 0.0  ;;  %v1085_v54 = vmul.f32 %v3342_v8, %v45_v44 }
  0xe0   :  { %v1277_v50 = vrot.slane %v1276_v30, 1  ;;  %v1315_v35 = vrot.slane %v1314_v23, 4  ;;  %v1084_v1 = vmul.f32 %v3344_v9, %v44_v31  ;;  %v5144_v46 = vrot.slane %v3408_v47, %v3105_v11 }
  0xe1   :  { %v3574_v55 = vpop.permute.xlu1 %476  ;;  %v3576_v52 = vpop.permute.xlu0 %469  ;;  %v1302_v18 = vadd.f32 %v1301_v51, %v1300_v37  ;;  %v1295_v40 = vadd.f32 %v1294_v60, %v1293_v33  ;;  %v1087_v48 = vmul.f32 %v3355_v17, %v47_v63  ;;  %v1086_v13 = vmul.f32 %v3357_v20, %v46_v21  ;;  %v51_v51 = vld [vmem:[#allocation2 + $0x64] sm:$0xf] }
  0xe2   :  { %v5145_v16 = vrot.slane %v3408_v47, %v3107_v12  ;;  %v3589_v58 = vadd.f32 %v1263_v32, %v1262_v6  ;;  %v1308_v10 = vrot.slane %v1307_v59, 4  ;;  %v1089_v8 = vmul.f32 %v3363_v26, %v49_v14  ;;  %v50_v26 = vld [vmem:[#allocation2 + $0x60] sm:$0xf] }
  0xe3   :  { %882 = vbcast.lane.b32.xlu1 %v5144_v46, 256  ;;  %v1088_v9 = vmul.f32 %v3365_v27, %v48_v25  ;;  %v3597_v37 = vadd.f32 %v1256_v19, %v1255_v43  ;;  %v1270_v17 = vrot.slane %v1269_v39, 1  ;;  %v1290_v33 = vadd.f32 %v1289_v49, %v1288_v7  ;;  %v53_v43 = vld [vmem:[#allocation2 + $0x6c] sm:$0xf] }
  0xe4   :  { %875 = vbcast.lane.b32.xlu0 %v5145_v16, 256  ;;  %5146 = vst [vmem:[#allocation42_spill] sm:$0xff] %v3589_v58  ;;  %v1283_v20 = vadd.f32 %v1282_v0, %v1281_v15  ;;  %v3599_v60 = vadd.f32 %v1277_v50, %v1276_v30  ;;  %v1316_v63 = vadd.f32 %v1315_v35, %v1314_v23  ;;  %v1328_v6 = vsel %vm1194_vm0, %v1085_v54, 0.0  ;;  %v5150_v54 = vld [vmem:[#allocation17_spill] sm:$0xff] }
  0xe5   :  { %v3593_v44 = vpop.permute.xlu1 %490  ;;  %v3595_v31 = vpop.permute.xlu0 %483  ;;  %5147 = vst [vmem:[#allocation43_spill] sm:$0xff] %v3597_v37  ;;  %v1321_v32 = vsel %vm1194_vm0, %v1084_v1, 0.0  ;;  %v1303_v21 = vrot.slane %v1302_v18, 2  ;;  %v1296_v27 = vrot.slane %v1295_v40, 2  ;;  %v1342_v14 = vsel %vm1194_vm0, %v1087_v48, 0.0 }
  0xe6   :  { %5148 = vst [vmem:[#allocation44_spill] sm:$0xff] %v3599_v60  ;;  %v1335_v25 = vsel %vm1194_vm0, %v1086_v13, 0.0  ;;  %v1309_v19 = vadd.f32 %v1308_v10, %v1307_v59  ;;  %v1356_v7 = vsel %vm1194_vm0, %v1089_v8, 0.0  ;;  %v1349_v15 = vsel %vm1194_vm0, %v1088_v9, 0.0  ;;  %v5151_v10 = vld [vmem:[#allocation18_spill] sm:$0xff] }
  0xe7   :  { %v1091_v30 = vmul.f32 %v3373_v42, %v51_v51  ;;  %v3612_v0 = vadd.f32 %v1270_v17, %v1269_v39  ;;  %v1329_v50 = vrot.slane %v1328_v6, 4  ;;  %v1322_v35 = vrot.slane %v1321_v32, 4  ;;  %v52_v16 = vld [vmem:[#allocation2 + $0x68] sm:$0xf] }
  0xe8   :  { %v1090_v48 = vmul.f32 %v5150_v54, %v50_v26  ;;  %v1317_v1 = vrot.slane %v1316_v63, 2  ;;  %v1343_v46 = vrot.slane %v1342_v14, 4  ;;  %v1336_v13 = vrot.slane %v1335_v25, 4 }
  0xe9   :  { %v3608_v23 = vpop.permute.xlu1 %504  ;;  %v3610_v49 = vpop.permute.xlu0 %497  ;;  %5149 = vst [vmem:[#allocation45_spill] sm:$0xff] %v3612_v0  ;;  %v1093_v59 = vmul.f32 %v5151_v10, %v53_v43  ;;  %v1291_v8 = vrot.slane %v1290_v33, 1  ;;  %v1284_v9 = vrot.slane %v1283_v20, 1  ;;  %v1357_v60 = vrot.slane %v1356_v7, 4 }
  0xea   :  { %v1350_v42 = vrot.slane %v1349_v15, 4  ;;  %v1304_v51 = vadd.f32 %v1303_v21, %v1302_v18  ;;  %v1297_v58 = vadd.f32 %v1296_v27, %v1295_v40  ;;  %v1310_v37 = vrot.slane %v1309_v19, 2 }
  0xeb   :  { %v1370_v39 = vsel %vm1194_vm0, %v1091_v30, 0.0  ;;  %v1330_v26 = vadd.f32 %v1329_v50, %v1328_v6  ;;  %v1323_v54 = vadd.f32 %v1322_v35, %v1321_v32  ;;  %v1363_v61 = vsel %vm1194_vm0, %v1090_v48, 0.0  ;;  %v55_v6 = vld [vmem:[#allocation2 + $0x74] sm:$0xf] }
  0xec   :  { %v1092_v43 = vmul.f32 %v5152_v62, %v52_v16  ;;  %v1318_v10 = vadd.f32 %v1317_v1, %v1316_v63  ;;  %v1344_v36 = vadd.f32 %v1343_v46, %v1342_v14  ;;  %v1337_v11 = vadd.f32 %v1336_v13, %v1335_v25 }
  0xed   :  { %v3617_v17 = vpop.permute.xlu1 %518  ;;  %v3619_v0 = vpop.permute.xlu0 %511  ;;  %v1384_v12 = vsel %vm1194_vm0, %v1093_v59, 0.0  ;;  %v3624_v18 = vadd.f32 %v1291_v8, %v1290_v33  ;;  %v1358_v40 = vadd.f32 %v1357_v60, %v1356_v7  ;;  %v1351_v21 = vadd.f32 %v1350_v42, %v1349_v15 }
  0xee   :  { %v1371_v27 = vrot.slane %v1370_v39, 4  ;;  %v1305_v30 = vrot.slane %v1304_v51, 1  ;;  %v1298_v4 = vrot.slane %v1297_v58, 1  ;;  %v1311_v3 = vadd.f32 %v1310_v37, %v1309_v19  ;;  %v54_v19 = vld [vmem:[#allocation2 + $0x70] sm:$0xf] }
  0xef   :  { %5153 = vst [vmem:[#allocation17_spill] sm:$0xff] %v3624_v18  ;;  %v1364_v2 = vrot.slane %v1363_v61, 4  ;;  %v1331_v62 = vrot.slane %v1330_v26, 2  ;;  %v1324_v63 = vrot.slane %v1323_v54, 2  ;;  %v1385_v14 = vrot.slane %v1384_v12, 4 }
  0xf0   :  { %v1377_v25 = vsel %vm1194_vm0, %v1092_v43, 0.0  ;;  %v3631_v35 = vadd.f32 %v1284_v9, %v1283_v20  ;;  %v1319_v33 = vrot.slane %v1318_v10, 1  ;;  %v1345_v60 = vrot.slane %v1344_v36, 2 }
  0xf1   :  { %v3626_v32 = vpop.permute.xlu1 %532  ;;  %v3628_v50 = vpop.permute.xlu0 %525  ;;  %v1338_v7 = vrot.slane %v1337_v11, 2  ;;  %v1359_v15 = vrot.slane %v1358_v40, 2  ;;  %v1352_v48 = vrot.slane %v1351_v21, 2  ;;  %v1372_v1 = vadd.f32 %v1371_v27, %v1370_v39 }
  0xf2   :  { %5154 = vst [vmem:[#allocation18_spill] sm:$0xff] %v3631_v35  ;;  %v1095_v37 = vmul.f32 %v3419_v57, %v55_v6  ;;  %v3634_v46 = vadd.f32 %v1305_v30, %v1304_v51  ;;  %v3636_v13 = vadd.f32 %v1298_v4, %v1297_v58  ;;  %v1365_v59 = vadd.f32 %v1364_v2, %v1363_v61  ;;  %v57_v35 = vld [vmem:[#allocation2 + $0x7c] sm:$0xf] }
  0xf3   :  { %v1378_v16 = vrot.slane %v1377_v25, 4  ;;  %v1312_v20 = vrot.slane %v1311_v3, 1  ;;  %v1332_v9 = vadd.f32 %v1331_v62, %v1330_v26  ;;  %v1325_v43 = vadd.f32 %v1324_v63, %v1323_v54  ;;  %v5159_v26 = vld [vmem:[#allocation21_spill] sm:$0xff] }
  0xf4   :  { %5155 = vst [vmem:[#allocation19_spill] sm:$0xff] %v3634_v46  ;;  %5156 = vst [vmem:[#allocation46_spill] sm:$0xff] %v3636_v13  ;;  %v1386_v18 = vadd.f32 %v1385_v14, %v1384_v12  ;;  %v3642_v39 = vadd.f32 %v1319_v33, %v1318_v10  ;;  %v1346_v57 = vadd.f32 %v1345_v60, %v1344_v36  ;;  %v1373_v2 = vrot.slane %v1372_v1, 2  ;;  %v5158_v46 = vld [vmem:[#allocation20_spill] sm:$0xff] }
  0xf5   :  { %v3638_v8 = vpop.permute.xlu1 %546  ;;  %v3640_v42 = vpop.permute.xlu0 %539  ;;  %v1339_v27 = vadd.f32 %v1338_v7, %v1337_v11  ;;  %v1094_v51 = vmul.f32 %v3421_v29, %v54_v19  ;;  %v1360_v4 = vadd.f32 %v1359_v15, %v1358_v40  ;;  %v1353_v58 = vadd.f32 %v1352_v48, %v1351_v21  ;;  %v59_v12 = vld [vmem:[#allocation2 + $0x84] sm:$0xf] }
  0xf6   :  { %5157 = vst [vmem:[#allocation47_spill] sm:$0xff] %v3642_v39  ;;  %v1398_v61 = vsel %vm1194_vm0, %v1095_v37, 0.0  ;;  %v1366_v30 = vrot.slane %v1365_v59, 2  ;;  %v1379_v6 = vadd.f32 %v1378_v16, %v1377_v25  ;;  %v1097_v13 = vmul.f32 %v5158_v46, %v57_v35  ;;  %v58_v25 = vld [vmem:[#allocation2 + $0x80] sm:$0xf] }
  0xf7   :  { %v1096_v54 = vmul.f32 %v5159_v26, %v56_v5  ;;  %v3652_v36 = vadd.f32 %v1312_v20, %v1311_v3  ;;  %v1333_v11 = vrot.slane %v1332_v9, 1  ;;  %v1326_v29 = vrot.slane %v1325_v43, 1 }
  0xf8   :  { %v1387_v40 = vrot.slane %v1386_v18, 2  ;;  %v1347_v21 = vrot.slane %v1346_v57, 1  ;;  %v1340_v63 = vrot.slane %v1339_v27, 1  ;;  %v1399_v14 = vrot.slane %v1398_v61, 4 }
  0xf9   :  { %v3648_v62 = vpop.permute.xlu1 %560  ;;  %v3650_v10 = vpop.permute.xlu0 %553  ;;  %5160 = vst [vmem:[#allocation20_spill] sm:$0xff] %v3652_v36  ;;  %v1391_v33 = vsel %vm1194_vm0, %v1094_v51, 0.0  ;;  %v1361_v60 = vrot.slane %v1360_v4, 1  ;;  %v1354_v35 = vrot.slane %v1353_v58, 1  ;;  %v1374_v7 = vadd.f32 %v1373_v2, %v1372_v1  ;;  %v60_v2 = vld [vmem:[#allocation2 + $0x88] sm:$0xf] }
  0xfa   :  { %v1099_v5 = vmul.f32 %v3460_v22, %v59_v12  ;;  %v1367_v15 = vadd.f32 %v1366_v30, %v1365_v59  ;;  %v1380_v48 = vrot.slane %v1379_v6, 2  ;;  %v1412_v37 = vsel %vm1194_vm0, %v1097_v13, 0.0  ;;  %v61_v13 = vld [vmem:[#allocation2 + $0x8c] sm:$0xf] }
  0xfb   :  { %v1405_v3 = vsel %vm1194_vm0, %v1096_v54, 0.0  ;;  %v3662_v16 = vadd.f32 %v1333_v11, %v1332_v9  ;;  %v1388_v20 = vadd.f32 %v1387_v40, %v1386_v18  ;;  %v1392_v51 = vrot.slane %v1391_v33, 4  ;;  %v63_v9 = vld [vmem:[#allocation2 + $0x94] sm:$0xf] }
  0xfc   :  { %v1098_v26 = vmul.f32 %v3462_v34, %v58_v25  ;;  %v3665_v39 = vadd.f32 %v1326_v29, %v1325_v43  ;;  %v3667_v1 = vadd.f32 %v1347_v21, %v1346_v57  ;;  %v3669_v22 = vadd.f32 %v1340_v63, %v1339_v27  ;;  %v62_v29 = vld [vmem:[#allocation2 + $0x90] sm:$0xf]  ;;  %v65_v63 = vld [vmem:[#allocation2 + $0x9c] sm:$0xf] }
  0xfd   :  { %v3658_v19 = vpop.permute.xlu1 %574  ;;  %v3660_v46 = vpop.permute.xlu0 %567  ;;  %v1400_v59 = vadd.f32 %v1399_v14, %v1398_v61  ;;  %v1375_v30 = vrot.slane %v1374_v7, 1  ;;  %v1413_v54 = vrot.slane %v1412_v37, 4  ;;  %v1406_v12 = vrot.slane %v1405_v3, 4 }
  0xfe   :  { %5161 = vst [vmem:[#allocation21_spill] sm:$0xff] %v3667_v1  ;;  %5162 = vst [vmem:[#allocation48_spill] sm:$0xff] %v3669_v22  ;;  %v1426_v36 = vsel %vm1194_vm0, %v1099_v5, 0.0  ;;  %v3672_v11 = vadd.f32 %v1361_v60, %v1360_v4  ;;  %v3674_v18 = vadd.f32 %v1354_v35, %v1353_v58  ;;  %v1368_v34 = vrot.slane %v1367_v15, 1  ;;  %v5165_v5 = vld [vmem:[#allocation28_spill] sm:$0xff]  ;;  %v5177_v22 = vld [vmem:[#allocation29_spill] sm:$0xff] }
  0xff   :  { %v1381_v43 = vadd.f32 %v1380_v48, %v1379_v6  ;;  %v1389_v27 = vrot.slane %v1388_v20, 1  ;;  %v1393_v40 = vadd.f32 %v1392_v51, %v1391_v33  ;;  %v1419_v61 = vsel %vm1194_vm0, %v1098_v26, 0.0  ;;  %v64_v58 = vld [vmem:[#allocation2 + $0x98] sm:$0xf]  ;;  %v5166_v6 = vld [vmem:[#allocation22_spill] sm:$0xff] }
 0x100   :  { %5163 = vst [vmem:[#allocation49_spill] sm:$0xff] %v3672_v11  ;;  %5164 = vst [vmem:[#allocation50_spill] sm:$0xff] %v3674_v18  ;;  %v1101_v21 = vmul.f32 %v3490_v45, %v61_v13  ;;  %v1401_v14 = vrot.slane %v1400_v59, 2  ;;  %v1427_v25 = vrot.slane %v1426_v36, 4  ;;  %v1100_v1 = vmul.f32 %v5165_v5, %v60_v2  ;;  %v5168_v51 = vld [vmem:[#allocation31_spill] sm:$0xff] }
 0x101   :  { %v3676_v57 = vpop.permute.xlu1 %588  ;;  %v1103_v4 = vmul.f32 %v3511_v28, %v63_v9  ;;  %v3682_v60 = vpop.permute.xlu0 %581  ;;  %v3685_v35 = vadd.f32 %v1375_v30, %v1374_v7  ;;  %v1414_v48 = vadd.f32 %v1413_v54, %v1412_v37  ;;  %v1407_v33 = vadd.f32 %v1406_v12, %v1405_v3  ;;  %v67_v2 = vld [vmem:[#allocation2 + $0xa4] sm:$0xf]  ;;  %v66_v7 = vld [vmem:[#allocation2 + $0xa0] sm:$0xf]  ;;  %v5171_v12 = vld [vmem:[#allocation23_spill] sm:$0xff] }
 0x102   :  { %v1102_v26 = vmul.f32 %v5168_v51, %v62_v29  ;;  %v3688_v11 = vadd.f32 %v1368_v34, %v1367_v15  ;;  %v1382_v45 = vrot.slane %v1381_v43, 1  ;;  %v1420_v13 = vrot.slane %v1419_v61, 4 }
 0x103   :  { %2093 = vadd.xlane.f32.xlu0 %v5166_v6  ;;  %5167 = vst [vmem:[#allocation28_spill] sm:$0xff] %v3685_v35  ;;  %v1105_v18 = vmul.f32 %v3535_v38, %v65_v63  ;;  %v3691_v5 = vadd.f32 %v1389_v27, %v1388_v20  ;;  %v1394_v28 = vrot.slane %v1393_v40, 2  ;;  %v1440_v9 = vsel %vm1194_vm0, %v1101_v21, 0.0  ;;  %v5172_v27 = vld [vmem:[#allocation24_spill] sm:$0xff] }
 0x104   :  { %5169 = vst [vmem:[#allocation22_spill] sm:$0xff] %v3688_v11  ;;  %v1104_v6 = vmul.f32 %v3537_v41, %v64_v58  ;;  %v1402_v30 = vadd.f32 %v1401_v14, %v1400_v59  ;;  %v1428_v37 = vadd.f32 %v1427_v25, %v1426_v36  ;;  %v1433_v3 = vsel %vm1194_vm0, %v1100_v1, 0.0  ;;  %v69_v58 = vld [vmem:[#allocation2 + $0xac] sm:$0xf] }
 0x105   :  { %5170 = vst [vmem:[#allocation31_spill] sm:$0xff] %v3691_v5  ;;  %v1454_v15 = vsel %vm1194_vm0, %v1103_v4, 0.0  ;;  %v3697_v54 = vpop.permute.xlu1 %602  ;;  %v1415_v38 = vrot.slane %v1414_v48, 2  ;;  %v1408_v34 = vrot.slane %v1407_v33, 2  ;;  %v1447_v20 = vsel %vm1194_vm0, %v1102_v26, 0.0  ;;  %v3705_v59 = vpop.permute.xlu0 %595 }
 0x106   :  { %v1107_v29 = vmul.f32 %v3550_v56, %v67_v2  ;;  %v1421_v41 = vadd.f32 %v1420_v13, %v1419_v61  ;;  %v1441_v21 = vrot.slane %v1440_v9, 4  ;;  %v1468_v36 = vsel %vm1194_vm0, %v1105_v18, 0.0  ;;  %v5174_v61 = vld [vmem:[#allocation25_spill] sm:$0xff] }
 0x107   :  { %2099 = vadd.xlane.f32.xlu0 %v5171_v12  ;;  %2096 = vadd.xlane.f32.xlu1 %v5172_v27  ;;  %v1106_v1 = vmul.f32 %v3552_v53, %v66_v7  ;;  %v3707_v63 = vadd.f32 %v1382_v45, %v1381_v43  ;;  %v1434_v14 = vrot.slane %v1433_v3, 4  ;;  %v1455_v25 = vrot.slane %v1454_v15, 4  ;;  %v68_v12 = vld [vmem:[#allocation2 + $0xa8] sm:$0xf]  ;;  %v5175_v7 = vld [vmem:[#allocation26_spill] sm:$0xff] }
 0x108   :  { %v1461_v4 = vsel %vm1194_vm0, %v1104_v6, 0.0  ;;  %v1403_v51 = vrot.slane %v1402_v30, 1  ;;  %v1395_v26 = vadd.f32 %v1394_v28, %v1393_v40  ;;  %v1429_v56 = vrot.slane %v1428_v37, 2 }
 0x109   :  { %5173 = vst [vmem:[#allocation23_spill] sm:$0xff] %v3707_v63  ;;  %v1448_v2 = vrot.slane %v1447_v20, 4  ;;  %v1416_v13 = vadd.f32 %v1415_v38, %v1414_v48  ;;  %v1409_v18 = vadd.f32 %v1408_v34, %v1407_v33  ;;  %v1469_v27 = vrot.slane %v1468_v36, 4  ;;  %v3714_v63 = vpop.permute.xlu1 %616 }
 0x10a   :  { %v1482_v53 = vsel %vm1194_vm0, %v1107_v29, 0.0  ;;  %v1422_v43 = vrot.slane %v1421_v41, 2  ;;  %v1442_v45 = vadd.f32 %v1441_v21, %v1440_v9  ;;  %v1462_v5 = vrot.slane %v1461_v4, 4  ;;  %v3718_v29 = vpop.permute.xlu0 %609 }
 0x10b   :  { %2102 = vadd.xlane.f32.xlu0 %v5174_v61  ;;  %2105 = vadd.xlane.f32.xlu1 %v5175_v7  ;;  %v1475_v6 = vsel %vm1194_vm0, %v1106_v1, 0.0  ;;  %v1435_v40 = vadd.f32 %v1434_v14, %v1433_v3  ;;  %v1456_v28 = vadd.f32 %v1455_v25, %v1454_v15  ;;  %v1109_v35 = vmul.f32 %v3574_v55, %v69_v58  ;;  %v5176_v7 = vld [vmem:[#allocation27_spill] sm:$0xff] }
 0x10c   :  { %v1108_v61 = vmul.f32 %v3576_v52, %v68_v12  ;;  %v1396_v48 = vrot.slane %v1395_v26, 1  ;;  %v1430_v33 = vadd.f32 %v1429_v56, %v1428_v37  ;;  %v1449_v38 = vadd.f32 %v1448_v2, %v1447_v20 }
 0x10d   :  { %v1483_v34 = vrot.slane %v1482_v53, 4  ;;  %v1417_v9 = vrot.slane %v1416_v13, 1  ;;  %v1410_v21 = vrot.slane %v1409_v18, 1  ;;  %v1470_v11 = vadd.f32 %v1469_v27, %v1468_v36  ;;  %v3728_v36 = vpop.permute.xlu1 %630  ;;  %v5180_v27 = vld [vmem:[#allocation30_spill] sm:$0xff] }
 0x10e   :  { %v1476_v1 = vrot.slane %v1475_v6, 4  ;;  %v3722_v3 = vadd.f32 %v1403_v51, %v1402_v30  ;;  %v1423_v15 = vadd.f32 %v1422_v43, %v1421_v41  ;;  %v1443_v55 = vrot.slane %v1442_v45, 2  ;;  %v5183_v51 = vld [vmem:[#allocation32_spill] sm:$0xff] }
 0x10f   :  { %2108 = vadd.xlane.f32.xlu0 %v5176_v7  ;;  %2111 = vadd.xlane.f32.xlu1 %v5177_v22  ;;  %v1463_v14 = vadd.f32 %v1462_v5, %v1461_v4  ;;  %v1436_v52 = vrot.slane %v1435_v40, 2  ;;  %v1457_v25 = vrot.slane %v1456_v28, 2  ;;  %v1496_v37 = vsel %vm1194_vm0, %v1109_v35, 0.0  ;;  %v71_v4 = vld [vmem:[#allocation2 + $0xb4] sm:$0xf] }
 0x110   :  { %5178 = vst [vmem:[#allocation24_spill] sm:$0xff] %v3722_v3  ;;  %v1489_v20 = vsel %vm1194_vm0, %v1108_v61, 0.0  ;;  %v3726_v58 = vadd.f32 %v1396_v48, %v1395_v26  ;;  %v1431_v56 = vrot.slane %v1430_v33, 1  ;;  %v1450_v2 = vrot.slane %v1449_v38, 2  ;;  %v70_v61 = vld [vmem:[#allocation2 + $0xb0] sm:$0xf]  ;;  %v3736_v48 = vpop.permute.xlu0 %623 }
 0x111   :  { %v1484_v12 = vadd.f32 %v1483_v34, %v1482_v53  ;;  %v3731_v22 = vadd.f32 %v1417_v9, %v1416_v13  ;;  %v3733_v30 = vadd.f32 %v1410_v21, %v1409_v18  ;;  %v1471_v5 = vrot.slane %v1470_v11, 2  ;;  %v5184_v53 = vld [vmem:[#allocation16_spill] sm:$0xff] }
 0x112   :  { %5179 = vst [vmem:[#allocation25_spill] sm:$0xff] %v3726_v58  ;;  %v1477_v41 = vadd.f32 %v1476_v1, %v1475_v6  ;;  %v1464_v35 = vrot.slane %v1463_v14, 2  ;;  %v1497_v43 = vrot.slane %v1496_v37, 4  ;;  %v1490_v26 = vrot.slane %v1489_v20, 4  ;;  %v73_v58 = vld [vmem:[#allocation2 + $0xbc] sm:$0xf] }
 0x113   :  { %2114 = vadd.xlane.f32.xlu0 %v5180_v27  ;;  %5181 = vst [vmem:[#allocation26_spill] sm:$0xff] %v3731_v22  ;;  %5182 = vst [vmem:[#allocation27_spill] sm:$0xff] %v3733_v30  ;;  %2117 = vadd.xlane.f32.xlu1 %v5183_v51  ;;  %v2122_v34 = vsel %vm2091_vm1, %v5184_v53, 0.0  ;;  %v1424_v7 = vrot.slane %v1423_v15, 1  ;;  %v1444_v27 = vadd.f32 %v1443_v55, %v1442_v45  ;;  %v1485_v6 = vrot.slane %v1484_v12, 2  ;;  %v5186_v51 = vld [vmem:[#allocation33_spill] sm:$0xff] }
 0x114   :  { %v1437_v13 = vadd.f32 %v1436_v52, %v1435_v40  ;;  %v1458_v9 = vadd.f32 %v1457_v25, %v1456_v28  ;;  %v3740_v18 = vadd.f32 %v1431_v56, %v1430_v33  ;;  %v1451_v21 = vadd.f32 %v1450_v2, %v1449_v38  ;;  %v3747_v33 = vpop.permute.xlu1 %644  ;;  %v72_v25 = vld [vmem:[#allocation2 + $0xb8] sm:$0xf]  ;;  %v3760_v56 = vpop.permute.xlu0 %637 }
 0x115   :  { %v1111_v1 = vmul.f32 %v3593_v44, %v71_v4  ;;  %v1472_v22 = vadd.f32 %v1471_v5, %v1470_v11  ;;  %v1478_v30 = vrot.slane %v1477_v41, 2  ;;  %v1110_v3 = vmul.f32 %v3595_v31, %v70_v61  ;;  %v3754_v44 = vld [vmem:[%s5077_s1 + $0x68] sm:$0xff]  ;;  %v75_v4 = vld [vmem:[#allocation2 + $0xc4] sm:$0xf]  ;;  %v74_v61 = vld [vmem:[#allocation2 + $0xc0] sm:$0xf] }
 0x116   :  { %5185 = vst [vmem:[#allocation29_spill] sm:$0xff] %v3740_v18  ;;  %v2125_v53 = vsel %vm2091_vm1, %v3382_v24, 0.0  ;;  %v1465_v45 = vadd.f32 %v1464_v35, %v1463_v14  ;;  %v1498_v40 = vadd.f32 %v1497_v43, %v1496_v37  ;;  %v1491_v28 = vadd.f32 %v1490_v26, %v1489_v20 }
 0x117   :  { %2120 = vadd.xlane.f32.xlu0 %v5186_v51  ;;  %2123 = vadd.xlane.f32.xlu1 %v2122_v34  ;;  %v2128_v38 = vsel %vm2091_vm1, %v3408_v47, 0.0  ;;  %v3756_v11 = vadd.f32 %v1424_v7, %v1423_v15  ;;  %v1445_v31 = vrot.slane %v1444_v27, 1  ;;  %v1438_v55 = vrot.slane %v1437_v13, 1 }
 0x118   :  { %v1459_v52 = vrot.slane %v1458_v9, 1  ;;  %v1452_v24 = vrot.slane %v1451_v21, 1  ;;  %v1486_v14 = vadd.f32 %v1485_v6, %v1484_v12  ;;  %v1510_v37 = vsel %vm1194_vm0, %v1111_v1, 0.0  ;;  %v77_v1 = vld [vmem:[#allocation2 + $0xcc] sm:$0xf]  ;;  %v3775_v51 = vpop.permute.xlu1 %658 }
 0x119   :  { %v1113_v20 = vmul.f32 %v3608_v23, %v73_v58  ;;  %v1473_v47 = vrot.slane %v1472_v22, 1  ;;  %v1479_v2 = vadd.f32 %v1478_v30, %v1477_v41  ;;  %v1503_v5 = vsel %vm1194_vm0, %v1110_v3, 0.0 }
 0x11a   :  { %v2131_v15 = vsel %vm2091_vm1, %v3754_v44, 0.0  ;;  %v1466_v35 = vrot.slane %v1465_v45, 1  ;;  %v1499_v43 = vrot.slane %v1498_v40, 2  ;;  %v1492_v26 = vrot.slane %v1491_v28, 2 }
 0x11b   :  { %2126 = vadd.xlane.f32.xlu0 %v2125_v53  ;;  %2129 = vadd.xlane.f32.xlu1 %v2128_v38  ;;  %v1112_v12 = vmul.f32 %v3610_v49, %v72_v25  ;;  %v3766_v34 = vadd.f32 %v1445_v31, %v1444_v27  ;;  %v3768_v23 = vadd.f32 %v1438_v55, %v1437_v13  ;;  %v1511_v30 = vrot.slane %v1510_v37, 4  ;;  %v3780_v49 = vld [vmem:[%s5077_s1 + $0x70] sm:$0xff]  ;;  %v76_v53 = vld [vmem:[#allocation2 + $0xc8] sm:$0xf] }
 0x11c   :  { %v3770_v58 = vadd.f32 %v1459_v52, %v1458_v9  ;;  %v3772_v41 = vadd.f32 %v1452_v24, %v1451_v21  ;;  %v1487_v3 = vrot.slane %v1486_v14, 1  ;;  %v1504_v7 = vrot.slane %v1503_v5, 4  ;;  %v79_v38 = vld [vmem:[#allocation2 + $0xd4] sm:$0xf]  ;;  %v78_v24 = vld [vmem:[#allocation2 + $0xd0] sm:$0xf] }
 0x11d   :  { %5187 = vst [vmem:[#allocation30_spill] sm:$0xff] %v3766_v34  ;;  %5188 = vst [vmem:[#allocation32_spill] sm:$0xff] %v3768_v23  ;;  %v1524_v6 = vsel %vm1194_vm0, %v1113_v20, 0.0  ;;  %v3782_v27 = vadd.f32 %v1473_v47, %v1472_v22  ;;  %v1480_v13 = vrot.slane %v1479_v2, 1  ;;  %v1115_v9 = vmul.f32 %v3617_v17, %v75_v4  ;;  %v81_v20 = vld [vmem:[#allocation2 + $0xdc] sm:$0xf] }
 0x11e   :  { %5189 = vst [vmem:[#allocation16_spill] sm:$0xff] %v3770_v58  ;;  %5190 = vst [vmem:[#allocation33_spill] sm:$0xff] %v3772_v41  ;;  %v1114_v21 = vmul.f32 %v3619_v0, %v74_v61  ;;  %v3786_v31 = vadd.f32 %v1466_v35, %v1465_v45  ;;  %v1500_v55 = vadd.f32 %v1499_v43, %v1498_v40  ;;  %v1517_v25 = vsel %vm1194_vm0, %v1112_v12, 0.0  ;;  %v3797_v17 = vld [vmem:[%s5077_s1 + $0x78] sm:$0xff]  ;;  %v83_v61 = vld [vmem:[#allocation2 + $0xe4] sm:$0xf] }
 0x11f   :  { %2132 = vadd.xlane.f32.xlu0 %v2131_v15  ;;  %5191 = vst [vmem:[#allocation51_spill] sm:$0xff] %v3782_v27  ;;  %v1493_v52 = vadd.f32 %v1492_v26, %v1491_v28  ;;  %v3789_v15 = vpop.permute.xlu0 %651  ;;  %v1512_v58 = vadd.f32 %v1511_v30, %v1510_v37  ;;  %v1525_v22 = vrot.slane %v1524_v6, 4  ;;  %v1117_v47 = vmul.f32 %v3626_v32, %v77_v1  ;;  %v80_v27 = vld [vmem:[#allocation2 + $0xd8] sm:$0xf]  ;;  %v85_v34 = vld [vmem:[#allocation2 + $0xec] sm:$0xf] }
 0x120   :  { %5192 = vst [vmem:[#allocation52_spill] sm:$0xff] %v3786_v31  ;;  %v2134_v0 = vsel %vm2091_vm1, %v3780_v49, 0.0  ;;  %v3799_v45 = vadd.f32 %v1487_v3, %v1486_v14  ;;  %v1505_v40 = vadd.f32 %v1504_v7, %v1503_v5  ;;  %v1116_v28 = vmul.f32 %v3628_v50, %v76_v53  ;;  %v3810_v5 = vpop.permute.xlu1 %672 }
 0x121   :  { %v1119_v4 = vmul.f32 %v3638_v8, %v79_v38  ;;  %2135 = vadd.xlane.f32.xlu1 %v2134_v0  ;;  %v3803_v37 = vadd.f32 %v1480_v13, %v1479_v2  ;;  %v1518_v32 = vrot.slane %v1517_v25, 4  ;;  %v1538_v35 = vsel %vm1194_vm0, %v1115_v9, 0.0  ;;  %v82_v13 = vld [vmem:[#allocation2 + $0xe0] sm:$0xf] }
 0x122   :  { %5193 = vst [vmem:[#allocation53_spill] sm:$0xff] %v3799_v45  ;;  %v1531_v43 = vsel %vm1194_vm0, %v1114_v21, 0.0  ;;  %v1118_v26 = vmul.f32 %v3640_v42, %v78_v24  ;;  %v1121_v12 = vmul.f32 %v3648_v62, %v81_v20  ;;  %v1120_v14 = vmul.f32 %v3650_v10, %v80_v27 }
 0x123   :  { %5194 = vst [vmem:[#allocation54_spill] sm:$0xff] %v3803_v37  ;;  %v2137_v50 = vsel %vm2091_vm1, %v3797_v17, 0.0  ;;  %v1501_v8 = vrot.slane %v1500_v55, 1  ;;  %v1513_v2 = vrot.slane %v1512_v58, 2  ;;  %v1526_v30 = vadd.f32 %v1525_v22, %v1524_v6  ;;  %v3817_v10 = vpop.permute.xlu0 %665 }
 0x124   :  { %v1552_v3 = vsel %vm1194_vm0, %v1117_v47, 0.0  ;;  %2138 = vadd.xlane.f32.xlu0 %v2137_v50  ;;  %v1506_v7 = vrot.slane %v1505_v40, 2  ;;  %v1539_v1 = vrot.slane %v1538_v35, 4  ;;  %v1545_v42 = vsel %vm1194_vm0, %v1116_v28, 0.0 }
 0x125   :  { %v1566_v62 = vsel %vm1194_vm0, %v1119_v4, 0.0  ;;  %v1494_v27 = vrot.slane %v1493_v52, 1  ;;  %v1519_v9 = vadd.f32 %v1518_v32, %v1517_v25  ;;  %v1532_v21 = vrot.slane %v1531_v43, 4  ;;  %v3826_v32 = vpop.permute.xlu1 %686 }
 0x126   :  { %v1123_v53 = vmul.f32 %v3658_v19, %v83_v61  ;;  %v1553_v38 = vrot.slane %v1552_v3, 4  ;;  %v1559_v6 = vsel %vm1194_vm0, %v1118_v26, 0.0  ;;  %v1580_v24 = vsel %vm1194_vm0, %v1121_v12, 0.0 }
 0x127   :  { %v1573_v20 = vsel %vm1194_vm0, %v1120_v14, 0.0  ;;  %v1527_v22 = vrot.slane %v1526_v30, 2  ;;  %v1546_v47 = vrot.slane %v1545_v42, 4  ;;  %v1567_v0 = vrot.slane %v1566_v62, 4  ;;  %v3831_v23 = vpop.permute.xlu0 %679 }
 0x128   :  { %v1122_v28 = vmul.f32 %v3660_v46, %v82_v13  ;;  %v3824_v4 = vadd.f32 %v1501_v8, %v1500_v55  ;;  %v1514_v50 = vadd.f32 %v1513_v2, %v1512_v58  ;;  %v1507_v45 = vadd.f32 %v1506_v7, %v1505_v40 }
 0x129   :  { %v1540_v25 = vadd.f32 %v1539_v1, %v1538_v35  ;;  %v1560_v19 = vrot.slane %v1559_v6, 4  ;;  %v1581_v61 = vrot.slane %v1580_v24, 4  ;;  %v1574_v37 = vrot.slane %v1573_v20, 4  ;;  %v84_v1 = vld [vmem:[#allocation2 + $0xe8] sm:$0xf] }
 0x12a   :  { %5195 = vst [vmem:[#allocation55_spill] sm:$0xff] %v3824_v4  ;;  %v1594_v26 = vsel %vm1194_vm0, %v1123_v53, 0.0  ;;  %v3829_v12 = vadd.f32 %v1494_v27, %v1493_v52  ;;  %v1520_v14 = vrot.slane %v1519_v9, 2  ;;  %v1533_v31 = vadd.f32 %v1532_v21, %v1531_v43  ;;  %v3835_v4 = vpop.permute.xlu1 %700 }
 0x12b   :  { %v1554_v41 = vadd.f32 %v1553_v38, %v1552_v3  ;;  %v1528_v46 = vadd.f32 %v1527_v22, %v1526_v30  ;;  %v1547_v55 = vadd.f32 %v1546_v47, %v1545_v42  ;;  %v1568_v58 = vadd.f32 %v1567_v0, %v1566_v62 }
 0x12c   :  { %5196 = vst [vmem:[#allocation56_spill] sm:$0xff] %v3829_v12  ;;  %v1587_v40 = vsel %vm1194_vm0, %v1122_v28, 0.0  ;;  %v1515_v35 = vrot.slane %v1514_v50, 1  ;;  %v1508_v8 = vrot.slane %v1507_v45, 1  ;;  %v1541_v2 = vrot.slane %v1540_v25, 2 }
 0x12d   :  { %v1595_v7 = vrot.slane %v1594_v26, 4  ;;  %v1561_v13 = vadd.f32 %v1560_v19, %v1559_v6  ;;  %v1582_v53 = vadd.f32 %v1581_v61, %v1580_v24  ;;  %v1575_v52 = vadd.f32 %v1574_v37, %v1573_v20  ;;  %v87_v37 = vld [vmem:[#allocation2 + $0xf4] sm:$0xf]  ;;  %v3842_v20 = vpop.permute.xlu0 %693  ;;  %v86_v19 = vld [vmem:[#allocation2 + $0xf0] sm:$0xf] }
 0x12e   :  { %v1125_v27 = vmul.f32 %v3676_v57, %v85_v34  ;;  %v1521_v43 = vadd.f32 %v1520_v14, %v1519_v9  ;;  %v1534_v3 = vrot.slane %v1533_v31, 2  ;;  %v1555_v21 = vrot.slane %v1554_v41, 2 }
 0x12f   :  { %v1588_v38 = vrot.slane %v1587_v40, 4  ;;  %v1529_v30 = vrot.slane %v1528_v46, 1  ;;  %v1548_v42 = vrot.slane %v1547_v55, 2  ;;  %v1569_v62 = vrot.slane %v1568_v58, 2 }
 0x130   :  { %v1124_v22 = vmul.f32 %v3682_v60, %v84_v1  ;;  %v3838_v47 = vadd.f32 %v1515_v35, %v1514_v50  ;;  %v3840_v0 = vadd.f32 %v1508_v8, %v1507_v45  ;;  %v1542_v6 = vadd.f32 %v1541_v2, %v1540_v25 }
 0x131   :  { %v1596_v24 = vadd.f32 %v1595_v7, %v1594_v26  ;;  %v1562_v57 = vrot.slane %v1561_v13, 2  ;;  %v1583_v34 = vrot.slane %v1582_v53, 2  ;;  %v1576_v9 = vrot.slane %v1575_v52, 2  ;;  %v3850_v7 = vpop.permute.xlu1 %714 }
 0x132   :  { %5197 = vst [vmem:[#allocation57_spill] sm:$0xff] %v3838_v47  ;;  %v1608_v28 = vsel %vm1194_vm0, %v1125_v27, 0.0  ;;  %v1522_v61 = vrot.slane %v1521_v43, 1  ;;  %v1535_v14 = vadd.f32 %v1534_v3, %v1533_v31  ;;  %v1556_v12 = vadd.f32 %v1555_v21, %v1554_v41  ;;  %v3852_v3 = vpop.permute.xlu0 %707 }
 0x133   :  { %v1589_v18 = vadd.f32 %v1588_v38, %v1587_v40  ;;  %v3845_v60 = vadd.f32 %v1529_v30, %v1528_v46  ;;  %v1549_v50 = vadd.f32 %v1548_v42, %v1547_v55  ;;  %v1570_v45 = vadd.f32 %v1569_v62, %v1568_v58  ;;  %v5198_v55 = vld [vmem:[#allocation11_spill] sm:$0xff] }
 0x134   :  { %v1601_v25 = vsel %vm1194_vm0, %v1124_v22, 0.0  ;;  %v1597_v26 = vrot.slane %v1596_v24, 2  ;;  %v1609_v35 = vrot.slane %v1608_v28, 4  ;;  %v1127_v8 = vmul.f32 %v3697_v54, %v87_v37 }
 0x135   :  { %v1126_v2 = vmul.f32 %v3705_v59, %v86_v19  ;;  %v1543_v1 = vrot.slane %v1542_v6, 1  ;;  %v1563_v27 = vadd.f32 %v1562_v57, %v1561_v13  ;;  %v1584_v47 = vadd.f32 %v1583_v34, %v1582_v53  ;;  %v89_v59 = vld [vmem:[#allocation2 + $0xfc] sm:$0xf] }
 0x136   :  { %v1577_v31 = vadd.f32 %v1576_v9, %v1575_v52  ;;  %v1536_v41 = vrot.slane %v1535_v14, 1  ;;  %v1557_v40 = vrot.slane %v1556_v12, 1  ;;  %v1590_v46 = vrot.slane %v1589_v18, 2  ;;  %v88_v52 = vld [vmem:[#allocation2 + $0xf8] sm:$0xf] }
 0x137   :  { %v908_v58 = vrot.slane %v3754_v44, %v5198_v55  ;;  %v3856_v21 = vadd.f32 %v1522_v61, %v1521_v43  ;;  %v1550_v38 = vrot.slane %v1549_v50, 1  ;;  %v1571_v54 = vrot.slane %v1570_v45, 1 }
 0x138   :  { %v1602_v30 = vrot.slane %v1601_v25, 4  ;;  %v1598_v42 = vadd.f32 %v1597_v26, %v1596_v24  ;;  %v1610_v62 = vadd.f32 %v1609_v35, %v1608_v28  ;;  %v1622_v13 = vsel %vm1194_vm0, %v1127_v8, 0.0  ;;  %v91_v24 = vld [vmem:[#allocation2 + $0x104] sm:$0xf]  ;;  %v3867_v28 = vpop.permute.xlu1 %728 }
 0x139   :  { %v1615_v53 = vsel %vm1194_vm0, %v1126_v2, 0.0  ;;  %910 = vbcast.lane.b32.xlu1 %v908_v58, 256  ;;  %v3860_v22 = vadd.f32 %v1543_v1, %v1542_v6  ;;  %v1564_v37 = vrot.slane %v1563_v27, 1  ;;  %v1585_v57 = vrot.slane %v1584_v47, 1  ;;  %v90_v6 = vld [vmem:[#allocation2 + $0x100] sm:$0xf] }
 0x13a   :  { %v1578_v34 = vrot.slane %v1577_v31, 1  ;;  %v3862_v9 = vadd.f32 %v1536_v41, %v1535_v14  ;;  %v3864_v43 = vadd.f32 %v1557_v40, %v1556_v12  ;;  %v1591_v19 = vadd.f32 %v1590_v46, %v1589_v18  ;;  %v93_v1 = vld [vmem:[#allocation2 + $0x10c] sm:$0xf]  ;;  %v3874_v41 = vpop.permute.xlu0 %721  ;;  %v92_v46 = vld [vmem:[#allocation2 + $0x108] sm:$0xf] }
 0x13b   :  { %5199 = vst [vmem:[#allocation11_spill] sm:$0xff] %v3860_v22  ;;  %v1129_v61 = vmul.f32 %v3714_v63, %v89_v59  ;;  %v1603_v26 = vadd.f32 %v1602_v30, %v1601_v25  ;;  %v1623_v35 = vrot.slane %v1622_v13, 4  ;;  %v1616_v8 = vrot.slane %v1615_v53, 4 }
 0x13c   :  { %5200 = vst [vmem:[#allocation58_spill] sm:$0xff] %v3864_v43  ;;  %v1128_v2 = vmul.f32 %v3718_v29, %v88_v52  ;;  %v3870_v58 = vadd.f32 %v1550_v38, %v1549_v50  ;;  %v3872_v22 = vadd.f32 %v1571_v54, %v1570_v45  ;;  %v1599_v14 = vrot.slane %v1598_v42, 1  ;;  %v95_v29 = vld [vmem:[#allocation2 + $0x114] sm:$0xf]  ;;  %v94_v54 = vld [vmem:[#allocation2 + $0x110] sm:$0xf] }
 0x13d   :  { %v1611_v12 = vrot.slane %v1610_v62, 2  ;;  %v3876_v18 = vadd.f32 %v1564_v37, %v1563_v27  ;;  %v3878_v63 = vadd.f32 %v1585_v57, %v1584_v47  ;;  %v3880_v40 = vadd.f32 %v1578_v34, %v1577_v31  ;;  %v97_v37 = vld [vmem:[#allocation2 + $0x11c] sm:$0xf] }
 0x13e   :  { %5201 = vst [vmem:[#allocation59_spill] sm:$0xff] %v3870_v58  ;;  %5202 = vst [vmem:[#allocation60_spill] sm:$0xff] %v3872_v22  ;;  %v1131_v25 = vmul.f32 %v3728_v36, %v91_v24  ;;  %v1592_v30 = vrot.slane %v1591_v19, 1  ;;  %v1636_v50 = vsel %vm1194_vm0, %v1129_v61, 0.0  ;;  %v1130_v45 = vmul.f32 %v3736_v48, %v90_v6  ;;  %v3891_v24 = vpop.permute.xlu1 %742 }
 0x13f   :  { %5203 = vst [vmem:[#allocation61_spill] sm:$0xff] %v3876_v18  ;;  %5204 = vst [vmem:[#allocation62_spill] sm:$0xff] %v3878_v63  ;;  %v1133_v38 = vmul.f32 %v3747_v33, %v93_v1  ;;  %v1604_v59 = vrot.slane %v1603_v26, 2  ;;  %v1624_v52 = vadd.f32 %v1623_v35, %v1622_v13  ;;  %v1617_v27 = vadd.f32 %v1616_v8, %v1615_v53 }
 0x140   :  { %5205 = vst [vmem:[#allocation63_spill] sm:$0xff] %v3880_v40  ;;  %v1629_v47 = vsel %vm1194_vm0, %v1128_v2, 0.0  ;;  %v3887_v31 = vadd.f32 %v1599_v14, %v1598_v42  ;;  %v1612_v57 = vadd.f32 %v1611_v12, %v1610_v62  ;;  %v1132_v36 = vmul.f32 %v3760_v56, %v92_v46  ;;  %v3900_v56 = vpop.permute.xlu0 %735  ;;  %v96_v12 = vld [vmem:[#allocation2 + $0x118] sm:$0xf] }
 0x141   :  { %v1135_v34 = vmul.f32 %v3775_v51, %v95_v29  ;;  %v1637_v61 = vrot.slane %v1636_v50, 4  ;;  %v1650_v48 = vsel %vm1194_vm0, %v1131_v25, 0.0  ;;  %v1134_v33 = vmul.f32 %v3789_v15, %v94_v54 }
 0x142   :  { %5206 = vst [vmem:[#allocation64_spill] sm:$0xff] %v3887_v31  ;;  %v964_v13 = vrot.slane %v3780_v49, %v5198_v55  ;;  %v1630_v53 = vrot.slane %v1629_v47, 4  ;;  %v1643_v35 = vsel %vm1194_vm0, %v1130_v45, 0.0  ;;  %v1664_v42 = vsel %vm1194_vm0, %v1133_v38, 0.0  ;;  %v3912_v54 = vpop.permute.xlu1 %756 }
 0x143   :  { %v1137_v62 = vmul.f32 %v3810_v5, %v97_v37  ;;  %v3902_v51 = vadd.f32 %v1592_v30, %v1591_v19  ;;  %v3904_v8 = vadd.f32 %v1604_v59, %v1603_v26  ;;  %v1625_v2 = vrot.slane %v1624_v52, 2  ;;  %v99_v30 = vld [vmem:[#allocation2 + $0x124] sm:$0xf] }
 0x144   :  { %v1618_v6 = vrot.slane %v1617_v27, 2  ;;  %966 = vbcast.lane.b32.xlu0 %v964_v13, 256  ;;  %v1651_v15 = vrot.slane %v1650_v48, 4  ;;  %v1657_v1 = vsel %vm1194_vm0, %v1132_v36, 0.0  ;;  %v1678_v14 = vsel %vm1194_vm0, %v1135_v34, 0.0  ;;  %v5208_v59 = vld [vmem:[#allocation8_spill] sm:$0xff] }
 0x145   :  { %5207 = vst [vmem:[#allocation65_spill] sm:$0xff] %v3902_v51  ;;  %v1020_v25 = vrot.slane %v3797_v17, %v5198_v55  ;;  %v1613_v46 = vrot.slane %v1612_v57, 1  ;;  %v1644_v5 = vrot.slane %v1643_v35, 4  ;;  %v1665_v29 = vrot.slane %v1664_v42, 4 }
 0x146   :  { %v1671_v19 = vsel %vm1194_vm0, %v1134_v33, 0.0  ;;  %v1638_v26 = vadd.f32 %v1637_v61, %v1636_v50  ;;  %v1631_v45 = vadd.f32 %v1630_v53, %v1629_v47  ;;  %v1692_v38 = vsel %vm1194_vm0, %v1137_v62, 0.0  ;;  %v3919_v47 = vpop.permute.xlu0 %749 }
 0x147   :  { %1022 = vbcast.lane.b32.xlu1 %v1020_v25, 256  ;;  %v971_v37 = vrot.slane %v3780_v49, %v5208_v59  ;;  %v1606_v36 = vrot.slane %v3904_v8, 1  ;;  %v1658_v34 = vrot.slane %v1657_v1, 4  ;;  %v1679_v55 = vrot.slane %v1678_v14, 4 }
 0x148   :  { %v1136_v13 = vmul.f32 %v3817_v10, %v96_v12  ;;  %v1626_v31 = vadd.f32 %v1625_v2, %v1624_v52  ;;  %v1652_v51 = vadd.f32 %v1651_v15, %v1650_v48  ;;  %v1672_v33 = vrot.slane %v1671_v19, 4  ;;  %v98_v10 = vld [vmem:[#allocation2 + $0x120] sm:$0xf] }
 0x149   :  { %v1139_v50 = vmul.f32 %v3826_v32, %v99_v30  ;;  %973 = vbcast.lane.b32.xlu0 %v971_v37, 256  ;;  %v1645_v61 = vadd.f32 %v1644_v5, %v1643_v35  ;;  %v1666_v53 = vadd.f32 %v1665_v29, %v1664_v42  ;;  %v1693_v62 = vrot.slane %v1692_v38, 4  ;;  %v5210_v32 = vld [vmem:[#allocation9_spill] sm:$0xff]  ;;  %v3929_v5 = vpop.permute.xlu1 %770 }
 0x14a   :  { %v915_v25 = vrot.slane %v3754_v44, %v5208_v59  ;;  %v3923_v63 = vadd.f32 %v1613_v46, %v1612_v57  ;;  %v1619_v40 = vadd.f32 %v1618_v6, %v1617_v27  ;;  %v1639_v22 = vrot.slane %v1638_v26, 2  ;;  %v3934_v37 = vpop.permute.xlu0 %763 }
 0x14b   :  { %v1632_v18 = vrot.slane %v1631_v45, 2  ;;  %v1659_v52 = vadd.f32 %v1658_v34, %v1657_v1  ;;  %v1680_v48 = vadd.f32 %v1679_v55, %v1678_v14  ;;  %v1685_v2 = vsel %vm1194_vm0, %v1136_v13, 0.0 }
 0x14c   :  { %5209 = vst [vmem:[#allocation8_spill] sm:$0xff] %v3923_v63  ;;  %917 = vbcast.lane.b32.xlu1 %v915_v25, 256  ;;  %v901_v15 = vrot.slane %v3754_v44, %v5210_v32  ;;  %v1653_v35 = vrot.slane %v1652_v51, 2  ;;  %v1673_v42 = vadd.f32 %v1672_v33, %v1671_v19  ;;  %v1706_v12 = vsel %vm1194_vm0, %v1139_v50, 0.0 }
 0x14d   :  { %v1027_v27 = vrot.slane %v3797_v17, %v5208_v59  ;;  %v1646_v57 = vrot.slane %v1645_v61, 2  ;;  %v1667_v6 = vrot.slane %v1666_v53, 2  ;;  %v1694_v46 = vadd.f32 %v1693_v62, %v1692_v38  ;;  %v5211_v38 = vld [vmem:[#allocation10_spill] sm:$0xff] }
 0x14e   :  { %v1138_v1 = vmul.f32 %v3831_v23, %v98_v10  ;;  %903 = vbcast.lane.b32.xlu0 %v901_v15, 256  ;;  %v1627_v14 = vrot.slane %v1626_v31, 1  ;;  %v1620_v29 = vrot.slane %v1619_v40, 1  ;;  %v1686_v30 = vrot.slane %v1685_v2, 4 }
 0x14f   :  { %v957_v19 = vrot.slane %v3780_v49, %v5210_v32  ;;  %v1640_v34 = vadd.f32 %v1639_v22, %v1638_v26  ;;  %v1660_v55 = vrot.slane %v1659_v52, 2  ;;  %v1681_v13 = vrot.slane %v1680_v48, 2 }
 0x150   :  { %v1707_v33 = vrot.slane %v1706_v12, 4  ;;  %1029 = vbcast.lane.b32.xlu1 %v1027_v27, 256  ;;  %v1633_v59 = vadd.f32 %v1632_v18, %v1631_v45  ;;  %v1654_v50 = vadd.f32 %v1653_v35, %v1652_v51  ;;  %v1674_v25 = vrot.slane %v1673_v42, 2  ;;  %v3948_v18 = vpop.permute.xlu1 %784 }
 0x151   :  { %v922_v23 = vrot.slane %v3754_v44, %v5211_v38  ;;  %v1647_v62 = vadd.f32 %v1646_v57, %v1645_v61  ;;  %v1668_v10 = vadd.f32 %v1667_v6, %v1666_v53  ;;  %v1695_v15 = vrot.slane %v1694_v46, 2  ;;  %v101_v61 = vld [vmem:[#allocation2 + $0x12c] sm:$0xf]  ;;  %v100_v53 = vld [vmem:[#allocation2 + $0x128] sm:$0xf] }
 0x152   :  { %v1699_v63 = vsel %vm1194_vm0, %v1138_v1, 0.0  ;;  %959 = vbcast.lane.b32.xlu0 %v957_v19, 256  ;;  %v3942_v43 = vadd.f32 %v1606_v36, %v3904_v8  ;;  %v3944_v22 = vadd.f32 %v1627_v14, %v1626_v31  ;;  %v3946_v26 = vadd.f32 %v1620_v29, %v1619_v40  ;;  %v3950_v19 = vpop.permute.xlu0 %777 }
 0x153   :  { %v1687_v27 = vadd.f32 %v1686_v30, %v1685_v2  ;;  %v1641_v51 = vrot.slane %v1640_v34, 1  ;;  %v1661_v45 = vadd.f32 %v1660_v55, %v1659_v52  ;;  %v1682_v35 = vadd.f32 %v1681_v13, %v1680_v48 }
 0x154   :  { %5212 = vst [vmem:[#allocation9_spill] sm:$0xff] %v3944_v22  ;;  %v1708_v58 = vadd.f32 %v1707_v33, %v1706_v12  ;;  %924 = vbcast.lane.b32.xlu1 %v922_v23, 256  ;;  %v1634_v57 = vrot.slane %v1633_v59, 1  ;;  %v1675_v6 = vadd.f32 %v1674_v25, %v1673_v42  ;;  %v1700_v1 = vrot.slane %v1699_v63, 4  ;;  %v103_v25 = vld [vmem:[#allocation2 + $0x134] sm:$0xf] }
 0x155   :  { %v1013_v31 = vrot.slane %v3797_v17, %v5210_v32  ;;  %v1655_v40 = vrot.slane %v1654_v50, 1  ;;  %v1648_v8 = vrot.slane %v1647_v62, 1  ;;  %v1669_v36 = vrot.slane %v1668_v10, 1 }
 0x156   :  { %v1696_v2 = vadd.f32 %v1695_v15, %v1694_v46  ;;  %v1688_v14 = vrot.slane %v1687_v27, 2  ;;  %v1141_v52 = vmul.f32 %v3835_v4, %v101_v61  ;;  %v1140_v48 = vmul.f32 %v3842_v20, %v100_v53  ;;  %v3962_v46 = vpop.permute.xlu1 %798  ;;  %v5215_v4 = vld [vmem:[#allocation13_spill] sm:$0xff]  ;;  %v102_v61 = vld [vmem:[#allocation2 + $0x130] sm:$0xf] }
 0x157   :  { %1015 = vbcast.lane.b32.xlu0 %v1013_v31, 256  ;;  %v978_v12 = vrot.slane %v3780_v49, %v5211_v38  ;;  %v3958_v42 = vadd.f32 %v1641_v51, %v1640_v34  ;;  %v1662_v29 = vrot.slane %v1661_v45, 1  ;;  %v1683_v30 = vrot.slane %v1682_v35, 1 }
 0x158   :  { %v1709_v55 = vrot.slane %v1708_v58, 2  ;;  %v3960_v13 = vadd.f32 %v1634_v57, %v1633_v59  ;;  %v1676_v32 = vrot.slane %v1675_v6, 1  ;;  %v1701_v33 = vadd.f32 %v1700_v1, %v1699_v63  ;;  %v105_v57 = vld [vmem:[#allocation2 + $0x13c] sm:$0xf]  ;;  %v3974_v1 = vpop.permute.xlu0 %791 }
 0x159   :  { %5213 = vst [vmem:[#allocation10_spill] sm:$0xff] %v3958_v42  ;;  %980 = vbcast.lane.b32.xlu1 %v978_v12, 256  ;;  %v929_v20 = vrot.slane %v3754_v44, %v5215_v4  ;;  %v3966_v23 = vadd.f32 %v1655_v40, %v1654_v50  ;;  %v3968_v15 = vadd.f32 %v1648_v8, %v1647_v62  ;;  %v1697_v51 = vrot.slane %v1696_v2, 1  ;;  %v104_v8 = vld [vmem:[#allocation2 + $0x138] sm:$0xf] }
 0x15a   :  { %5214 = vst [vmem:[#allocation66_spill] sm:$0xff] %v3960_v13  ;;  %v3970_v34 = vadd.f32 %v1669_v36, %v1668_v10  ;;  %v1689_v53 = vadd.f32 %v1688_v14, %v1687_v27  ;;  %v1720_v59 = vsel %vm1194_vm0, %v1141_v52, 0.0  ;;  %v1713_v63 = vsel %vm1194_vm0, %v1140_v48, 0.0  ;;  %v107_v52 = vld [vmem:[#allocation2 + $0x144] sm:$0xf] }
 0x15b   :  { %5216 = vst [vmem:[#allocation13_spill] sm:$0xff] %v3966_v23  ;;  %5217 = vst [vmem:[#allocation67_spill] sm:$0xff] %v3968_v15  ;;  %931 = vbcast.lane.b32.xlu0 %v929_v20, 256  ;;  %v1034_v31 = vrot.slane %v3797_v17, %v5211_v38  ;;  %v3978_v50 = vadd.f32 %v1662_v29, %v1661_v45  ;;  %v3980_v62 = vadd.f32 %v1683_v30, %v1682_v35  ;;  %v106_v48 = vld [vmem:[#allocation2 + $0x140] sm:$0xf] }
 0x15c   :  { %5218 = vst [vmem:[#allocation68_spill] sm:$0xff] %v3970_v34  ;;  %v1710_v10 = vadd.f32 %v1709_v55, %v1708_v58  ;;  %v1143_v40 = vmul.f32 %v3850_v7, %v103_v25  ;;  %v3983_v27 = vadd.f32 %v1676_v32, %v1675_v6  ;;  %v1702_v36 = vrot.slane %v1701_v33, 2  ;;  %v109_v29 = vld [vmem:[#allocation2 + $0x14c] sm:$0xf]  ;;  %v108_v58 = vld [vmem:[#allocation2 + $0x148] sm:$0xf]  ;;  %v3994_v55 = vpop.permute.xlu1 %812 }
 0x15d   :  { %5219 = vst [vmem:[#allocation69_spill] sm:$0xff] %v3978_v50  ;;  %5220 = vst [vmem:[#allocation70_spill] sm:$0xff] %v3980_v62  ;;  %v1142_v14 = vmul.f32 %v3852_v3, %v102_v61  ;;  %1036 = vbcast.lane.b32.xlu1 %v1034_v31, 256  ;;  %v1041_v12 = vrot.slane %v3797_v17, %v5215_v4  ;;  %v1721_v38 = vrot.slane %v1720_v59, 4  ;;  %v1714_v45 = vrot.slane %v1713_v63, 4  ;;  %v5223_v32 = vld [vmem:[#allocation12_spill] sm:$0xff] }
 0x15e   :  { %5221 = vst [vmem:[#allocation71_spill] sm:$0xff] %v3983_v27  ;;  %v1145_v35 = vmul.f32 %v3867_v28, %v105_v57  ;;  %v985_v7 = vrot.slane %v3780_v49, %v5215_v4  ;;  %v3991_v6 = vadd.f32 %v1697_v51, %v1696_v2  ;;  %v1690_v30 = vrot.slane %v1689_v53, 1  ;;  %v111_v31 = vld [vmem:[#allocation2 + $0x154] sm:$0xf]  ;;  %v4004_v51 = vpop.permute.xlu0 %805  ;;  %v112_v15 = vld [vmem:[#allocation2 + $0x158] sm:$0xf] }
 0x15f   :  { %v1144_v3 = vmul.f32 %v3874_v41, %v104_v8  ;;  %1043 = vbcast.lane.b32.xlu0 %v1041_v12, 256  ;;  %v992_v25 = vrot.slane %v3780_v49, %v5223_v32  ;;  %v1711_v20 = vrot.slane %v1710_v10, 1  ;;  %v1734_v61 = vsel %vm1194_vm0, %v1143_v40, 0.0 }
 0x160   :  { %5222 = vst [vmem:[#allocation72_spill] sm:$0xff] %v3991_v6  ;;  %v1147_v28 = vmul.f32 %v3891_v24, %v107_v52  ;;  %v1146_v57 = vmul.f32 %v3900_v56, %v106_v48  ;;  %v1727_v2 = vsel %vm1194_vm0, %v1142_v14, 0.0  ;;  %v1149_v4 = vmul.f32 %v3912_v54, %v109_v29  ;;  %v110_v54 = vld [vmem:[#allocation2 + $0x150] sm:$0xf]  ;;  %v5225_v48 = vld [vmem:[#allocation15_spill] sm:$0xff] }
 0x161   :  { %v1148_v41 = vmul.f32 %v3919_v47, %v108_v58  ;;  %987 = vbcast.lane.b32.xlu1 %v985_v7, 256  ;;  %v936_v8 = vrot.slane %v3754_v44, %v5223_v32  ;;  %v1703_v12 = vadd.f32 %v1702_v36, %v1701_v33  ;;  %v1722_v6 = vadd.f32 %v1721_v38, %v1720_v59  ;;  %v3002_v47 = vld [vmem:[%s5077_s1 + $0x60] sm:$0xff]  ;;  %s3054_s1 = smov [#allocation5]  }
 0x162   :  { %v1715_v40 = vadd.f32 %v1714_v45, %v1713_v63  ;;  %v1748_v24 = vsel %vm1194_vm0, %v1145_v35, 0.0  ;;  %v4009_v52 = vadd.f32 %v1690_v30, %v1689_v53  ;;  %v1741_v56 = vsel %vm1194_vm0, %v1144_v3, 0.0  ;;  %s2952_s27 = sshll.u32 %s3054_s1, 4  ;;  %s2953_s27 = int_to_ptr.vmem [resolvable:$true] %s2952_s27 }
 0x163   :  { %v1151_v14 = vmul.f32 %v3929_v5, %v111_v31  ;;  %994 = vbcast.lane.b32.xlu0 %v992_v25, 256  ;;  %v887_v29 = vrot.slane %v3002_v47, %v5225_v48  ;;  %v1735_v58 = vrot.slane %v1734_v61, 4  ;;  %v1728_v33 = vrot.slane %v1727_v2, 4  ;;  %v4021_v5 = vpop.permute.xlu1 %826  ;;  %v113_v31 = vld [vmem:[#allocation2 + $0x15c] sm:$0xf]  ;;  %s3025_s28 = scalar_lea.vmem %s2953_s27, 2048  ;;  %p3030_p9 = scmp.lt.s32.totalorder %s2953_s27, %s2953_s27 }
 0x164   :  { %5224 = vst [vmem:[#allocation12_spill] sm:$0xff] %v4009_v52  ;;  %v1762_v59 = vsel %vm1194_vm0, %v1147_v28, 0.0  ;;  %v1755_v63 = vsel %vm1194_vm0, %v1146_v57, 0.0  ;;  %v1749_v53 = vrot.slane %v1748_v24, 4  ;;  %v1776_v36 = vsel %vm1194_vm0, %v1149_v4, 0.0  ;;  %v4029_v4 = vpop.permute.xlu0 %819  ;;  %p3026_p8 = scmp.ne.s32.totalorder %s2953_s27, %s3025_s28  ;;  %p3031_p10 = scmp.lt.s32.totalorder %s3025_s28, %s3025_s28 }
 0x165   :  { %v1769_v38 = vsel %vm1194_vm0, %v1148_v41, 0.0  ;;  %938 = vbcast.lane.b32.xlu1 %v936_v8, 256  ;;  %v1048_v45 = vrot.slane %v3797_v17, %v5223_v32  ;;  %v4025_v35 = vadd.f32 %v1711_v20, %v1710_v10  ;;  %v1704_v7 = vrot.slane %v1703_v12, 1 }
 0x166   :  { %v1742_v30 = vrot.slane %v1741_v56, 4  ;;  %v1150_v3 = vmul.f32 %v3934_v37, %v110_v54  ;;  %v1763_v25 = vrot.slane %v1762_v59, 4  ;;  %v1756_v28 = vrot.slane %v1755_v63, 4  ;;  %p3032_p11 = por %p3031_p10, %p3030_p9 }
 0x167   :  { %5226 = vst [vmem:[#allocation15_spill] sm:$0xff] %v4025_v35  ;;  %v1790_v57 = vsel %vm1194_vm0, %v1151_v14, 0.0  ;;  %889 = vbcast.lane.b32.xlu0 %v887_v29, 256  ;;  %v999_v41 = vrot.slane %v3780_v49, %v5225_v48  ;;  %v1736_v8 = vadd.f32 %v1735_v58, %v1734_v61  ;;  %v1729_v52 = vadd.f32 %v1728_v33, %v1727_v2  ;;  %v4039_v2 = vpop.permute.xlu1 %840  ;;  %v5228_v58 = vld [vmem:[#allocation14_spill] sm:$0xff] }
 0x168   :  { %v1777_v32 = vrot.slane %v1776_v36, 4  ;;  %v1770_v10 = vrot.slane %v1769_v38, 4  ;;  %v1723_v20 = vrot.slane %v1722_v6, 2  ;;  %v1716_v35 = vrot.slane %v1715_v40, 2  ;;  %p3033_p12 = pnand %p3032_p11, %p3026_p8 }
 0x169   :  { %v1750_v62 = vadd.f32 %v1749_v53, %v1748_v24  ;;  %1050 = vbcast.lane.b32.xlu1 %v1048_v45, 256  ;;  %v943_v37 = vrot.slane %v3754_v44, %v5225_v48  ;;  %v1743_v54 = vadd.f32 %v1742_v30, %v1741_v56  ;;  %v1791_v14 = vrot.slane %v1790_v57, 4 }
 0x16a   :  { %v1783_v27 = vsel %vm1194_vm0, %v1150_v3, 0.0  ;;  %v1153_v29 = vmul.f32 %v3948_v18, %v113_v31  ;;  %v4037_v34 = vadd.f32 %v1704_v7, %v1703_v12  ;;  %v1764_v50 = vadd.f32 %v1763_v25, %v1762_v59  ;;  %v4042_v3 = vpop.permute.xlu0 %833 }
 0x16b   :  { %v1757_v61 = vadd.f32 %v1756_v28, %v1755_v63  ;;  %1001 = vbcast.lane.b32.xlu0 %v999_v41, 256  ;;  %v894_v33 = vrot.slane %v3002_v47, %v5228_v58  ;;  %v1737_v24 = vrot.slane %v1736_v8, 2  ;;  %v1730_v53 = vrot.slane %v1729_v52, 2 }
 0x16c   :  { %5227 = vst [vmem:[#allocation73_spill] sm:$0xff] %v4037_v34  ;;  %v1778_v45 = vadd.f32 %v1777_v32, %v1776_v36  ;;  %v1771_v23 = vadd.f32 %v1770_v10, %v1769_v38  ;;  %v1724_v56 = vadd.f32 %v1723_v20, %v1722_v6  ;;  %v1717_v30 = vadd.f32 %v1716_v35, %v1715_v40  ;;  %v115_v38 = vld [vmem:[#allocation2 + $0x164] sm:$0xf]  ;;  %v4050_v10 = vpop.permute.xlu1 %854 }
 0x16d   :  { %v1784_v42 = vrot.slane %v1783_v27, 4  ;;  %945 = vbcast.lane.b32.xlu1 %v943_v37, 256  ;;  %v1055_v18 = vrot.slane %v3797_v17, %v5225_v48  ;;  %v1751_v12 = vrot.slane %v1750_v62, 2  ;;  %v1744_v59 = vrot.slane %v1743_v54, 2 }
 0x16e   :  { %v1792_v63 = vadd.f32 %v1791_v14, %v1790_v57  ;;  %v1804_v7 = vsel %vm1194_vm0, %v1153_v29, 0.0  ;;  %v1765_v47 = vrot.slane %v1764_v50, 2  ;;  %v1758_v25 = vrot.slane %v1757_v61, 2  ;;  %v114_v14 = vld [vmem:[#allocation2 + $0x160] sm:$0xf] }
 0x16f   :  { %v1152_v36 = vmul.f32 %v3950_v19, %v112_v15  ;;  %896 = vbcast.lane.b32.xlu0 %v894_v33, 256  ;;  %v1006_v6 = vrot.slane %v3780_v49, %v5228_v58  ;;  %v1738_v40 = vadd.f32 %v1737_v24, %v1736_v8  ;;  %v1731_v35 = vadd.f32 %v1730_v53, %v1729_v52  ;;  %v4056_v33 = vpop.permute.xlu0 %847 }
 0x170   :  { %v1779_v28 = vrot.slane %v1778_v45, 2  ;;  %v1772_v31 = vrot.slane %v1771_v23, 2  ;;  %v1725_v41 = vrot.slane %v1724_v56, 1  ;;  %v1785_v48 = vadd.f32 %v1784_v42, %v1783_v27 }
 0x171   :  { %v1805_v32 = vrot.slane %v1804_v7, 4  ;;  %1057 = vbcast.lane.b32.xlu1 %v1055_v18, 256  ;;  %v950_v57 = vrot.slane %v3754_v44, %v5228_v58  ;;  %v1718_v20 = vrot.slane %v1717_v30, 1  ;;  %v1752_v19 = vadd.f32 %v1751_v12, %v1750_v62 }
 0x172   :  { %v1793_v15 = vrot.slane %v1792_v63, 2  ;;  %v1155_v37 = vmul.f32 %v3962_v46, %v115_v38  ;;  %v1745_v49 = vadd.f32 %v1744_v59, %v1743_v54  ;;  %v1766_v8 = vadd.f32 %v1765_v47, %v1764_v50 }
 0x173   :  { %v1759_v52 = vadd.f32 %v1758_v25, %v1757_v61  ;;  %v1797_v29 = vsel %vm1194_vm0, %v1152_v36, 0.0  ;;  %1008 = vbcast.lane.b32.xlu0 %v1006_v6, 256  ;;  %v1739_v42 = vrot.slane %v1738_v40, 1  ;;  %v1732_v27 = vrot.slane %v1731_v35, 1  ;;  %v117_v6 = vld [vmem:[#allocation2 + $0x16c] sm:$0xf] }
 0x174   :  { %v1780_v24 = vadd.f32 %v1779_v28, %v1778_v45  ;;  %v1773_v53 = vadd.f32 %v1772_v31, %v1771_v23  ;;  %v1786_v18 = vrot.slane %v1785_v48, 2  ;;  %v1806_v44 = vadd.f32 %v1805_v32, %v1804_v7  ;;  %v869_v45 = vpop.permute.xlu1 %868  ;;  %v116_v31 = vld [vmem:[#allocation2 + $0x168] sm:$0xf]  ;;  %v862_v32 = vpop.permute.xlu0 %861 }
 0x175   :  { %v1154_v62 = vmul.f32 %v3974_v1, %v114_v14  ;;  %952 = vbcast.lane.b32.xlu1 %v950_v57, 256  ;;  %v1062_v46 = vrot.slane %v3797_v17, %v5228_v58  ;;  %v1753_v54 = vrot.slane %v1752_v19, 1  ;;  %v1794_v50 = vadd.f32 %v1793_v15, %v1792_v63 }
 0x176   :  { %v1798_v61 = vrot.slane %v1797_v29, 4  ;;  %v1818_v12 = vsel %vm1194_vm0, %v1155_v37, 0.0  ;;  %v4062_v59 = vadd.f32 %v1725_v41, %v1724_v56  ;;  %v1746_v47 = vrot.slane %v1745_v49, 1 }
 0x177   :  { %v1767_v25 = vrot.slane %v1766_v8, 1  ;;  %v1760_v36 = vrot.slane %v1759_v52, 1  ;;  %v4064_v23 = vadd.f32 %v1718_v20, %v1717_v30  ;;  %v4066_v7 = vadd.f32 %v1739_v42, %v1738_v40  ;;  %v119_v20 = vld [vmem:[#allocation2 + $0x174] sm:$0xf]  ;;  %v118_v40 = vld [vmem:[#allocation2 + $0x170] sm:$0xf] }
 0x178   :  { %5229 = vst [vmem:[#allocation14_spill] sm:$0xff] %v4062_v59  ;;  %v1781_v1 = vrot.slane %v1780_v24, 1  ;;  %v1774_v38 = vrot.slane %v1773_v53, 1  ;;  %v1787_v28 = vadd.f32 %v1786_v18, %v1785_v48  ;;  %v1807_v17 = vrot.slane %v1806_v44, 2  ;;  %v121_v42 = vld [vmem:[#allocation2 + $0x17c] sm:$0xf] }
 0x179   :  { %5230 = vst [vmem:[#allocation74_spill] sm:$0xff] %v4064_v23  ;;  %5231 = vst [vmem:[#allocation75_spill] sm:$0xff] %v4066_v7  ;;  %v1819_v58 = vrot.slane %v1818_v12, 4  ;;  %v1811_v63 = vsel %vm1194_vm0, %v1154_v62, 0.0  ;;  %1064 = vbcast.lane.b32.xlu1 %v1062_v46, 256  ;;  %v4069_v56 = vadd.f32 %v1732_v27, %v1731_v35  ;;  %v4071_v41 = vadd.f32 %v1753_v54, %v1752_v19 }
 0x17a   :  { %v1795_v57 = vrot.slane %v1794_v50, 1  ;;  %v1799_v30 = vadd.f32 %v1798_v61, %v1797_v29  ;;  %v4073_v15 = vadd.f32 %v1746_v47, %v1745_v49  ;;  %v4075_v37 = vadd.f32 %v1767_v25, %v1766_v8  ;;  %v120_v18 = vld [vmem:[#allocation2 + $0x178] sm:$0xf]  ;;  %v123_v62 = vld [vmem:[#allocation2 + $0x184] sm:$0xf]  ;;  %v883_v25 = vpop.permute.xlu1 %882 }
 0x17b   :  { %5232 = vst [vmem:[#allocation76_spill] sm:$0xff] %v4069_v56  ;;  %5233 = vst [vmem:[#allocation77_spill] sm:$0xff] %v4071_v41  ;;  %v4077_v48 = vadd.f32 %v1760_v36, %v1759_v52  ;;  %v1157_v14 = vmul.f32 %v3994_v55, %v117_v6  ;;  %v4080_v46 = vadd.f32 %v1781_v1, %v1780_v24  ;;  %v1812_v19 = vrot.slane %v1811_v63, 4  ;;  %v122_v27 = vld [vmem:[#allocation2 + $0x180] sm:$0xf] }
 0x17c   :  { %5234 = vst [vmem:[#allocation78_spill] sm:$0xff] %v4073_v15  ;;  %5235 = vst [vmem:[#allocation79_spill] sm:$0xff] %v4075_v37  ;;  %v4082_v35 = vadd.f32 %v1774_v38, %v1773_v53  ;;  %v1156_v29 = vmul.f32 %v4004_v51, %v116_v31  ;;  %v125_v54 = vld [vmem:[#allocation2 + $0x18c] sm:$0xf]  ;;  %v1788_v49 = vrot.slane %v1787_v28, 1  ;;  %v1808_v61 = vadd.f32 %v1807_v17, %v1806_v44 }
 0x17d   :  { %5236 = vst [vmem:[#allocation80_spill] sm:$0xff] %v4077_v48  ;;  %5237 = vst [vmem:[#allocation81_spill] sm:$0xff] %v4080_v46  ;;  %v1820_v8 = vadd.f32 %v1819_v58, %v1818_v12  ;;  %v1159_v52 = vmul.f32 %v4021_v5, %v119_v20  ;;  %v124_v47 = vld [vmem:[#allocation2 + $0x188] sm:$0xf]  ;;  %v127_v55 = vld [vmem:[#allocation2 + $0x194] sm:$0xf]  ;;  %v4086_v36 = vadd.f32 %v1795_v57, %v1794_v50  ;;  %v876_v12 = vpop.permute.xlu0 %875 }
 0x17e   :  { %5238 = vst [vmem:[#allocation82_spill] sm:$0xff] %v4082_v35  ;;  %v1800_v6 = vrot.slane %v1799_v30, 2  ;;  %v1158_v24 = vmul.f32 %v4029_v4, %v118_v40  ;;  %v1161_v53 = vmul.f32 %v4039_v2, %v121_v42  ;;  %v1832_v1 = vsel %vm1194_vm0, %v1157_v14, 0.0  ;;  %v126_v5 = vld [vmem:[#allocation2 + $0x190] sm:$0xf] }
 0x17f   :  { %5239 = vst [vmem:[#allocation83_spill] sm:$0xff] %v4086_v36  ;;  %v1160_v51 = vmul.f32 %v4042_v3, %v120_v18  ;;  %v1163_v38 = vmul.f32 %v4050_v10, %v123_v62  ;;  %v1162_v44 = vmul.f32 %v4056_v33, %v122_v27  ;;  %v1825_v17 = vsel %vm1194_vm0, %v1156_v29, 0.0 }
 0x180   :  { %v1165_v58 = vmul.f32 %v869_v45, %v125_v54  ;;  %v1164_v50 = vmul.f32 %v862_v32, %v124_v47  ;;  %v1167_v31 = vmul.f32 %v883_v25, %v127_v55  ;;  %v4095_v57 = vadd.f32 %v1788_v49, %v1787_v28 }
 0x181   :  { %v1821_v4 = vrot.slane %v1820_v8, 2  ;;  %v1813_v20 = vadd.f32 %v1812_v19, %v1811_v63  ;;  %v1846_v2 = vsel %vm1194_vm0, %v1159_v52, 0.0  ;;  %v1833_v40 = vrot.slane %v1832_v1, 4 }
 0x182   :  { %5240 = vst [vmem:[#allocation84_spill] sm:$0xff] %v4095_v57  ;;  %v1839_v3 = vsel %vm1194_vm0, %v1158_v24, 0.0  ;;  %v1860_v10 = vsel %vm1194_vm0, %v1161_v53, 0.0  ;;  %v1166_v14 = vmul.f32 %v876_v12, %v126_v5  ;;  %v1826_v33 = vrot.slane %v1825_v17, 4 }
 0x183   :  { %v1853_v42 = vsel %vm1194_vm0, %v1160_v51, 0.0  ;;  %v1874_v18 = vsel %vm1194_vm0, %v1163_v38, 0.0  ;;  %v1867_v45 = vsel %vm1194_vm0, %v1162_v44, 0.0  ;;  %v1847_v32 = vrot.slane %v1846_v2, 4 }
 0x184   :  { %v1888_v28 = vsel %vm1194_vm0, %v1165_v58, 0.0  ;;  %v1881_v63 = vsel %vm1194_vm0, %v1164_v50, 0.0  ;;  %v1902_v62 = vsel %vm1194_vm0, %v1167_v31, 0.0  ;;  %v1801_v19 = vadd.f32 %v1800_v6, %v1799_v30 }
 0x185   :  { %v1814_v29 = vrot.slane %v1813_v20, 2  ;;  %v1840_v27 = vrot.slane %v1839_v3, 4  ;;  %v1861_v54 = vrot.slane %v1860_v10, 4  ;;  %v1854_v49 = vrot.slane %v1853_v42, 4 }
 0x186   :  { %v1875_v52 = vrot.slane %v1874_v18, 4  ;;  %v1868_v47 = vrot.slane %v1867_v45, 4  ;;  %v1895_v25 = vsel %vm1194_vm0, %v1166_v14, 0.0  ;;  %v1809_v55 = vrot.slane %v1808_v61, 1 }
 0x187   :  { %v1889_v24 = vrot.slane %v1888_v28, 4  ;;  %v1882_v53 = vrot.slane %v1881_v63, 4  ;;  %v1903_v51 = vrot.slane %v1902_v62, 4  ;;  %v1822_v38 = vadd.f32 %v1821_v4, %v1820_v8 }
 0x188   :  { %v1834_v44 = vadd.f32 %v1833_v40, %v1832_v1  ;;  %v1827_v12 = vadd.f32 %v1826_v33, %v1825_v17  ;;  %v1848_v5 = vadd.f32 %v1847_v32, %v1846_v2  ;;  %v1802_v58 = vrot.slane %v1801_v19, 1 }
 0x189   :  { %v1841_v50 = vadd.f32 %v1840_v27, %v1839_v3  ;;  %v1862_v31 = vadd.f32 %v1861_v54, %v1860_v10  ;;  %v1896_v30 = vrot.slane %v1895_v25, 4  ;;  %v1815_v6 = vadd.f32 %v1814_v29, %v1813_v20 }
 0x18a   :  { %v1855_v36 = vadd.f32 %v1854_v49, %v1853_v42  ;;  %v1876_v57 = vadd.f32 %v1875_v52, %v1874_v18  ;;  %v1869_v46 = vadd.f32 %v1868_v47, %v1867_v45  ;;  %v4107_v35 = vadd.f32 %v1809_v55, %v1808_v61 }
 0x18b   :  { %v1890_v37 = vadd.f32 %v1889_v24, %v1888_v28  ;;  %v1883_v14 = vadd.f32 %v1882_v53, %v1881_v63  ;;  %v1904_v48 = vadd.f32 %v1903_v51, %v1902_v62  ;;  %v1823_v41 = vrot.slane %v1822_v38, 1 }
 0x18c   :  { %5241 = vst [vmem:[#allocation85_spill] sm:$0xff] %v4107_v35  ;;  %v1835_v15 = vrot.slane %v1834_v44, 2  ;;  %v1828_v7 = vrot.slane %v1827_v12, 2  ;;  %v1849_v8 = vrot.slane %v1848_v5, 2  ;;  %v4109_v1 = vadd.f32 %v1802_v58, %v1801_v19 }
 0x18d   :  { %v1842_v17 = vrot.slane %v1841_v50, 2  ;;  %v1863_v4 = vrot.slane %v1862_v31, 2  ;;  %v1897_v2 = vadd.f32 %v1896_v30, %v1895_v25  ;;  %v1816_v40 = vrot.slane %v1815_v6, 1 }
 0x18e   :  { %5242 = vst [vmem:[#allocation86_spill] sm:$0xff] %v4109_v1  ;;  %v1856_v3 = vrot.slane %v1855_v36, 2  ;;  %v1877_v20 = vrot.slane %v1876_v57, 2  ;;  %v1870_v10 = vrot.slane %v1869_v46, 2  ;;  %v1891_v42 = vrot.slane %v1890_v37, 2 }
 0x18f   :  { %v1884_v61 = vrot.slane %v1883_v14, 2  ;;  %v1905_v18 = vrot.slane %v1904_v48, 2  ;;  %v4111_v32 = vadd.f32 %v1823_v41, %v1822_v38  ;;  %v1836_v28 = vadd.f32 %v1835_v15, %v1834_v44 }
 0x190   :  { %v2094_v33 = vpop.xlane.xlu0 %2093  ;;  %v1829_v63 = vadd.f32 %v1828_v7, %v1827_v12  ;;  %v1850_v62 = vadd.f32 %v1849_v8, %v1848_v5  ;;  %v1843_v29 = vadd.f32 %v1842_v17, %v1841_v50  ;;  %v1864_v19 = vadd.f32 %v1863_v4, %v1862_v31 }
 0x191   :  { %v2140_v45 = vmax.f32 %v2094_v33, 1.0  ;;  %5243 = vst [vmem:[#allocation87_spill] sm:$0xff] %v4111_v32  ;;  %v1898_v27 = vrot.slane %v1897_v2, 2  ;;  %v4113_v54 = vadd.f32 %v1816_v40, %v1815_v6  ;;  %v1857_v49 = vadd.f32 %v1856_v3, %v1855_v36  ;;  %v148_v32 = vld [vmem:[#allocation2 + $0x1e8] sm:$0xf] }
 0x192   :  { %v1878_v52 = vadd.f32 %v1877_v20, %v1876_v57  ;;  %v1871_v47 = vadd.f32 %v1870_v10, %v1869_v46  ;;  %v1892_v55 = vadd.f32 %v1891_v42, %v1890_v37  ;;  %v1885_v24 = vadd.f32 %v1884_v61, %v1883_v14 }
 0x193   :  { %2970 = vrcp.f32 %v2140_v45  ;;  %5244 = vst [vmem:[#allocation88_spill] sm:$0xff] %v4113_v54  ;;  %v1906_v53 = vadd.f32 %v1905_v18, %v1904_v48  ;;  %v1837_v41 = vrot.slane %v1836_v28, 1  ;;  %v1830_v38 = vrot.slane %v1829_v63, 1 }
 0x194   :  { %v2100_v25 = vpop.xlane.xlu0 %2099  ;;  %v2097_v58 = vpop.xlane.xlu1 %2096  ;;  %v1851_v15 = vrot.slane %v1850_v62, 1  ;;  %v1844_v44 = vrot.slane %v1843_v29, 1  ;;  %v1865_v12 = vrot.slane %v1864_v19, 1  ;;  %v1899_v5 = vadd.f32 %v1898_v27, %v1897_v2 }
 0x195   :  { %v2142_v51 = vmax.f32 %v2100_v25, 1.0  ;;  %v2141_v7 = vmax.f32 %v2097_v58, 1.0  ;;  %v1858_v50 = vrot.slane %v1857_v49, 1  ;;  %v1879_v31 = vrot.slane %v1878_v52, 1 }
 0x196   :  { %v1872_v30 = vrot.slane %v1871_v47, 1  ;;  %v1893_v46 = vrot.slane %v1892_v55, 1  ;;  %v1886_v57 = vrot.slane %v1885_v24, 1  ;;  %v1907_v37 = vrot.slane %v1906_v53, 1 }
 0x197   :  { %2972 = vrcp.f32 %v2142_v51  ;;  %v4115_v14 = vadd.f32 %v1837_v41, %v1836_v28  ;;  %v4117_v8 = vadd.f32 %v1830_v38, %v1829_v63  ;;  %v4119_v17 = vadd.f32 %v1851_v15, %v1850_v62  ;;  %v5251_v51 = vld [vmem:[#allocation35_spill] sm:$0xff] }
 0x198   :  { %2974 = vrcp.f32 %v2141_v7  ;;  %v2103_v36 = vpop.xlane.xlu0 %2102  ;;  %v2106_v48 = vpop.xlane.xlu1 %2105  ;;  %v4121_v40 = vadd.f32 %v1844_v44, %v1843_v29  ;;  %v4123_v2 = vadd.f32 %v1865_v12, %v1864_v19  ;;  %v1900_v3 = vrot.slane %v1899_v5, 1  ;;  %v5253_v7 = vld [vmem:[#allocation37_spill] sm:$0xff]  ;;  %v5255_v12 = vld [vmem:[#allocation34_spill] sm:$0xff] }
 0x199   :  { %v2143_v6 = vmax.f32 %v2103_v36, 1.0  ;;  %5245 = vst [vmem:[#allocation89_spill] sm:$0xff] %v4115_v14  ;;  %5246 = vst [vmem:[#allocation90_spill] sm:$0xff] %v4117_v8  ;;  %v2144_v4 = vmax.f32 %v2106_v48, 1.0  ;;  %v4125_v20 = vadd.f32 %v1858_v50, %v1857_v49  ;;  %v4127_v10 = vadd.f32 %v1879_v31, %v1878_v52  ;;  %v5257_v50 = vld [vmem:[#allocation36_spill] sm:$0xff] }
 0x19a   :  { %5247 = vst [vmem:[#allocation91_spill] sm:$0xff] %v4119_v17  ;;  %5248 = vst [vmem:[#allocation92_spill] sm:$0xff] %v4121_v40  ;;  %v4129_v33 = vadd.f32 %v1872_v30, %v1871_v47  ;;  %v4133_v18 = vadd.f32 %v1893_v46, %v1892_v55  ;;  %v4135_v45 = vadd.f32 %v1886_v57, %v1885_v24  ;;  %v131_v57 = vld [vmem:[#allocation2 + $0x1a4] sm:$0xf]  ;;  %v130_v14 = vld [vmem:[#allocation2 + $0x1a0] sm:$0xf] }
 0x19b   :  { %5249 = vst [vmem:[#allocation93_spill] sm:$0xff] %v4123_v2  ;;  %2976 = vrcp.f32 %v2143_v6  ;;  %5250 = vst [vmem:[#allocation94_spill] sm:$0xff] %v4125_v20  ;;  %v4137_v28 = vadd.f32 %v1907_v37, %v1906_v53  ;;  %v4142_v52 = vadd.f32 %v1900_v3, %v1899_v5  ;;  %v5259_v37 = vld [vmem:[#allocation39_spill] sm:$0xff] }
 0x19c   :  { %2978 = vrcp.f32 %v2144_v4  ;;  %v2109_v42 = vpop.xlane.xlu0 %2108  ;;  %v2112_v62 = vpop.xlane.xlu1 %2111 }
 0x19d   :  { %v4131_v61 = vpop.eup %2970  ;;  %v2145_v63 = vmax.f32 %v2109_v42, 1.0  ;;  %v2146_v29 = vmax.f32 %v2112_v62, 1.0 }
 0x19e   :  { %v2188_v19 = vrot.slane %v4131_v61, 1  ;;  %v2189_v27 = vrot.slane %v4131_v61, 2  ;;  %v2190_v49 = vrot.slane %v4131_v61, 3  ;;  %v2191_v47 = vrot.slane %v4131_v61, 4 }
 0x19f   :  { %2980 = vrcp.f32 %v2145_v63  ;;  %v4150_v58 = vmul.f32 %v4131_v61, %v5251_v51 }
 0x1a0   :  { %2982 = vrcp.f32 %v2146_v29  ;;  %v2115_v55 = vpop.xlane.xlu0 %2114  ;;  %v2118_v15 = vpop.xlane.xlu1 %2117  ;;  %v4155_v44 = vmul.f32 %v2188_v19, %v5253_v7  ;;  %v4158_v5 = vmul.f32 %v2189_v27, %v5255_v12  ;;  %v4161_v31 = vmul.f32 %v2190_v49, %v5257_v50 }
 0x1a1   :  { %5252 = vst [vmem:[#allocation35_spill] sm:$0xff] %v4150_v58  ;;  %v4152_v41 = vpop.eup %2972  ;;  %v2147_v38 = vmax.f32 %v2115_v55, 1.0  ;;  %v2148_v36 = vmax.f32 %v2118_v15, 1.0  ;;  %v4168_v6 = vmul.f32 %v2191_v47, %v5259_v37 }
 0x1a2   :  { %5254 = vst [vmem:[#allocation37_spill] sm:$0xff] %v4155_v44  ;;  %5256 = vst [vmem:[#allocation34_spill] sm:$0xff] %v4158_v5  ;;  %v4163_v30 = vpop.eup %2974 }
 0x1a3   :  { %5258 = vst [vmem:[#allocation36_spill] sm:$0xff] %v4161_v31  ;;  %5260 = vst [vmem:[#allocation39_spill] sm:$0xff] %v4168_v6  ;;  %2984 = vrcp.f32 %v2147_v38 }
 0x1a4   :  { %2986 = vrcp.f32 %v2148_v36  ;;  %v2121_v42 = vpop.xlane.xlu0 %2120  ;;  %v2124_v49 = vpop.xlane.xlu1 %2123 }
 0x1a5   :  { %v4176_v19 = vpop.eup %2976  ;;  %v2149_v27 = vmax.f32 %v2121_v42, 1.0  ;;  %v2150_v15 = vmax.f32 %v2124_v49, 1.0  ;;  %v147_v49 = vld [vmem:[#allocation2 + $0x1e4] sm:$0xf] }
 0x1a6   :  { %v4181_v38 = vpop.eup %2978 }
 0x1a7   :  { %2988 = vrcp.f32 %v2149_v27 }
 0x1a8   :  { %2990 = vrcp.f32 %v2150_v15  ;;  %v2127_v3 = vpop.xlane.xlu0 %2126  ;;  %v2130_v46 = vpop.xlane.xlu1 %2129 }
 0x1a9   :  { %v4192_v7 = vpop.eup %2980  ;;  %v2151_v12 = vmax.f32 %v2127_v3, 1.0  ;;  %v2152_v15 = vmax.f32 %v2130_v46, 1.0 }
 0x1aa   :  { %v4197_v50 = vpop.eup %2982 }
 0x1ab   :  { %2992 = vrcp.f32 %v2151_v12 }
 0x1ac   :  { %2994 = vrcp.f32 %v2152_v15  ;;  %v2133_v36 = vpop.xlane.xlu0 %2132 }
 0x1ad   :  { %v4208_v42 = vpop.eup %2984  ;;  %v2153_v51 = vmax.f32 %v2133_v36, 1.0 }
 0x1ae   :  { %v4213_v3 = vpop.eup %2986  ;;  %v2136_v12 = vpop.xlane.xlu1 %2135 }
 0x1af   :  { %5261 = vst [vmem:[#allocation95_spill] sm:$0xff] %v4213_v3  ;;  %2996 = vrcp.f32 %v2153_v51  ;;  %v2154_v37 = vmax.f32 %v2136_v12, 1.0 }
 0x1b1   :  { %v4226_v29 = vpop.eup %2988  ;;  %2998 = vrcp.f32 %v2154_v37  ;;  %v2139_v62 = vpop.xlane.xlu0 %2138 }
 0x1b2   :  { %5262 = vst [vmem:[#allocation96_spill] sm:$0xff] %v4226_v29  ;;  %v4231_v55 = vpop.eup %2990  ;;  %v2155_v36 = vmax.f32 %v2139_v62, 1.0  ;;  %v911_v63 = vpop.permute.xlu1 %910  ;;  %v139_v62 = vld [vmem:[#allocation2 + $0x1c4] sm:$0xf] }
 0x1b3   :  { %v1171_v15 = vmul.f32 %v911_v63, %v131_v57 }
 0x1b4   :  { %3000 = vrcp.f32 %v2155_v36 }
 0x1b5   :  { %v4243_v48 = vpop.eup %2992  ;;  %v1930_v47 = vsel %vm1194_vm0, %v1171_v15, 0.0 }
 0x1b6   :  { %v4248_v51 = vpop.eup %2994  ;;  %v1931_v37 = vrot.slane %v1930_v47, 4  ;;  %v967_v12 = vpop.permute.xlu0 %966 }
 0x1b7   :  { %v2272_v57 = vrot.slane %v4248_v51, 1  ;;  %v2273_v63 = vrot.slane %v4248_v51, 2  ;;  %v2274_v27 = vrot.slane %v4248_v51, 3  ;;  %v2275_v53 = vrot.slane %v4248_v51, 4 }
 0x1b8   :  { %v2276_v36 = vrot.slane %v4248_v51, 5  ;;  %v1179_v4 = vmul.f32 %v967_v12, %v139_v62  ;;  %v1932_v6 = vadd.f32 %v1931_v37, %v1930_v47  ;;  %v4273_v46 = vmul.f32 %v4248_v51, %v4129_v33 }
 0x1b9   :  { %v4260_v24 = vpop.eup %2996  ;;  %v4264_v25 = vmul.f32 %v2272_v57, %v4127_v10  ;;  %v4267_v58 = vmul.f32 %v2273_v63, %v4135_v45  ;;  %v1023_v62 = vpop.permute.xlu1 %1022  ;;  %v4279_v57 = vmul.f32 %v2274_v27, %v4133_v18  ;;  %v140_v63 = vld [vmem:[#allocation2 + $0x1c8] sm:$0xf]  ;;  %v4285_v2 = vmul.f32 %v2275_v53, %v4142_v52 }
 0x1ba   :  { %v2279_v31 = vrot.slane %v4260_v24, 1  ;;  %v1986_v12 = vsel %vm1194_vm0, %v1179_v4, 0.0  ;;  %v1933_v45 = vrot.slane %v1932_v6, 2  ;;  %v1187_v37 = vmul.f32 %v1023_v62, %v147_v49  ;;  %v132_v62 = vld [vmem:[#allocation2 + $0x1a8] sm:$0xf] }
 0x1bb   :  { %v1987_v47 = vrot.slane %v1986_v12, 4  ;;  %v4282_v44 = vpop.eup %2998  ;;  %v974_v33 = vpop.permute.xlu0 %973  ;;  %v4288_v4 = vmul.f32 %v2276_v36, %v4137_v28 }
 0x1bc   :  { %v1934_v27 = vadd.f32 %v1933_v45, %v1932_v6  ;;  %v2042_v49 = vsel %vm1194_vm0, %v1187_v37, 0.0  ;;  %v2286_v20 = vrot.slane %v4282_v44, 1  ;;  %v1180_v53 = vmul.f32 %v974_v33, %v140_v63 }
 0x1bd   :  { %v1988_v15 = vadd.f32 %v1987_v47, %v1986_v12  ;;  %v2043_v17 = vrot.slane %v2042_v49, 4 }
 0x1be   :  { %v4296_v40 = vpop.eup %3000  ;;  %v1935_v28 = vrot.slane %v1934_v27, 1  ;;  %v918_v10 = vpop.permute.xlu1 %917  ;;  %v1993_v47 = vsel %vm1194_vm0, %v1180_v53, 0.0 }
 0x1bf   :  { %v1989_v36 = vrot.slane %v1988_v15, 2  ;;  %v2044_v45 = vadd.f32 %v2043_v17, %v2042_v49  ;;  %v1172_v37 = vmul.f32 %v918_v10, %v132_v62  ;;  %v2293_v63 = vrot.slane %v4296_v40, 1  ;;  %v138_v10 = vld [vmem:[#allocation2 + $0x1c0] sm:$0xf] }
 0x1c0   :  { %v1936_v18 = vadd.f32 %v1935_v28, %v1934_v27  ;;  %v1994_v33 = vrot.slane %v1993_v47, 4  ;;  %v904_v52 = vpop.permute.xlu0 %903  ;;  %v146_v62 = vld [vmem:[#allocation2 + $0x1e0] sm:$0xf] }
 0x1c1   :  { %v1990_v8 = vadd.f32 %v1989_v36, %v1988_v15  ;;  %v2045_v54 = vrot.slane %v2044_v45, 2  ;;  %v1937_v35 = vsel %vm1194_vm0, %v1172_v37, 0.0  ;;  %v1170_v1 = vmul.f32 %v904_v52, %v130_v14  ;;  %v133_v14 = vld [vmem:[#allocation2 + $0x1ac] sm:$0xf] }
 0x1c2   :  { %v1995_v17 = vadd.f32 %v1994_v33, %v1993_v47  ;;  %v1938_v49 = vrot.slane %v1937_v35, 4  ;;  %v1030_v53 = vpop.permute.xlu1 %1029  ;;  %v4306_v27 = vmul.f32 %v2279_v31, %v1936_v18 }
 0x1c3   :  { %v1991_v12 = vrot.slane %v1990_v8, 1  ;;  %v2046_v15 = vadd.f32 %v2045_v54, %v2044_v45  ;;  %v1923_v28 = vsel %vm1194_vm0, %v1170_v1, 0.0  ;;  %v1188_v36 = vmul.f32 %v1030_v53, %v148_v32 }
 0x1c4   :  { %v1996_v56 = vrot.slane %v1995_v17, 2  ;;  %v1939_v59 = vadd.f32 %v1938_v49, %v1937_v35  ;;  %v960_v37 = vpop.permute.xlu0 %959  ;;  %v1924_v47 = vrot.slane %v1923_v28, 4 }
 0x1c5   :  { %v1992_v5 = vadd.f32 %v1991_v12, %v1990_v8  ;;  %v2047_v6 = vrot.slane %v2046_v15, 1  ;;  %v2049_v33 = vsel %vm1194_vm0, %v1188_v36, 0.0  ;;  %v1178_v23 = vmul.f32 %v960_v37, %v138_v10 }
 0x1c6   :  { %v1997_v31 = vadd.f32 %v1996_v56, %v1995_v17  ;;  %v1940_v18 = vrot.slane %v1939_v59, 2  ;;  %v2050_v54 = vrot.slane %v2049_v33, 4  ;;  %v925_v45 = vpop.permute.xlu1 %924  ;;  %v1925_v32 = vadd.f32 %v1924_v47, %v1923_v28 }
 0x1c7   :  { %v4311_v29 = vmul.f32 %v2286_v20, %v1992_v5  ;;  %v2048_v1 = vadd.f32 %v2047_v6, %v2046_v15  ;;  %v1979_v8 = vsel %vm1194_vm0, %v1178_v23, 0.0  ;;  %v1173_v35 = vmul.f32 %v925_v45, %v133_v14  ;;  %v141_v23 = vld [vmem:[#allocation2 + $0x1cc] sm:$0xf] }
 0x1c8   :  { %v2873_v12 = vrot.slane %v4306_v27, 7  ;;  %v1998_v49 = vrot.slane %v1997_v31, 1  ;;  %v1941_v53 = vadd.f32 %v1940_v18, %v1939_v59  ;;  %v2051_v52 = vadd.f32 %v2050_v54, %v2049_v33 }
 0x1c9   :  { %v4315_v34 = vmul.f32 %v2293_v63, %v2048_v1  ;;  %v1926_v10 = vrot.slane %v1925_v32, 2  ;;  %v1980_v20 = vrot.slane %v1979_v8, 4  ;;  %v1944_v56 = vsel %vm1194_vm0, %v1173_v35, 0.0  ;;  %v1016_v5 = vpop.permute.xlu0 %1015 }
 0x1ca   :  { %v1999_v17 = vadd.f32 %v1998_v49, %v1997_v31  ;;  %v1942_v36 = vrot.slane %v1941_v53, 1  ;;  %v2052_v6 = vrot.slane %v2051_v52, 2  ;;  %v1945_v15 = vrot.slane %v1944_v56, 4 }
 0x1cb   :  { %v2887_v28 = vrot.slane %v4311_v29, 7  ;;  %v1927_v27 = vadd.f32 %v1926_v10, %v1925_v32  ;;  %v1981_v59 = vadd.f32 %v1980_v20, %v1979_v8  ;;  %v1186_v37 = vmul.f32 %v1016_v5, %v146_v62  ;;  %v981_v14 = vpop.permute.xlu1 %980  ;;  %v134_v10 = vld [vmem:[#allocation2 + $0x1b0] sm:$0xf] }
 0x1cc   :  { %v5263_v63 = vrot.slane %v4282_v44, 2  ;;  %v1943_v33 = vadd.f32 %v1942_v36, %v1941_v53  ;;  %v2053_v18 = vadd.f32 %v2052_v6, %v2051_v52  ;;  %v1946_v54 = vadd.f32 %v1945_v15, %v1944_v56  ;;  %v149_v56 = vld [vmem:[#allocation2 + $0x1ec] sm:$0xf] }
 0x1cd   :  { %v1928_v45 = vrot.slane %v1927_v27, 1  ;;  %v1982_v31 = vrot.slane %v1981_v59, 2  ;;  %v2035_v1 = vsel %vm1194_vm0, %v1186_v37, 0.0  ;;  %v1181_v35 = vmul.f32 %v981_v14, %v141_v23  ;;  %v932_v49 = vpop.permute.xlu0 %931 }
 0x1ce   :  { %v2542_v47 = vmul.f32 %v5263_v63, %v1999_v17  ;;  %v5264_v29 = vrot.slane %v4260_v24, 2  ;;  %v2054_v8 = vrot.slane %v2053_v18, 1  ;;  %v1947_v62 = vrot.slane %v1946_v54, 2 }
 0x1cf   :  { %v1929_v20 = vadd.f32 %v1928_v45, %v1927_v27  ;;  %v1983_v5 = vadd.f32 %v1982_v31, %v1981_v59  ;;  %v2036_v17 = vrot.slane %v2035_v1, 4  ;;  %v2000_v52 = vsel %vm1194_vm0, %v1181_v35, 0.0  ;;  %v1037_v53 = vpop.permute.xlu1 %1036 }
 0x1d0   :  { %v2534_v32 = vmul.f32 %v5264_v29, %v1943_v33  ;;  %v2889_v36 = vrot.slane %v2542_v47, 6  ;;  %v2055_v6 = vadd.f32 %v2054_v8, %v2053_v18  ;;  %v1948_v15 = vadd.f32 %v1947_v62, %v1946_v54  ;;  %v150_v47 = vld [vmem:[#allocation2 + $0x1f0] sm:$0xf] }
 0x1d1   :  { %v2001_v23 = vrot.slane %v2000_v52, 4  ;;  %v2532_v37 = vmul.f32 %v4260_v24, %v1929_v20  ;;  %v1984_v14 = vrot.slane %v1983_v5, 1  ;;  %v2037_v63 = vadd.f32 %v2036_v17, %v2035_v1  ;;  %v1044_v27 = vpop.permute.xlu0 %1043 }
 0x1d2   :  { %v1174_v3 = vmul.f32 %v932_v49, %v134_v10  ;;  %v2875_v33 = vrot.slane %v2534_v32, 6  ;;  %v1949_v29 = vrot.slane %v1948_v15, 1  ;;  %v1189_v22 = vmul.f32 %v1037_v53, %v149_v56  ;;  %v142_v32 = vld [vmem:[#allocation2 + $0x1d0] sm:$0xf] }
 0x1d3   :  { %v2002_v13 = vadd.f32 %v2001_v23, %v2000_v52  ;;  %v2874_v59 = vsel %vm2685_vm2, %v2873_v12, %v2532_v37  ;;  %v1985_v45 = vadd.f32 %v1984_v14, %v1983_v5  ;;  %v2038_v31 = vrot.slane %v2037_v63, 2  ;;  %v988_v18 = vpop.permute.xlu1 %987 }
 0x1d4   :  { %v1951_v35 = vsel %vm1194_vm0, %v1174_v3, 0.0  ;;  %v2876_v54 = vsel %vm2688_vm3, %v2875_v33, %v2874_v59  ;;  %v5265_v8 = vrot.slane %v4296_v40, 2  ;;  %v1950_v1 = vadd.f32 %v1949_v29, %v1948_v15 }
 0x1d5   :  { %v2003_v49 = vrot.slane %v2002_v13, 2  ;;  %v2540_v10 = vmul.f32 %v4282_v44, %v1985_v45  ;;  %v2039_v20 = vadd.f32 %v2038_v31, %v2037_v63  ;;  %v1952_v17 = vrot.slane %v1951_v35, 4  ;;  %v995_v63 = vpop.permute.xlu0 %994  ;;  %v143_v45 = vld [vmem:[#allocation2 + $0x1d4] sm:$0xf] }
 0x1d6   :  { %v2550_v62 = vmul.f32 %v5265_v8, %v2055_v6  ;;  %v2056_v12 = vsel %vm1194_vm0, %v1189_v22, 0.0  ;;  %v5266_v5 = vrot.slane %v4260_v24, 3  ;;  %v1190_v56 = vmul.f32 %v1044_v27, %v150_v47  ;;  %v135_v27 = vld [vmem:[#allocation2 + $0x1b4] sm:$0xf] }
 0x1d7   :  { %v2004_v52 = vadd.f32 %v2003_v49, %v2002_v13  ;;  %v2057_v53 = vrot.slane %v2056_v12, 4  ;;  %v2888_v23 = vsel %vm2685_vm2, %v2887_v28, %v2540_v10  ;;  %v2040_v37 = vrot.slane %v2039_v20, 1  ;;  %v939_v31 = vpop.permute.xlu1 %938 }
 0x1d8   :  { %v2535_v3 = vmul.f32 %v5266_v5, %v1950_v1  ;;  %v1953_v6 = vadd.f32 %v1952_v17, %v1951_v35  ;;  %v1182_v15 = vmul.f32 %v988_v18, %v142_v32  ;;  %v2903_v14 = vrot.slane %v2550_v62, 6 }
 0x1d9   :  { %v2890_v33 = vsel %vm2688_vm3, %v2889_v36, %v2888_v23  ;;  %v2005_v29 = vrot.slane %v2004_v52, 1  ;;  %v2058_v59 = vadd.f32 %v2057_v53, %v2056_v12  ;;  %v2041_v22 = vadd.f32 %v2040_v37, %v2039_v20 }
 0x1da   :  { %v1954_v8 = vrot.slane %v1953_v6, 2  ;;  %v2063_v1 = vsel %vm1194_vm0, %v1190_v56, 0.0  ;;  %v2007_v13 = vsel %vm1194_vm0, %v1182_v15, 0.0  ;;  %v2877_v47 = vrot.slane %v2535_v3, 5 }
 0x1db   :  { %v2006_v28 = vadd.f32 %v2005_v29, %v2004_v52  ;;  %v2059_v49 = vrot.slane %v2058_v59, 2  ;;  %v2064_v35 = vrot.slane %v2063_v1, 4  ;;  %v2548_v18 = vmul.f32 %v4296_v40, %v2041_v22 }
 0x1dc   :  { %v1955_v62 = vadd.f32 %v1954_v8, %v1953_v6  ;;  %v2008_v36 = vrot.slane %v2007_v13, 4  ;;  %v1183_v32 = vmul.f32 %v995_v63, %v143_v45  ;;  %v5267_v10 = vrot.slane %v4282_v44, 3  ;;  %v890_v63 = vpop.permute.xlu0 %889  ;;  %v128_v45 = vld [vmem:[#allocation2 + $0x198] sm:$0xf] }
 0x1dd   :  { %v2060_v12 = vadd.f32 %v2059_v49, %v2058_v59  ;;  %v2065_v20 = vadd.f32 %v2064_v35, %v2063_v1  ;;  %v1175_v5 = vmul.f32 %v939_v31, %v135_v27  ;;  %v5268_v53 = vrot.slane %v4315_v34, 7  ;;  %v1051_v59 = vpop.permute.xlu1 %1050 }
 0x1de   :  { %v2543_v17 = vmul.f32 %v5267_v10, %v2006_v28  ;;  %v1956_v3 = vrot.slane %v1955_v62, 1  ;;  %v2009_v52 = vadd.f32 %v2008_v36, %v2007_v13  ;;  %v2014_v23 = vsel %vm1194_vm0, %v1183_v32, 0.0 }
 0x1df   :  { %v2902_v56 = vsel %vm2685_vm2, %v5268_v53, %v2548_v18  ;;  %v2878_v37 = vsel %vm2691_vm4, %v2877_v47, %v2876_v54  ;;  %v2061_v15 = vrot.slane %v2060_v12, 1  ;;  %v2066_v29 = vrot.slane %v2065_v20, 2 }
 0x1e0   :  { %v2904_v6 = vsel %vm2688_vm3, %v2903_v14, %v2902_v56  ;;  %v1957_v22 = vadd.f32 %v1956_v3, %v1955_v62  ;;  %v2010_v31 = vrot.slane %v2009_v52, 2  ;;  %v2015_v8 = vrot.slane %v2014_v23, 4 }
 0x1e1   :  { %v1958_v34 = vsel %vm1194_vm0, %v1175_v5, 0.0  ;;  %v2891_v1 = vrot.slane %v2543_v17, 5  ;;  %v2062_v27 = vadd.f32 %v2061_v15, %v2060_v12  ;;  %v2067_v28 = vadd.f32 %v2066_v29, %v2065_v20  ;;  %v1002_v15 = vpop.permute.xlu0 %1001  ;;  %v946_v29 = vpop.permute.xlu1 %945 }
 0x1e2   :  { %v1959_v13 = vrot.slane %v1958_v34, 4  ;;  %v5269_v49 = vrot.slane %v4260_v24, 4  ;;  %v2011_v54 = vadd.f32 %v2010_v31, %v2009_v52  ;;  %v2016_v14 = vadd.f32 %v2015_v8, %v2014_v23 }
 0x1e3   :  { %v1168_v47 = vmul.f32 %v890_v63, %v128_v45  ;;  %v5270_v18 = vrot.slane %v4296_v40, 3  ;;  %v2068_v32 = vrot.slane %v2067_v28, 1  ;;  %v5271_v10 = vrot.slane %v4264_v25, 7 }
 0x1e4   :  { %v2536_v35 = vmul.f32 %v5269_v49, %v1957_v22  ;;  %v1960_v62 = vadd.f32 %v1959_v13, %v1958_v34  ;;  %v2012_v20 = vrot.slane %v2011_v54, 1  ;;  %v2017_v5 = vrot.slane %v2016_v14, 2 }
 0x1e5   :  { %v2551_v36 = vmul.f32 %v5270_v18, %v2062_v27  ;;  %v2860_v17 = vsel %vm2685_vm2, %v5271_v10, %v4273_v46  ;;  %v1909_v53 = vsel %vm1194_vm0, %v1168_v47, 0.0  ;;  %v2892_v56 = vsel %vm2691_vm4, %v2891_v1, %v2890_v33  ;;  %v151_v33 = vld [vmem:[#allocation2 + $0x1f4] sm:$0xf] }
 0x1e6   :  { %v2879_v12 = vrot.slane %v2536_v35, 4  ;;  %v2069_v3 = vadd.f32 %v2068_v32, %v2067_v28  ;;  %v1961_v52 = vrot.slane %v1960_v62, 2  ;;  %v1910_v23 = vrot.slane %v1909_v53, 4 }
 0x1e7   :  { %v2905_v63 = vrot.slane %v2551_v36, 5  ;;  %v2013_v45 = vadd.f32 %v2012_v20, %v2011_v54  ;;  %v2018_v22 = vadd.f32 %v2017_v5, %v2016_v14  ;;  %v5272_v31 = vrot.slane %v4267_v58, 6  ;;  %v144_v5 = vld [vmem:[#allocation2 + $0x1d8] sm:$0xf] }
 0x1e8   :  { %v2880_v46 = vsel %vm2694_vm5, %v2879_v12, %v2878_v37  ;;  %v5273_v8 = vrot.slane %v4296_v40, 4  ;;  %v1962_v27 = vadd.f32 %v1961_v52, %v1960_v62  ;;  %v1911_v13 = vadd.f32 %v1910_v23, %v1909_v53  ;;  %v136_v53 = vld [vmem:[#allocation2 + $0x1b8] sm:$0xf] }
 0x1e9   :  { %v2862_v25 = vsel %vm2688_vm3, %v5272_v31, %v2860_v17  ;;  %v5274_v1 = vrot.slane %v4282_v44, 4  ;;  %v2019_v49 = vrot.slane %v2018_v22, 1  ;;  %v5275_v35 = vrot.slane %v4279_v57, 5 }
 0x1ea   :  { %v2552_v34 = vmul.f32 %v5273_v8, %v2069_v3  ;;  %v2865_v58 = vrot.slane %v4285_v2, 4  ;;  %v1963_v47 = vrot.slane %v1962_v27, 1  ;;  %v1912_v18 = vrot.slane %v1911_v13, 2  ;;  %v897_v2 = vpop.permute.xlu0 %896  ;;  %v1058_v3 = vpop.permute.xlu1 %1057  ;;  %v129_v8 = vld [vmem:[#allocation2 + $0x19c] sm:$0xf] }
 0x1eb   :  { %v2544_v28 = vmul.f32 %v5274_v1, %v2013_v45  ;;  %v2864_v54 = vsel %vm2691_vm4, %v5275_v35, %v2862_v25  ;;  %v2867_v37 = vrot.slane %v4288_v4, 3  ;;  %v2020_v32 = vadd.f32 %v2019_v49, %v2018_v22  ;;  %v152_v35 = vld [vmem:[#allocation2 + $0x1f8] sm:$0xf] }
 0x1ec   :  { %v2907_v14 = vrot.slane %v2552_v34, 4  ;;  %v2866_v62 = vsel %vm2694_vm5, %v2865_v58, %v2864_v54  ;;  %v1191_v10 = vmul.f32 %v1051_v59, %v151_v33  ;;  %v2906_v17 = vsel %vm2691_vm4, %v2905_v63, %v2904_v6 }
 0x1ed   :  { %v2893_v36 = vrot.slane %v2544_v28, 4  ;;  %v1964_v12 = vadd.f32 %v1963_v47, %v1962_v27  ;;  %v1913_v20 = vadd.f32 %v1912_v18, %v1911_v13  ;;  %v4376_v57 = vsel %vm2697_vm6, %v2867_v37, %v2866_v62  ;;  %v145_v62 = vld [vmem:[#allocation2 + $0x1dc] sm:$0xf] }
 0x1ee   :  { %v4379_v52 = vsel %vm2694_vm5, %v2907_v14, %v2906_v17  ;;  %v5276_v23 = vrot.slane %v4282_v44, 5  ;;  %v2070_v59 = vsel %vm1194_vm0, %v1191_v10, 0.0  ;;  %v5277_v6 = vrot.slane %v4260_v24, 5  ;;  %v953_v10 = vpop.permute.xlu1 %952 }
 0x1ef   :  { %v2894_v4 = vsel %vm2694_vm5, %v2893_v36, %v2892_v56  ;;  %v1914_v22 = vrot.slane %v1913_v20, 1  ;;  %v2071_v31 = vrot.slane %v2070_v59, 4  ;;  %v2297_v25 = vrot.slane %v4296_v40, 5 }
 0x1f0   :  { %v2545_v45 = vmul.f32 %v5276_v23, %v2020_v32  ;;  %v2537_v63 = vmul.f32 %v5277_v6, %v1964_v12  ;;  %v2291_v27 = vrot.slane %v4282_v44, 6  ;;  %v1184_v13 = vmul.f32 %v1002_v15, %v144_v5  ;;  %v1009_v32 = vpop.permute.xlu0 %1008 }
 0x1f1   :  { %v1176_v33 = vmul.f32 %v946_v29, %v136_v53  ;;  %v1915_v56 = vadd.f32 %v1914_v22, %v1913_v20  ;;  %v2072_v28 = vadd.f32 %v2071_v31, %v2070_v59  ;;  %v2284_v49 = vrot.slane %v4260_v24, 6 }
 0x1f2   :  { %v2895_v34 = vrot.slane %v2545_v45, 3  ;;  %v2881_v1 = vrot.slane %v2537_v63, 3  ;;  %v2021_v54 = vsel %vm1194_vm0, %v1184_v13, 0.0  ;;  %v1169_v47 = vmul.f32 %v897_v2, %v129_v8  ;;  %v137_v45 = vld [vmem:[#allocation2 + $0x1bc] sm:$0xf] }
 0x1f3   :  { %v1965_v58 = vsel %vm1194_vm0, %v1176_v33, 0.0  ;;  %v5278_v15 = vrot.slane %v4248_v51, 6  ;;  %v2073_v37 = vrot.slane %v2072_v28, 2  ;;  %v2022_v36 = vrot.slane %v2021_v54, 4 }
 0x1f4   :  { %v4394_v18 = vsel %vm2697_vm6, %v2895_v34, %v2894_v4  ;;  %v4399_v17 = vsel %vm2697_vm6, %v2881_v1, %v2880_v46  ;;  %v1966_v12 = vrot.slane %v1965_v58, 4  ;;  %v1916_v20 = vsel %vm1194_vm0, %v1169_v47, 0.0  ;;  %v1065_v47 = vpop.permute.xlu1 %1064 }
 0x1f5   :  { %v2530_v29 = vmul.f32 %v5278_v15, %v1915_v56  ;;  %v1192_v5 = vmul.f32 %v1058_v3, %v152_v35  ;;  %v2074_v53 = vadd.f32 %v2073_v37, %v2072_v28  ;;  %v2023_v2 = vadd.f32 %v2022_v36, %v2021_v54  ;;  %v153_v15 = vld [vmem:[#allocation2 + $0x1fc] sm:$0xf] }
 0x1f6   :  { %v1917_v23 = vrot.slane %v1916_v20, 4  ;;  %v2298_v4 = vrot.slane %v4296_v40, 6  ;;  %v1967_v6 = vadd.f32 %v1966_v12, %v1965_v58  ;;  %v1185_v22 = vmul.f32 %v1009_v32, %v145_v62 }
 0x1f7   :  { %v2869_v59 = vrot.slane %v2530_v29, 2  ;;  %v2077_v63 = vsel %vm1194_vm0, %v1192_v5, 0.0  ;;  %v2075_v31 = vrot.slane %v2074_v53, 1  ;;  %v2024_v8 = vrot.slane %v2023_v2, 2 }
 0x1f8   :  { %v1918_v34 = vadd.f32 %v1917_v23, %v1916_v20  ;;  %v2292_v46 = vrot.slane %v4282_v44, 7  ;;  %v1968_v13 = vrot.slane %v1967_v6, 2  ;;  %v2078_v33 = vrot.slane %v2077_v63, 4 }
 0x1f9   :  { %v2028_v3 = vsel %vm1194_vm0, %v1185_v22, 0.0  ;;  %v1177_v1 = vmul.f32 %v953_v10, %v137_v45  ;;  %v2076_v56 = vadd.f32 %v2075_v31, %v2074_v53  ;;  %v2025_v28 = vadd.f32 %v2024_v8, %v2023_v2 }
 0x1fa   :  { %v1919_v35 = vrot.slane %v1918_v34, 2  ;;  %v2029_v54 = vrot.slane %v2028_v3, 4  ;;  %v2870_v58 = vsel %vm2700_vm7, %v2869_v59, %v4376_v57  ;;  %v1969_v29 = vadd.f32 %v1968_v13, %v1967_v6 }
 0x1fb   :  { %v2079_v37 = vadd.f32 %v2078_v33, %v2077_v63  ;;  %v1972_v36 = vsel %vm1194_vm0, %v1177_v1, 0.0  ;;  %v2553_v32 = vmul.f32 %v2297_v25, %v2076_v56  ;;  %v2026_v62 = vrot.slane %v2025_v28, 1 }
 0x1fc   :  { %v1920_v12 = vadd.f32 %v1919_v35, %v1918_v34  ;;  %v2030_v20 = vadd.f32 %v2029_v54, %v2028_v3  ;;  %v1970_v5 = vrot.slane %v1969_v29, 1  ;;  %v1973_v53 = vrot.slane %v1972_v36, 4 }
 0x1fd   :  { %v2080_v10 = vrot.slane %v2079_v37, 2  ;;  %v1193_v2 = vmul.f32 %v1065_v47, %v153_v15  ;;  %v2909_v23 = vrot.slane %v2553_v32, 3  ;;  %v2027_v45 = vadd.f32 %v2026_v62, %v2025_v28 }
 0x1fe   :  { %v1921_v22 = vrot.slane %v1920_v12, 1  ;;  %v2031_v31 = vrot.slane %v2030_v20, 2  ;;  %v1971_v8 = vadd.f32 %v1970_v5, %v1969_v29  ;;  %v1974_v57 = vadd.f32 %v1973_v53, %v1972_v36  ;;  %v5365_v5 = vld [vmem:[#allocation60_spill] sm:$0xff] }
 0x1ff   :  { %v2081_v14 = vadd.f32 %v2080_v10, %v2079_v37  ;;  %v2084_v59 = vsel %vm1194_vm0, %v1193_v2, 0.0  ;;  %v2546_v25 = vmul.f32 %v2291_v27, %v2027_v45  ;;  %v2285_v34 = vrot.slane %v4260_v24, 7 }
 0x200   :  { %v1922_v6 = vadd.f32 %v1921_v22, %v1920_v12  ;;  %v2032_v63 = vadd.f32 %v2031_v31, %v2030_v20  ;;  %v2538_v13 = vmul.f32 %v2284_v49, %v1971_v8  ;;  %v1975_v3 = vrot.slane %v1974_v57, 2 }
 0x201   :  { %v2082_v33 = vrot.slane %v2081_v14, 1  ;;  %v2085_v1 = vrot.slane %v2084_v59, 4  ;;  %v2910_v56 = vsel %vm2697_vm6, %v2909_v23, %v4379_v52  ;;  %v2897_v28 = vrot.slane %v2546_v25, 2 }
 0x202   :  { %v5279_v35 = vrot.slane %v4248_v51, 7  ;;  %v2033_v47 = vrot.slane %v2032_v63, 1  ;;  %v2883_v44 = vrot.slane %v2538_v13, 2  ;;  %v1976_v15 = vadd.f32 %v1975_v3, %v1974_v57  ;;  %v5280_v13 = vld [vmem:[#allocation38_spill] sm:$0xff]  ;;  %v5282_v3 = vld [vmem:[#allocation41_spill] sm:$0xff] }
 0x203   :  { %v2083_v27 = vadd.f32 %v2082_v33, %v2081_v14  ;;  %v2086_v29 = vadd.f32 %v2085_v1, %v2084_v59  ;;  %v2898_v37 = vsel %vm2700_vm7, %v2897_v28, %v4394_v18  ;;  %v2299_v36 = vrot.slane %v4296_v40, 7  ;;  %v5284_v28 = vld [vmem:[#allocation40_spill] sm:$0xff] }
 0x204   :  { %v2531_v54 = vmul.f32 %v5279_v35, %v1922_v6  ;;  %v2034_v49 = vadd.f32 %v2033_v47, %v2032_v63  ;;  %v1977_v62 = vrot.slane %v1976_v15, 1  ;;  %v2884_v51 = vsel %vm2700_vm7, %v2883_v44, %v4399_v17  ;;  %v5286_v47 = vld [vmem:[#allocation43_spill] sm:$0xff] }
 0x205   :  { %v2554_v32 = vmul.f32 %v2298_v4, %v2083_v27  ;;  %v2087_v12 = vrot.slane %v2086_v29, 2  ;;  %v5281_v33 = vrot.slane %v4131_v61, 5  ;;  %v5283_v1 = vrot.slane %v4131_v61, 6  ;;  %v5287_v27 = vld [vmem:[#allocation42_spill] sm:$0xff] }
 0x206   :  { %v2871_v24 = vrot.slane %v2531_v54, 1  ;;  %v2547_v14 = vmul.f32 %v2292_v46, %v2034_v49  ;;  %v1978_v18 = vadd.f32 %v1977_v62, %v1976_v15  ;;  %v5285_v35 = vrot.slane %v4131_v61, 7  ;;  %v5289_v49 = vld [vmem:[#allocation45_spill] sm:$0xff]  ;;  %v5291_v61 = vld [vmem:[#allocation44_spill] sm:$0xff] }
 0x207   :  { %v2911_v10 = vrot.slane %v2554_v32, 2  ;;  %v2088_v53 = vadd.f32 %v2087_v12, %v2086_v29  ;;  %v4455_v44 = vmul.f32 %v4163_v30, %v5286_v47  ;;  %v5288_v15 = vrot.slane %v4163_v30, 1 }
 0x208   :  { %v2872_v20 = vsel %vm2703_vm8, %v2871_v24, %v2870_v58  ;;  %v2899_v40 = vrot.slane %v2547_v14, 1  ;;  %v2539_v22 = vmul.f32 %v2285_v34, %v1978_v18  ;;  %v4441_v34 = vmul.f32 %v5281_v33, %v5280_v13  ;;  %v5293_v14 = vld [vmem:[#allocation18_spill] sm:$0xff]  ;;  %v5301_v33 = vld [vmem:[#allocation20_spill] sm:$0xff] }
 0x209   :  { %2943 = vst [vmem:[#allocation5 + $0x60] sm:$0xff] %v2872_v20  ;;  %v2912_v17 = vsel %vm2700_vm7, %v2911_v10, %v2910_v56  ;;  %v2089_v58 = vrot.slane %v2088_v53, 1  ;;  %v4446_v56 = vmul.f32 %v5283_v1, %v5282_v3  ;;  %v4451_v54 = vmul.f32 %v5285_v35, %v5284_v28  ;;  %v5302_v1 = vld [vmem:[#allocation47_spill] sm:$0xff] }
 0x20a   :  { %v2900_v31 = vsel %vm2703_vm8, %v2899_v40, %v2898_v37  ;;  %v2885_v25 = vrot.slane %v2539_v22, 1  ;;  %v4460_v29 = vmul.f32 %v5288_v15, %v5287_v27  ;;  %v5290_v32 = vrot.slane %v4163_v30, 2  ;;  %v5297_v40 = vld [vmem:[#allocation46_spill] sm:$0xff] }
 0x20b   :  { %2945 = vst [vmem:[#allocation5 + $0x70] sm:$0xff] %v2900_v31  ;;  %v2090_v6 = vadd.f32 %v2089_v58, %v2088_v53  ;;  %v5292_v12 = vrot.slane %v4163_v30, 3  ;;  %v5294_v10 = vrot.slane %v4163_v30, 4  ;;  %v5295_v53 = vld [vmem:[#allocation17_spill] sm:$0xff]  ;;  %v5298_v22 = vrot.slane %v4163_v30, 6  ;;  %v5299_v31 = vld [vmem:[#allocation19_spill] sm:$0xff] }
 0x20c   :  { %v2886_v37 = vsel %vm2703_vm8, %v2885_v25, %v2884_v51  ;;  %v4466_v62 = vmul.f32 %v5290_v32, %v5289_v49  ;;  %v5296_v51 = vrot.slane %v4163_v30, 5  ;;  %v5300_v25 = vrot.slane %v4163_v30, 7  ;;  %v5308_v32 = vld [vmem:[#allocation21_spill] sm:$0xff] }
 0x20d   :  { %v2555_v24 = vmul.f32 %v2299_v36, %v2090_v6  ;;  %v4471_v20 = vmul.f32 %v5292_v12, %v5291_v61  ;;  %2944 = vst [vmem:[#allocation5 + $0x68] sm:$0xff] %v2886_v37  ;;  %v4476_v18 = vmul.f32 %v5294_v10, %v5293_v14  ;;  %v4486_v58 = vmul.f32 %v5298_v22, %v5297_v40  ;;  %v5306_v37 = vld [vmem:[#allocation48_spill] sm:$0xff]  ;;  %v5310_v14 = vld [vmem:[#allocation50_spill] sm:$0xff] }
 0x20e   :  { %v4481_v36 = vmul.f32 %v5296_v51, %v5295_v53  ;;  %v4491_v6 = vmul.f32 %v5300_v25, %v5299_v31  ;;  %v4495_v3 = vmul.f32 %v4152_v41, %v5301_v33  ;;  %v5303_v28 = vrot.slane %v4152_v41, 1  ;;  %v5312_v51 = vld [vmem:[#allocation49_spill] sm:$0xff]  ;;  %v5314_v22 = vld [vmem:[#allocation22_spill] sm:$0xff]  ;;  %v5315_v25 = vld [vmem:[#allocation28_spill] sm:$0xff] }
 0x20f   :  { %v2913_v13 = vrot.slane %v2555_v24, 1  ;;  %v5304_v47 = vrot.slane %v4152_v41, 2  ;;  %v5305_v30 = vrot.slane %v4152_v41, 3  ;;  %v5307_v24 = vrot.slane %v4152_v41, 4 }
 0x210   :  { %v4500_v35 = vmul.f32 %v5303_v28, %v5302_v1  ;;  %v5309_v61 = vrot.slane %v4152_v41, 5  ;;  %v5311_v10 = vrot.slane %v4152_v41, 6  ;;  %v4535_v31 = vmul.f32 %v4176_v19, %v5314_v22  ;;  %v5317_v28 = vld [vmem:[#allocation23_spill] sm:$0xff]  ;;  %v5327_v22 = vld [vmem:[#allocation26_spill] sm:$0xff] }
 0x211   :  { %v4505_v27 = vmul.f32 %v5304_v47, %v3665_v39  ;;  %v4510_v15 = vmul.f32 %v5305_v30, %v3662_v16  ;;  %v4515_v49 = vmul.f32 %v5307_v24, %v5306_v37  ;;  %v2914_v53 = vsel %vm2703_vm8, %v2913_v13, %v2912_v17  ;;  %v5319_v17 = vld [vmem:[#allocation31_spill] sm:$0xff]  ;;  %v5321_v37 = vld [vmem:[#allocation25_spill] sm:$0xff] }
 0x212   :  { %v4520_v12 = vmul.f32 %v5309_v61, %v5308_v32  ;;  %v4525_v39 = vmul.f32 %v5311_v10, %v5310_v14  ;;  %v5313_v16 = vrot.slane %v4152_v41, 7  ;;  %v5316_v33 = vrot.slane %v4176_v19, 1  ;;  %2946 = vst [vmem:[#allocation5 + $0x78] sm:$0xff] %v2914_v53  ;;  %v5323_v61 = vld [vmem:[#allocation24_spill] sm:$0xff]  ;;  %v5325_v53 = vld [vmem:[#allocation27_spill] sm:$0xff] }
 0x213   :  { %v5318_v47 = vrot.slane %v4176_v19, 2  ;;  %v5320_v41 = vrot.slane %v4176_v19, 3  ;;  %v5322_v24 = vrot.slane %v4176_v19, 4  ;;  %v5324_v14 = vrot.slane %v4176_v19, 5 }
 0x214   :  { %v4531_v40 = vmul.f32 %v5313_v16, %v5312_v51  ;;  %v4540_v1 = vmul.f32 %v5316_v33, %v5315_v25  ;;  %v5326_v51 = vrot.slane %v4176_v19, 6  ;;  %v5328_v25 = vrot.slane %v4176_v19, 7 }
 0x215   :  { %v4545_v30 = vmul.f32 %v5318_v47, %v5317_v28  ;;  %v4550_v13 = vmul.f32 %v5320_v41, %v5319_v17  ;;  %v4555_v32 = vmul.f32 %v5322_v24, %v5321_v37  ;;  %v4560_v10 = vmul.f32 %v5324_v14, %v5323_v61  ;;  %v5329_v47 = vld [vmem:[#allocation29_spill] sm:$0xff]  ;;  %v5331_v37 = vld [vmem:[#allocation32_spill] sm:$0xff]  ;;  %v5333_v14 = vld [vmem:[#allocation30_spill] sm:$0xff] }
 0x216   :  { %v4565_v16 = vmul.f32 %v5326_v51, %v5325_v53  ;;  %v4570_v33 = vmul.f32 %v5328_v25, %v5327_v22  ;;  %v4574_v28 = vmul.f32 %v4181_v38, %v3756_v11  ;;  %v5330_v17 = vrot.slane %v4181_v38, 1  ;;  %v5335_v51 = vld [vmem:[#allocation33_spill] sm:$0xff]  ;;  %v5337_v25 = vld [vmem:[#allocation16_spill] sm:$0xff] }
 0x217   :  { %v5332_v24 = vrot.slane %v4181_v38, 2  ;;  %v5334_v53 = vrot.slane %v4181_v38, 3  ;;  %v5336_v22 = vrot.slane %v4181_v38, 4  ;;  %v5338_v63 = vrot.slane %v4181_v38, 5 }
 0x218   :  { %v4579_v41 = vmul.f32 %v5330_v17, %v5329_v47  ;;  %v5339_v17 = vld [vmem:[#allocation52_spill] sm:$0xff]  ;;  %v5340_v59 = vrot.slane %v4181_v38, 6  ;;  %v5342_v57 = vrot.slane %v4181_v38, 7  ;;  %v5366_v52 = vrot.slane %v4197_v50, 5 }
 0x219   :  { %v4584_v61 = vmul.f32 %v5332_v24, %v5331_v37  ;;  %v4589_v19 = vmul.f32 %v5334_v53, %v5333_v14  ;;  %v4594_v11 = vmul.f32 %v5336_v22, %v5335_v51  ;;  %v4599_v47 = vmul.f32 %v5338_v63, %v5337_v25  ;;  %v5341_v24 = vld [vmem:[#allocation51_spill] sm:$0xff]  ;;  %v5343_v53 = vld [vmem:[#allocation54_spill] sm:$0xff]  ;;  %v5344_v51 = vld [vmem:[#allocation53_spill] sm:$0xff] }
 0x21a   :  { %v4604_v37 = vmul.f32 %v5340_v59, %v5339_v17  ;;  %v4609_v14 = vmul.f32 %v5342_v57, %v5341_v24  ;;  %v4613_v8 = vmul.f32 %v4192_v7, %v5343_v53  ;;  %v5345_v22 = vrot.slane %v4192_v7, 1  ;;  %v5346_v63 = vld [vmem:[#allocation56_spill] sm:$0xff]  ;;  %v5348_v59 = vld [vmem:[#allocation55_spill] sm:$0xff] }
 0x21b   :  { %v5347_v25 = vrot.slane %v4192_v7, 2  ;;  %v5349_v17 = vrot.slane %v4192_v7, 3  ;;  %v5350_v57 = vrot.slane %v4192_v7, 4  ;;  %v5351_v53 = vrot.slane %v4192_v7, 6 }
 0x21c   :  { %v4618_v46 = vmul.f32 %v5345_v22, %v5344_v51  ;;  %v5352_v22 = vrot.slane %v4192_v7, 7 }
 0x21d   :  { %v4623_v45 = vmul.f32 %v5347_v25, %v5346_v63  ;;  %v4628_v38 = vmul.f32 %v5349_v17, %v5348_v59  ;;  %v4633_v24 = vmul.f32 %v5350_v57, %v3840_v0  ;;  %v4638_v51 = vmul.f32 %v5351_v53, %v3856_v21  ;;  %v5354_v59 = vld [vmem:[#allocation11_spill] sm:$0xff]  ;;  %v5359_v21 = vld [vmem:[#allocation58_spill] sm:$0xff] }
 0x21e   :  { %v4643_v63 = vmul.f32 %v5352_v22, %v3845_v60  ;;  %v4647_v25 = vmul.f32 %v4197_v50, %v3862_v9  ;;  %v5355_v17 = vrot.slane %v4197_v50, 1  ;;  %v5356_v0 = vld [vmem:[#allocation59_spill] sm:$0xff]  ;;  %v5357_v57 = vrot.slane %v4197_v50, 2  ;;  %v5362_v60 = vld [vmem:[#allocation61_spill] sm:$0xff] }
 0x21f   :  { %v5360_v53 = vrot.slane %v4197_v50, 3  ;;  %v5363_v22 = vrot.slane %v4197_v50, 4 }
 0x220   :  { %5353 = vst [vmem:[#allocation38_spill] sm:$0xff] %v4647_v25  ;;  %v4652_v23 = vmul.f32 %v5355_v17, %v5354_v59  ;;  %v4657_v4 = vmul.f32 %v5357_v57, %v5356_v0  ;;  %v4672_v59 = vmul.f32 %v5366_v52, %v5365_v5  ;;  %v5367_v17 = vld [vmem:[#allocation63_spill] sm:$0xff]  ;;  %v5368_v25 = vrot.slane %v4197_v50, 6  ;;  %v5370_v57 = vld [vmem:[#allocation62_spill] sm:$0xff] }
 0x221   :  { %v4662_v2 = vmul.f32 %v5360_v53, %v5359_v21  ;;  %v4667_v9 = vmul.f32 %v5363_v22, %v5362_v60  ;;  %v5373_v53 = vld [vmem:[#allocation65_spill] sm:$0xff]  ;;  %v5375_v60 = vld [vmem:[#allocation64_spill] sm:$0xff]  ;;  %v5376_v22 = vrot.slane %v4208_v42, 1  ;;  %v5377_v52 = vrot.slane %v4208_v42, 2 }
 0x222   :  { %5358 = vst [vmem:[#allocation41_spill] sm:$0xff] %v4657_v4  ;;  %v4677_v0 = vmul.f32 %v5368_v25, %v5367_v17  ;;  %v5371_v4 = vrot.slane %v4197_v50, 7  ;;  %v5379_v25 = vld [vmem:[#allocation8_spill] sm:$0xff]  ;;  %v5380_v17 = vrot.slane %v4208_v42, 3 }
 0x223   :  { %5361 = vst [vmem:[#allocation40_spill] sm:$0xff] %v4662_v2  ;;  %5364 = vst [vmem:[#allocation43_spill] sm:$0xff] %v4667_v9  ;;  %v4686_v2 = vmul.f32 %v4208_v42, %v5373_v53  ;;  %v4691_v9 = vmul.f32 %v5376_v22, %v5375_v60  ;;  %v4696_v5 = vmul.f32 %v5377_v52, %v3942_v43  ;;  %v5384_v53 = vld [vmem:[#allocation9_spill] sm:$0xff]  ;;  %v5387_v22 = vld [vmem:[#allocation66_spill] sm:$0xff] }
 0x224   :  { %5369 = vst [vmem:[#allocation42_spill] sm:$0xff] %v4677_v0  ;;  %v4682_v21 = vmul.f32 %v5371_v4, %v5370_v57  ;;  %v4701_v50 = vmul.f32 %v5380_v17, %v5379_v25  ;;  %v5382_v4 = vrot.slane %v4208_v42, 4  ;;  %v5390_v52 = vld [vmem:[#allocation10_spill] sm:$0xff]  ;;  %v5393_v17 = vld [vmem:[#allocation67_spill] sm:$0xff] }
 0x225   :  { %5374 = vst [vmem:[#allocation44_spill] sm:$0xff] %v4686_v2  ;;  %5378 = vst [vmem:[#allocation18_spill] sm:$0xff] %v4696_v5  ;;  %v5385_v2 = vrot.slane %v4208_v42, 5  ;;  %v5391_v5 = vrot.slane %v4208_v42, 7 }
 0x226   :  { %5372 = vst [vmem:[#allocation45_spill] sm:$0xff] %v4682_v21  ;;  %5381 = vst [vmem:[#allocation17_spill] sm:$0xff] %v4701_v50  ;;  %v4706_v57 = vmul.f32 %v5382_v4, %v3946_v26  ;;  %v5388_v21 = vrot.slane %v4208_v42, 6  ;;  %v5394_v50 = vld [vmem:[#allocation95_spill] sm:$0xff]  ;;  %v5396_v26 = vld [vmem:[#allocation13_spill] sm:$0xff] }
 0x227   :  { %v4711_v60 = vmul.f32 %v5385_v2, %v5384_v53  ;;  %v4721_v25 = vmul.f32 %v5391_v5, %v5390_v52  ;;  %v4725_v0 = vmul.f32 %v5394_v50, %v5393_v17  ;;  %v5397_v4 = vrot.slane %v5394_v50, 1  ;;  %v5399_v2 = vld [vmem:[#allocation69_spill] sm:$0xff]  ;;  %v5405_v5 = vld [vmem:[#allocation71_spill] sm:$0xff] }
 0x228   :  { %5383 = vst [vmem:[#allocation46_spill] sm:$0xff] %v4706_v57  ;;  %v4716_v43 = vmul.f32 %v5388_v21, %v5387_v22  ;;  %v5400_v53 = vrot.slane %v5394_v50, 2  ;;  %v5402_v21 = vld [vmem:[#allocation68_spill] sm:$0xff]  ;;  %v5403_v22 = vrot.slane %v5394_v50, 3  ;;  %v5406_v52 = vrot.slane %v5394_v50, 4 }
 0x229   :  { %5386 = vst [vmem:[#allocation19_spill] sm:$0xff] %v4711_v60  ;;  %5392 = vst [vmem:[#allocation47_spill] sm:$0xff] %v4721_v25  ;;  %v4730_v57 = vmul.f32 %v5397_v4, %v5396_v26  ;;  %v5409_v25 = vrot.slane %v5394_v50, 5  ;;  %v5411_v4 = vld [vmem:[#allocation12_spill] sm:$0xff] }
 0x22a   :  { %5389 = vst [vmem:[#allocation20_spill] sm:$0xff] %v4716_v43  ;;  %5395 = vst [vmem:[#allocation48_spill] sm:$0xff] %v4725_v0  ;;  %v4735_v60 = vmul.f32 %v5400_v53, %v5399_v2  ;;  %v4740_v42 = vmul.f32 %v5403_v22, %v5402_v21  ;;  %v4745_v17 = vmul.f32 %v5406_v52, %v5405_v5  ;;  %v5408_v0 = vld [vmem:[#allocation70_spill] sm:$0xff]  ;;  %v5412_v43 = vrot.slane %v5394_v50, 6  ;;  %v5414_v53 = vld [vmem:[#allocation72_spill] sm:$0xff] }
 0x22b   :  { %5398 = vst [vmem:[#allocation21_spill] sm:$0xff] %v4730_v57  ;;  %v4750_v26 = vmul.f32 %v5409_v25, %v5408_v0  ;;  %v5417_v22 = vld [vmem:[#allocation73_spill] sm:$0xff]  ;;  %v5420_v5 = vld [vmem:[#allocation15_spill] sm:$0xff]  ;;  %v5423_v0 = vld [vmem:[#allocation74_spill] sm:$0xff] }
 0x22c   :  { %5401 = vst [vmem:[#allocation50_spill] sm:$0xff] %v4735_v60  ;;  %5404 = vst [vmem:[#allocation49_spill] sm:$0xff] %v4740_v42  ;;  %v4755_v2 = vmul.f32 %v5412_v43, %v5411_v4  ;;  %v5415_v60 = vrot.slane %v5394_v50, 7  ;;  %v5418_v42 = vld [vmem:[#allocation96_spill] sm:$0xff]  ;;  %v5426_v43 = vld [vmem:[#allocation14_spill] sm:$0xff] }
 0x22d   :  { %5407 = vst [vmem:[#allocation22_spill] sm:$0xff] %v4745_v17  ;;  %5410 = vst [vmem:[#allocation28_spill] sm:$0xff] %v4750_v26  ;;  %v4764_v57 = vmul.f32 %v5418_v42, %v5417_v22  ;;  %v5421_v52 = vrot.slane %v5418_v42, 1  ;;  %v5424_v25 = vrot.slane %v5418_v42, 2  ;;  %v5427_v4 = vrot.slane %v5418_v42, 3 }
 0x22e   :  { %5413 = vst [vmem:[#allocation23_spill] sm:$0xff] %v4755_v2  ;;  %v4760_v21 = vmul.f32 %v5415_v60, %v5414_v53  ;;  %v5429_v60 = vld [vmem:[#allocation76_spill] sm:$0xff]  ;;  %v5430_v53 = vrot.slane %v5418_v42, 4  ;;  %v5436_v2 = vrot.slane %v5418_v42, 6 }
 0x22f   :  { %5419 = vst [vmem:[#allocation25_spill] sm:$0xff] %v4764_v57  ;;  %v4769_v17 = vmul.f32 %v5421_v52, %v5420_v5  ;;  %v4774_v26 = vmul.f32 %v5424_v25, %v5423_v0  ;;  %v4779_v50 = vmul.f32 %v5427_v4, %v5426_v43  ;;  %v5432_v57 = vld [vmem:[#allocation75_spill] sm:$0xff]  ;;  %v5435_v52 = vld [vmem:[#allocation78_spill] sm:$0xff]  ;;  %v5438_v25 = vld [vmem:[#allocation77_spill] sm:$0xff] }
 0x230   :  { %5416 = vst [vmem:[#allocation31_spill] sm:$0xff] %v4760_v21  ;;  %v4784_v22 = vmul.f32 %v5430_v53, %v5429_v60  ;;  %v5433_v21 = vrot.slane %v5418_v42, 5  ;;  %v4794_v0 = vmul.f32 %v5436_v2, %v5435_v52  ;;  %v5441_v4 = vld [vmem:[#allocation80_spill] sm:$0xff]  ;;  %v5443_v60 = vld [vmem:[#allocation79_spill] sm:$0xff]  ;;  %v5444_v53 = vrot.slane %v4231_v55, 1  ;;  %v5449_v2 = vld [vmem:[#allocation81_spill] sm:$0xff] }
 0x231   :  { %5422 = vst [vmem:[#allocation24_spill] sm:$0xff] %v4769_v17  ;;  %5425 = vst [vmem:[#allocation27_spill] sm:$0xff] %v4774_v26  ;;  %v5439_v26 = vrot.slane %v5418_v42, 7  ;;  %v5450_v52 = vrot.slane %v4231_v55, 3 }
 0x232   :  { %5428 = vst [vmem:[#allocation26_spill] sm:$0xff] %v4779_v50  ;;  %5431 = vst [vmem:[#allocation29_spill] sm:$0xff] %v4784_v22  ;;  %v4789_v5 = vmul.f32 %v5433_v21, %v5432_v57  ;;  %v4803_v50 = vmul.f32 %v4231_v55, %v5441_v4  ;;  %v4808_v22 = vmul.f32 %v5444_v53, %v5443_v60  ;;  %v5446_v57 = vld [vmem:[#allocation82_spill] sm:$0xff]  ;;  %v5447_v21 = vrot.slane %v4231_v55, 2 }
 0x233   :  { %5437 = vst [vmem:[#allocation30_spill] sm:$0xff] %v4794_v0  ;;  %v4799_v43 = vmul.f32 %v5439_v26, %v5438_v25  ;;  %v4818_v42 = vmul.f32 %v5450_v52, %v5449_v2  ;;  %v5452_v26 = vld [vmem:[#allocation84_spill] sm:$0xff]  ;;  %v5453_v25 = vrot.slane %v4231_v55, 4  ;;  %v5458_v53 = vld [vmem:[#allocation86_spill] sm:$0xff]  ;;  %v5459_v0 = vrot.slane %v4231_v55, 6 }
 0x234   :  { %5434 = vst [vmem:[#allocation32_spill] sm:$0xff] %v4789_v5  ;;  %5442 = vst [vmem:[#allocation16_spill] sm:$0xff] %v4803_v50  ;;  %v4813_v5 = vmul.f32 %v5447_v21, %v5446_v57  ;;  %v5455_v50 = vld [vmem:[#allocation83_spill] sm:$0xff]  ;;  %v5461_v21 = vld [vmem:[#allocation85_spill] sm:$0xff] }
 0x235   :  { %5440 = vst [vmem:[#allocation33_spill] sm:$0xff] %v4799_v43  ;;  %5445 = vst [vmem:[#allocation52_spill] sm:$0xff] %v4808_v22  ;;  %v4823_v4 = vmul.f32 %v5453_v25, %v5452_v26  ;;  %v5456_v43 = vrot.slane %v4231_v55, 5  ;;  %v4833_v57 = vmul.f32 %v5459_v0, %v5458_v53  ;;  %v5464_v52 = vld [vmem:[#allocation88_spill] sm:$0xff]  ;;  %v5466_v26 = vld [vmem:[#allocation87_spill] sm:$0xff]  ;;  %v5467_v25 = vrot.slane %v4243_v48, 1 }
 0x236   :  { %5448 = vst [vmem:[#allocation51_spill] sm:$0xff] %v4813_v5  ;;  %5451 = vst [vmem:[#allocation54_spill] sm:$0xff] %v4818_v42  ;;  %v5462_v5 = vrot.slane %v4231_v55, 7  ;;  %v4842_v42 = vmul.f32 %v4243_v48, %v5464_v52  ;;  %v5472_v0 = vld [vmem:[#allocation89_spill] sm:$0xff]  ;;  %v5473_v53 = vrot.slane %v4243_v48, 3  ;;  %v5490_v22 = vld [vmem:[#allocation39_spill] sm:$0xff] }
 0x237   :  { %5454 = vst [vmem:[#allocation53_spill] sm:$0xff] %v4823_v4  ;;  %v4828_v60 = vmul.f32 %v5456_v43, %v5455_v50  ;;  %5460 = vst [vmem:[#allocation55_spill] sm:$0xff] %v4833_v57  ;;  %v4847_v4 = vmul.f32 %v5467_v25, %v5466_v26  ;;  %v5469_v50 = vld [vmem:[#allocation90_spill] sm:$0xff]  ;;  %v5470_v43 = vrot.slane %v4243_v48, 2  ;;  %v5482_v57 = vrot.slane %v4243_v48, 6 }
 0x238   :  { %v4838_v2 = vmul.f32 %v5462_v5, %v5461_v21  ;;  %5465 = vst [vmem:[#allocation59_spill] sm:$0xff] %v4842_v42  ;;  %v4857_v55 = vmul.f32 %v5473_v53, %v5472_v0  ;;  %v5475_v5 = vld [vmem:[#allocation92_spill] sm:$0xff]  ;;  %v5476_v21 = vrot.slane %v4243_v48, 4  ;;  %v5478_v42 = vld [vmem:[#allocation91_spill] sm:$0xff]  ;;  %v5481_v25 = vld [vmem:[#allocation94_spill] sm:$0xff]  ;;  %v2693_v17 = vrot.slane %v5490_v22, 4 }
 0x239   :  { %5457 = vst [vmem:[#allocation56_spill] sm:$0xff] %v4828_v60  ;;  %5468 = vst [vmem:[#allocation58_spill] sm:$0xff] %v4847_v4  ;;  %v4852_v60 = vmul.f32 %v5470_v43, %v5469_v50  ;;  %v4872_v50 = vmul.f32 %v5482_v57, %v5481_v25  ;;  %v5483_v43 = vld [vmem:[#allocation57_spill] sm:$0xff]  ;;  %v5488_v4 = vld [vmem:[#allocation34_spill] sm:$0xff]  ;;  %v2696_v57 = vrot.slane %v4441_v34, 3  ;;  %v2699_v25 = vrot.slane %v4446_v56, 2 }
 0x23a   :  { %5463 = vst [vmem:[#allocation11_spill] sm:$0xff] %v4838_v2  ;;  %5474 = vst [vmem:[#allocation60_spill] sm:$0xff] %v4857_v55  ;;  %v4862_v52 = vmul.f32 %v5476_v21, %v5475_v5  ;;  %v5479_v2 = vrot.slane %v4243_v48, 5  ;;  %v5485_v53 = vld [vmem:[#allocation93_spill] sm:$0xff]  ;;  %v5486_v55 = vrot.slane %v4243_v48, 7  ;;  %v2705_v48 = vrot.slane %v4460_v29, 7 }
 0x23b   :  { %5471 = vst [vmem:[#allocation61_spill] sm:$0xff] %v4852_v60  ;;  %v5484_v60 = vrot.slane %v4192_v7, 5  ;;  %v5487_v21 = vld [vmem:[#allocation37_spill] sm:$0xff]  ;;  %v5491_v7 = vld [vmem:[#allocation35_spill] sm:$0xff]  ;;  %v2713_v22 = vrot.slane %v4481_v36, 3 }
 0x23c   :  { %5477 = vst [vmem:[#allocation63_spill] sm:$0xff] %v4862_v52  ;;  %v4867_v26 = vmul.f32 %v5479_v2, %v5478_v42  ;;  %v4882_v5 = vmul.f32 %v5486_v55, %v5485_v53  ;;  %v2684_v52 = vrot.slane %v5487_v21, 7  ;;  %v2687_v42 = vrot.slane %v5488_v4, 6  ;;  %v5489_v2 = vld [vmem:[#allocation36_spill] sm:$0xff] }
 0x23d   :  { %v4877_v0 = vmul.f32 %v5484_v60, %v5483_v43  ;;  %v2702_v43 = vrot.slane %v4451_v54, 1  ;;  %v2707_v55 = vrot.slane %v4466_v62, 6  ;;  %v2709_v4 = vrot.slane %v4471_v20, 5 }
 0x23e   :  { %5480 = vst [vmem:[#allocation62_spill] sm:$0xff] %v4867_v26  ;;  %v2690_v26 = vrot.slane %v5489_v2, 5  ;;  %v2686_v60 = vsel %vm2685_vm2, %v2684_v52, %v5491_v7  ;;  %v2711_v21 = vrot.slane %v4476_v18, 4  ;;  %v2706_v56 = vsel %vm2685_vm2, %v2705_v48, %v4455_v44 }
 0x23f   :  { %v2689_v53 = vsel %vm2688_vm3, %v2687_v42, %v2686_v60  ;;  %v2715_v52 = vrot.slane %v4486_v58, 2  ;;  %v2719_v54 = vrot.slane %v4500_v35, 7  ;;  %v2708_v62 = vsel %vm2688_vm3, %v2707_v55, %v2706_v56 }
 0x240   :  { %v2692_v34 = vsel %vm2691_vm4, %v2690_v26, %v2689_v53  ;;  %v2717_v42 = vrot.slane %v4491_v6, 1  ;;  %v2721_v20 = vrot.slane %v4505_v27, 6  ;;  %v2710_v36 = vsel %vm2691_vm4, %v2709_v4, %v2708_v62 }
 0x241   :  { %v2695_v29 = vsel %vm2694_vm5, %v2693_v17, %v2692_v34  ;;  %v2720_v26 = vsel %vm2685_vm2, %v2719_v54, %v4495_v3  ;;  %v2723_v44 = vrot.slane %v4510_v15, 5  ;;  %v2712_v35 = vsel %vm2694_vm5, %v2711_v21, %v2710_v36 }
 0x242   :  { %v2698_v18 = vsel %vm2697_vm6, %v2696_v57, %v2695_v29  ;;  %v2722_v17 = vsel %vm2688_vm3, %v2721_v20, %v2720_v26  ;;  %v2725_v2 = vrot.slane %v4515_v49, 4  ;;  %v2714_v27 = vsel %vm2697_vm6, %v2713_v22, %v2712_v35 }
 0x243   :  { %v2701_v58 = vsel %vm2700_vm7, %v2699_v25, %v2698_v18  ;;  %v2724_v57 = vsel %vm2691_vm4, %v2723_v44, %v2722_v17  ;;  %v2727_v7 = vrot.slane %v4520_v12, 3  ;;  %v2716_v3 = vsel %vm2700_vm7, %v2715_v52, %v2714_v27  ;;  %v5493_v17 = vld [vmem:[#allocation38_spill] sm:$0xff] }
 0x244   :  { %v2704_v6 = vsel %vm2703_vm8, %v2702_v43, %v2701_v58  ;;  %v2726_v15 = vsel %vm2694_vm5, %v2725_v2, %v2724_v57  ;;  %v2729_v25 = vrot.slane %v4525_v39, 2  ;;  %v2733_v60 = vrot.slane %v4540_v1, 7  ;;  %v5492_v58 = vld [vmem:[#allocation41_spill] sm:$0xff]  ;;  %v5495_v57 = vld [vmem:[#allocation43_spill] sm:$0xff] }
 0x245   :  { %2931 = vst [vmem:[#allocation5] sm:$0xff] %v2704_v6  ;;  %v2718_v48 = vsel %vm2703_vm8, %v2717_v42, %v2716_v3  ;;  %v2728_v49 = vsel %vm2697_vm6, %v2727_v7, %v2726_v15  ;;  %v2731_v43 = vrot.slane %v4531_v40, 1  ;;  %v2735_v55 = vrot.slane %v4545_v30, 6  ;;  %v5494_v6 = vld [vmem:[#allocation40_spill] sm:$0xff] }
 0x246   :  { %v2730_v53 = vsel %vm2700_vm7, %v2729_v25, %v2728_v49  ;;  %v2734_v12 = vsel %vm2685_vm2, %v2733_v60, %v4535_v31  ;;  %v2737_v4 = vrot.slane %v4550_v13, 5  ;;  %v2739_v39 = vrot.slane %v4555_v32, 4  ;;  %2932 = vst [vmem:[#allocation5 + $0x8] sm:$0xff] %v2718_v48  ;;  %v5496_v48 = vld [vmem:[#allocation42_spill] sm:$0xff] }
 0x247   :  { %v2732_v1 = vsel %vm2703_vm8, %v2731_v43, %v2730_v53  ;;  %v2736_v21 = vsel %vm2688_vm3, %v2735_v55, %v2734_v12  ;;  %v2741_v22 = vrot.slane %v4560_v10, 3  ;;  %v2743_v40 = vrot.slane %v4565_v16, 2  ;;  %v5497_v43 = vld [vmem:[#allocation45_spill] sm:$0xff]  ;;  %v5498_v53 = vld [vmem:[#allocation18_spill] sm:$0xff] }
 0x248   :  { %v2738_v30 = vsel %vm2691_vm4, %v2737_v4, %v2736_v21  ;;  %v2745_v34 = vrot.slane %v4570_v33, 1  ;;  %v2747_v56 = vrot.slane %v4579_v41, 7  ;;  %v2749_v31 = vrot.slane %v4584_v61, 6  ;;  %2933 = vst [vmem:[#allocation5 + $0x10] sm:$0xff] %v2732_v1  ;;  %v5500_v21 = vld [vmem:[#allocation17_spill] sm:$0xff] }
 0x249   :  { %v2740_v13 = vsel %vm2694_vm5, %v2739_v39, %v2738_v30  ;;  %v2751_v32 = vrot.slane %v4589_v19, 5  ;;  %v2753_v52 = vrot.slane %v4594_v11, 4  ;;  %v2755_v54 = vrot.slane %v4599_v47, 3  ;;  %v5499_v39 = vld [vmem:[#allocation44_spill] sm:$0xff] }
 0x24a   :  { %v2742_v10 = vsel %vm2697_vm6, %v2741_v22, %v2740_v13  ;;  %v2748_v16 = vsel %vm2685_vm2, %v2747_v56, %v4574_v28  ;;  %v2757_v33 = vrot.slane %v4604_v37, 2  ;;  %v2761_v41 = vrot.slane %v4618_v46, 7 }
 0x24b   :  { %v2744_v61 = vsel %vm2700_vm7, %v2743_v40, %v2742_v10  ;;  %v2750_v29 = vsel %vm2688_vm3, %v2749_v31, %v2748_v16  ;;  %v2759_v62 = vrot.slane %v4609_v14, 1  ;;  %v2763_v19 = vrot.slane %v4623_v45, 6  ;;  %v5501_v40 = vld [vmem:[#allocation46_spill] sm:$0xff]  ;;  %v5503_v31 = vld [vmem:[#allocation21_spill] sm:$0xff] }
 0x24c   :  { %v2746_v11 = vsel %vm2703_vm8, %v2745_v34, %v2744_v61  ;;  %v2752_v47 = vsel %vm2691_vm4, %v2751_v32, %v2750_v29  ;;  %v2762_v42 = vsel %vm2685_vm2, %v2761_v41, %v4613_v8  ;;  %v2765_v28 = vrot.slane %v4628_v38, 5  ;;  %v5502_v34 = vld [vmem:[#allocation19_spill] sm:$0xff]  ;;  %v5505_v16 = vld [vmem:[#allocation50_spill] sm:$0xff] }
 0x24d   :  { %v2754_v37 = vsel %vm2694_vm5, %v2753_v52, %v2752_v47  ;;  %v2764_v46 = vsel %vm2688_vm3, %v2763_v19, %v2762_v42  ;;  %v2767_v20 = vrot.slane %v4633_v24, 4  ;;  %v2769_v18 = vrot.slane %v4877_v0, 3  ;;  %2934 = vst [vmem:[#allocation5 + $0x18] sm:$0xff] %v2746_v11  ;;  %v5506_v61 = vld [vmem:[#allocation47_spill] sm:$0xff]  ;;  %v5508_v11 = vld [vmem:[#allocation49_spill] sm:$0xff] }
 0x24e   :  { %v2756_v45 = vsel %vm2697_vm6, %v2755_v54, %v2754_v37  ;;  %v2766_v14 = vsel %vm2691_vm4, %v2765_v28, %v2764_v46  ;;  %v2771_v36 = vrot.slane %v4638_v51, 2  ;;  %v2775_v26 = vrot.slane %v4652_v23, 7  ;;  %v5504_v54 = vld [vmem:[#allocation20_spill] sm:$0xff]  ;;  %v5509_v37 = vld [vmem:[#allocation22_spill] sm:$0xff] }
 0x24f   :  { %v2758_v8 = vsel %vm2700_vm7, %v2757_v33, %v2756_v45  ;;  %v2768_v38 = vsel %vm2694_vm5, %v2767_v20, %v2766_v14  ;;  %v2773_v44 = vrot.slane %v4643_v63, 1  ;;  %v2777_v35 = vrot.slane %v5492_v58, 6  ;;  %v5510_v20 = vld [vmem:[#allocation28_spill] sm:$0xff] }
 0x250   :  { %v2760_v24 = vsel %vm2703_vm8, %v2759_v62, %v2758_v8  ;;  %v2770_v0 = vsel %vm2697_vm6, %v2769_v18, %v2768_v38  ;;  %v2776_v2 = vsel %vm2685_vm2, %v2775_v26, %v5493_v17  ;;  %v2779_v27 = vrot.slane %v5494_v6, 5  ;;  %v5507_v62 = vld [vmem:[#allocation48_spill] sm:$0xff]  ;;  %v5512_v8 = vld [vmem:[#allocation27_spill] sm:$0xff]  ;;  %v5515_v6 = vld [vmem:[#allocation25_spill] sm:$0xff] }
 0x251   :  { %v2772_v51 = vsel %vm2700_vm7, %v2771_v36, %v2770_v0  ;;  %v2778_v23 = vsel %vm2688_vm3, %v2777_v35, %v2776_v2  ;;  %v2781_v7 = vrot.slane %v5495_v57, 4  ;;  %2935 = vst [vmem:[#allocation5 + $0x20] sm:$0xff] %v2760_v24  ;;  %v2783_v15 = vrot.slane %v4672_v59, 3  ;;  %v5511_v36 = vld [vmem:[#allocation24_spill] sm:$0xff]  ;;  %v5513_v35 = vld [vmem:[#allocation23_spill] sm:$0xff]  ;;  %v5517_v57 = vld [vmem:[#allocation29_spill] sm:$0xff] }
 0x252   :  { %v2774_v63 = vsel %vm2703_vm8, %v2773_v44, %v2772_v51  ;;  %v2780_v3 = vsel %vm2691_vm4, %v2779_v27, %v2778_v23  ;;  %v2789_v25 = vrot.slane %v4691_v9, 7  ;;  %v2785_v49 = vrot.slane %v5496_v48, 2  ;;  %v5514_v0 = vld [vmem:[#allocation31_spill] sm:$0xff]  ;;  %v5516_v51 = vld [vmem:[#allocation26_spill] sm:$0xff] }
 0x253   :  { %v2782_v60 = vsel %vm2694_vm5, %v2781_v7, %v2780_v3  ;;  %v2787_v55 = vrot.slane %v5497_v43, 1  ;;  %v2791_v12 = vrot.slane %v5498_v53, 6  ;;  %2936 = vst [vmem:[#allocation5 + $0x28] sm:$0xff] %v2774_v63  ;;  %v2793_v22 = vrot.slane %v5500_v21, 5 }
 0x254   :  { %v2784_v4 = vsel %vm2697_vm6, %v2783_v15, %v2782_v60  ;;  %v2790_v1 = vsel %vm2685_vm2, %v2789_v25, %v5499_v39  ;;  %v2795_v59 = vrot.slane %v5501_v40, 4  ;;  %v2797_v56 = vrot.slane %v5502_v34, 3  ;;  %v5518_v15 = vld [vmem:[#allocation32_spill] sm:$0xff] }
 0x255   :  { %v2786_v9 = vsel %vm2700_vm7, %v2785_v49, %v2784_v4  ;;  %v2792_v30 = vsel %vm2688_vm3, %v2791_v12, %v2790_v1  ;;  %v2803_v13 = vrot.slane %v5503_v31, 7  ;;  %v2799_v10 = vrot.slane %v5504_v54, 2  ;;  %v5519_v60 = vld [vmem:[#allocation52_spill] sm:$0xff]  ;;  %v5521_v12 = vld [vmem:[#allocation51_spill] sm:$0xff]  ;;  %v5522_v1 = vld [vmem:[#allocation33_spill] sm:$0xff] }
 0x256   :  { %v2788_v32 = vsel %vm2703_vm8, %v2787_v55, %v2786_v9  ;;  %v2794_v52 = vsel %vm2691_vm4, %v2793_v22, %v2792_v30  ;;  %v2805_v33 = vrot.slane %v5505_v16, 6  ;;  %v2801_v29 = vrot.slane %v5506_v61, 1  ;;  %v5520_v55 = vld [vmem:[#allocation30_spill] sm:$0xff]  ;;  %v5523_v22 = vld [vmem:[#allocation16_spill] sm:$0xff] }
 0x257   :  { %v2796_v41 = vsel %vm2694_vm5, %v2795_v59, %v2794_v52  ;;  %v2804_v19 = vsel %vm2685_vm2, %v2803_v13, %v5507_v62  ;;  %v2807_v47 = vrot.slane %v5508_v11, 5  ;;  %2937 = vst [vmem:[#allocation5 + $0x30] sm:$0xff] %v2788_v32  ;;  %v2809_v46 = vrot.slane %v5509_v37, 4  ;;  %v5524_v59 = vld [vmem:[#allocation54_spill] sm:$0xff]  ;;  %v5526_v13 = vld [vmem:[#allocation56_spill] sm:$0xff]  ;;  %v5529_v62 = vld [vmem:[#allocation55_spill] sm:$0xff] }
 0x258   :  { %v2798_v42 = vsel %vm2697_vm6, %v2797_v56, %v2796_v41  ;;  %v2806_v28 = vsel %vm2688_vm3, %v2805_v33, %v2804_v19  ;;  %v2811_v18 = vrot.slane %v5510_v20, 3  ;;  %v2817_v26 = vrot.slane %v5511_v36, 7  ;;  %v5525_v56 = vld [vmem:[#allocation53_spill] sm:$0xff] }
 0x259   :  { %v2800_v45 = vsel %vm2700_vm7, %v2799_v10, %v2798_v42  ;;  %v2808_v14 = vsel %vm2691_vm4, %v2807_v47, %v2806_v28  ;;  %v2819_v38 = vrot.slane %v5512_v8, 6  ;;  %v2813_v24 = vrot.slane %v5513_v35, 2  ;;  %v5527_v10 = vld [vmem:[#allocation58_spill] sm:$0xff]  ;;  %v5528_v33 = vld [vmem:[#allocation61_spill] sm:$0xff]  ;;  %v5530_v47 = vld [vmem:[#allocation11_spill] sm:$0xff] }
 0x25a   :  { %v2802_v44 = vsel %vm2703_vm8, %v2801_v29, %v2800_v45  ;;  %v2810_v58 = vsel %vm2694_vm5, %v2809_v46, %v2808_v14  ;;  %v2815_v17 = vrot.slane %v5514_v0, 1  ;;  %v2818_v27 = vsel %vm2685_vm2, %v2817_v26, %v5515_v6  ;;  %v5531_v28 = vld [vmem:[#allocation59_spill] sm:$0xff]  ;;  %v5532_v46 = vld [vmem:[#allocation60_spill] sm:$0xff] }
 0x25b   :  { %v2812_v2 = vsel %vm2697_vm6, %v2811_v18, %v2810_v58  ;;  %v2821_v23 = vrot.slane %v5516_v51, 5  ;;  %v2823_v7 = vrot.slane %v5517_v57, 4  ;;  %2938 = vst [vmem:[#allocation5 + $0x38] sm:$0xff] %v2802_v44  ;;  %v2820_v3 = vsel %vm2688_vm3, %v2819_v38, %v2818_v27  ;;  %v5533_v14 = vld [vmem:[#allocation63_spill] sm:$0xff]  ;;  %v5534_v38 = vld [vmem:[#allocation62_spill] sm:$0xff] }
 0x25c   :  { %v2814_v63 = vsel %vm2700_vm7, %v2813_v24, %v2812_v2  ;;  %v2825_v25 = vrot.slane %v5518_v15, 3  ;;  %v2831_v48 = vrot.slane %v5519_v60, 7  ;;  %v2827_v53 = vrot.slane %v5520_v55, 2 }
 0x25d   :  { %v2816_v49 = vsel %vm2703_vm8, %v2815_v17, %v2814_v63  ;;  %v2822_v43 = vsel %vm2691_vm4, %v2821_v23, %v2820_v3  ;;  %v2833_v4 = vrot.slane %v5521_v12, 6  ;;  %v2829_v21 = vrot.slane %v5522_v1, 1 }
 0x25e   :  { %v2824_v39 = vsel %vm2694_vm5, %v2823_v7, %v2822_v43  ;;  %v2832_v40 = vsel %vm2685_vm2, %v2831_v48, %v5523_v22  ;;  %v2835_v9 = vrot.slane %v5524_v59, 5  ;;  %2939 = vst [vmem:[#allocation5 + $0x40] sm:$0xff] %v2816_v49  ;;  %v2837_v31 = vrot.slane %v5525_v56, 4 }
 0x25f   :  { %v2826_v30 = vsel %vm2697_vm6, %v2825_v25, %v2824_v39  ;;  %v2834_v34 = vsel %vm2688_vm3, %v2833_v4, %v2832_v40  ;;  %v2839_v32 = vrot.slane %v5526_v13, 3  ;;  %v2845_v16 = vrot.slane %v5527_v10, 7 }
 0x260   :  { %v2828_v52 = vsel %vm2700_vm7, %v2827_v53, %v2826_v30  ;;  %v2836_v54 = vsel %vm2691_vm4, %v2835_v9, %v2834_v34  ;;  %v2847_v41 = vrot.slane %v5528_v33, 6  ;;  %v2841_v19 = vrot.slane %v5529_v62, 2 }
 0x261   :  { %v2830_v61 = vsel %vm2703_vm8, %v2829_v21, %v2828_v52  ;;  %v2838_v29 = vsel %vm2694_vm5, %v2837_v31, %v2836_v54  ;;  %v2843_v42 = vrot.slane %v5530_v47, 1  ;;  %v2846_v37 = vsel %vm2685_vm2, %v2845_v16, %v5531_v28 }
 0x262   :  { %v2840_v11 = vsel %vm2697_vm6, %v2839_v32, %v2838_v29  ;;  %v2849_v20 = vrot.slane %v5532_v46, 5  ;;  %2940 = vst [vmem:[#allocation5 + $0x48] sm:$0xff] %v2830_v61  ;;  %v2848_v45 = vsel %vm2688_vm3, %v2847_v41, %v2846_v37  ;;  %v2851_v36 = vrot.slane %v5533_v14, 4 }
 0x263   :  { %v2842_v18 = vsel %vm2700_vm7, %v2841_v19, %v2840_v11  ;;  %v2853_v44 = vrot.slane %v5534_v38, 3  ;;  %v2855_v35 = vrot.slane %v4872_v50, 2  ;;  %v2857_v0 = vrot.slane %v4882_v5, 1 }
 0x264   :  { %v2844_v26 = vsel %vm2703_vm8, %v2843_v42, %v2842_v18  ;;  %v2850_v8 = vsel %vm2691_vm4, %v2849_v20, %v2848_v45 }
 0x265   :  { %v2852_v58 = vsel %vm2694_vm5, %v2851_v36, %v2850_v8  ;;  %2941 = vst [vmem:[#allocation5 + $0x50] sm:$0xff] %v2844_v26 }
 0x266   :  { %v2854_v24 = vsel %vm2697_vm6, %v2853_v44, %v2852_v58 }
 0x267   :  { %v2856_v17 = vsel %vm2700_vm7, %v2855_v35, %v2854_v24 }
 0x268   :  { %v2858_v2 = vsel %vm2703_vm8, %v2857_v0, %v2856_v17 }
 0x269   :  { %2942 = vst [vmem:[#allocation5 + $0x58] sm:$0xff] %v2858_v2 }
 0x26a   :  { %3036 = shalt.err (!%p3033_p12)
}
 0x26b   :  { %s3037_s3 = scalar_lea.hbm %s5078_s2, 2048 }
 0x26c   :  { %p3038_p13 = scmp.ne.s32.totalorder %s5078_s2, %s3037_s3  ;;  %p3041_p0 = scmp.lt.u32.totalorder %s3037_s3, %s5078_s2 }
 0x26e   :  { %p3043_p1 = pnand %p3041_p0, %p3038_p13 }
 0x270   :  { %3046 = shalt.err (!%p3043_p1)
}
 0x271   :  { %s3055_s8 = smov 128   ;;  %s3056_s9 = smov 8  }
 0x272   :  { %2958 = dma.vmem_to_hbm [thread:$0]  %s2953_s27, 2048, %s5078_s2, [#allocation4], %s3055_s8, %s3055_s8, %s3056_s9  }
 0x273   :  { %3049 = dma.done.wait [#allocation4], 2048  }
 0x274   :  { %3050 = vsyncadd [#allocation4], 4294965248 }
 0x275   :  { %2962 = vsyncpa [#allocation3], 1 }
 0x276   :  { %2963 = vsyncpa [#allocation4], 1 }

</bundles_post_ra>
